<compile_context>
chip_gen: v7x
topology: tpu7x:2x2x1
jax: 0.10.0
libtpu: 0.0.40
codegen_flags: <defaults>
</compile_context>

<pallas_src>
import numpy as np
import jax
import jax.numpy as jnp
from jax.experimental import pallas as pl
from jax.experimental.pallas import tpu as pltpu

# ---------------- synthetic GPT-2-ish config (small) ----------------
VOCAB = 64
BLOCK_SIZE = 16       # max positions (wpe rows)
N_EMBD = 32
N_HEAD = 4
HEAD_DIM = N_EMBD // N_HEAD
N_LAYER = 2
HIDDEN = 256          # classifier hidden width (nn.Linear(n_embd, 256))
NUM_CLASSES = 5
LOGIT_PAD = 128       # lane-dense padded logits slab (sliced back to 5 in wrapper)
EPS = 1e-5

B, T = 16, 8          # example batch / sequence length
CHUNK_B = 8           # sequences per grid step  -> out block (8, 128), M rows = 64
M_ROWS = CHUNK_B * T  # rows per grid step
SLAB_W = 256          # packed-parameter slab width (max param width: HIDDEN=256)
BIG_NEG = -1e30

assert B % CHUNK_B == 0 and T <= BLOCK_SIZE


# ---------------- packed-slab layout (static, shared by pack + kernel) ----------------
def _round8(n):
    return (n + 7) & ~7


def _build_layout():
    entries = [("wte", VOCAB), ("pos_rep", M_ROWS)]
    for l in range(N_LAYER):
        entries += [
            (f"l{l}_ln1_g", 1), (f"l{l}_ln1_b", 1),
            (f"l{l}_attn_w", N_EMBD), (f"l{l}_attn_b", 1),
            (f"l{l}_proj_w", N_EMBD), (f"l{l}_proj_b", 1),
            (f"l{l}_ln2_g", 1), (f"l{l}_ln2_b", 1),
            (f"l{l}_fc_w", N_EMBD), (f"l{l}_fc_b", 1),
            (f"l{l}_fcp_w", 4 * N_EMBD), (f"l{l}_fcp_b", 1),
        ]
    entries += [
        ("lnf_g", 1), ("lnf_b", 1),
        ("cls_w1", N_EMBD), ("cls_b1", 1),
        ("cls_ln_g", 1), ("cls_ln_b", 1),
        ("cls_w2", HIDDEN), ("cls_b2", 1),
        ("addmask", N_HEAD * M_ROWS),   # (H*M, M)  0 / -1e30 additive mask
        ("headmask", N_HEAD * M_ROWS),  # (H*M, C)  per-head lane mask
        ("combine", M_ROWS),            # (M, H*M)  head-recombine 0/1 matrix
        ("pool", CHUNK_B),              # (CHUNK_B, M) mean-pool matrix (1/T)
    ]
    layout, off = {}, 0
    for name, rows in entries:
        layout[name] = off
        off += _round8(rows)
    return layout, off


_LAYOUT, SLAB_ROWS = _build_layout()


def _ln(x, g, b):
    """LayerNorm over the last axis (eps=1e-5).  x:(M,N)  g,b:(1,N)"""
    mu = jnp.mean(x, axis=-1, keepdims=True)
    var = jnp.mean(jnp.square(x - mu), axis=-1, keepdims=True)
    return (x - mu) * jax.lax.rsqrt(var + EPS) * g + b


# ---------------- the single fused kernel (per batch-chunk grid step) ----------------
def _fused_kernel(tok_ref, slab_ref, out_ref):
    f32 = jnp.float32

    def rd(name, rows, cols):
        r0 = _LAYOUT[name]
        return slab_ref[r0:r0 + rows, 0:cols]

    M = M_ROWS

    # ---- token + position embedding (one-hot gather on the MXU, exact) -----
    tok = tok_ref[...]                                                 # (M,1) i32
    vocab_iota = jax.lax.broadcasted_iota(jnp.int32, (M, VOCAB), 1)
    onehot = jnp.where(vocab_iota == tok, 1.0, 0.0).astype(f32)        # (M,VOCAB)
    h = jnp.dot(onehot, rd("wte", VOCAB, N_EMBD), preferred_element_type=f32)
    h = h + rd("pos_rep", M, N_EMBD)                                   # (M,C)

    # ---- precomputed constants (packed in the slab, no in-kernel iota) -----
    addmask = rd("addmask", N_HEAD * M, M)          # (H*M, M)  0 / -1e30
    headmask = rd("headmask", N_HEAD * M, N_EMBD)   # (H*M, C)  per-head lanes
    combine = rd("combine", M, N_HEAD * M)          # (M, H*M)  head recombine

    # ---- transformer blocks (static unroll over N_LAYER) -------------------
    for l in range(N_LAYER):
        # x = x + attn(ln_1(x))
        a = _ln(h, rd(f"l{l}_ln1_g", 1, N_EMBD), rd(f"l{l}_ln1_b", 1, N_EMBD))
        qkv = jnp.dot(a, rd(f"l{l}_attn_w", N_EMBD, 3 * N_EMBD),
                      preferred_element_type=f32) + rd(f"l{l}_attn_b", 1, 3 * N_EMBD)
        q = qkv[:, 0 * N_EMBD:1 * N_EMBD]   # pre-scaled by 1/sqrt(D) in weights
        k = qkv[:, 1 * N_EMBD:2 * N_EMBD]
        v = qkv[:, 2 * N_EMBD:3 * N_EMBD]
        # Heads folded onto the row axis: scores and P@V are ONE matmul each.
        q_stack = jnp.concatenate([q] * N_HEAD, axis=0) * headmask     # (H*M, C)
        s = jax.lax.dot_general(q_stack, k, (((1,), (1,)), ((), ())),
                                preferred_element_type=f32)            # (H*M, M)
        s = s + addmask
        # manual softmax; reciprocal on the EUP (free slot)
        mx = jnp.max(s, axis=-1, keepdims=True)
        p = jnp.exp(s - mx)
        denom = jnp.sum(p, axis=-1, keepdims=True)
        p = p * pl.reciprocal(denom, approx=True)
        o_stack = jnp.dot(p, v, preferred_element_type=f32) * headmask  # (H*M, C)
        att = jnp.dot(combine, o_stack, preferred_element_type=f32)     # (M, C)
        att = jnp.dot(att, rd(f"l{l}_proj_w", N_EMBD, N_EMBD),
                      preferred_element_type=f32) + rd(f"l{l}_proj_b", 1, N_EMBD)
        h = h + att
        # x = x + mlp(ln_2(x))
        m = _ln(h, rd(f"l{l}_ln2_g", 1, N_EMBD), rd(f"l{l}_ln2_b", 1, N_EMBD))
        m = jnp.dot(m, rd(f"l{l}_fc_w", N_EMBD, 4 * N_EMBD),
                    preferred_element_type=f32) + rd(f"l{l}_fc_b", 1, 4 * N_EMBD)
        m = jax.nn.gelu(m, approximate=True)
        m = jnp.dot(m, rd(f"l{l}_fcp_w", 4 * N_EMBD, N_EMBD),
                    preferred_element_type=f32) + rd(f"l{l}_fcp_b", 1, N_EMBD)
        h = h + m

    # ---- ln_f + mean-pool over the sequence (one matmul) --------------------
    h = _ln(h, rd("lnf_g", 1, N_EMBD), rd("lnf_b", 1, N_EMBD))
    pooled = jnp.dot(rd("pool", CHUNK_B, M), h,
                     preferred_element_type=f32)                        # (CHUNK_B,C)

    # ---- classifier head (Dropout(0.2) identity at inference) --------------
    c = jnp.dot(pooled, rd("cls_w1", N_EMBD, HIDDEN),
                preferred_element_type=f32) + rd("cls_b1", 1, HIDDEN)
    c = _ln(c, rd("cls_ln_g", 1, HIDDEN), rd("cls_ln_b", 1, HIDDEN))
    c = jax.nn.gelu(c, approximate=True)
    logits = jnp.dot(c, rd("cls_w2", HIDDEN, LOGIT_PAD),
                     preferred_element_type=f32) + rd("cls_b2", 1, LOGIT_PAD)
    out_ref[...] = logits.astype(out_ref.dtype)                         # (CHUNK_B,128)


# ---------------- wrapper: one pallas_call, gridded over batch chunks ----------------
def bci_forward_pallas(slab, x_tokens):
    Bq, Tq = x_tokens.shape
    assert Tq == T and Bq % CHUNK_B == 0
    x_flat = x_tokens.reshape(Bq * Tq, 1).astype(jnp.int32)
    out = pl.pallas_call(
        _fused_kernel,
        out_shape=jax.ShapeDtypeStruct((Bq, LOGIT_PAD), jnp.float32),
        grid_spec=pltpu.PrefetchScalarGridSpec(
            num_scalar_prefetch=0,
            grid=(Bq // CHUNK_B,),
            in_specs=[
                pl.BlockSpec((M_ROWS, 1), lambda i: (i, 0)),          # tokens/step
                pl.BlockSpec((SLAB_ROWS, SLAB_W), lambda i: (0, 0)),  # slab: once
            ],
            out_specs=pl.BlockSpec((CHUNK_B, LOGIT_PAD), lambda i: (i, 0)),
        ),
        compiler_params=pltpu.CompilerParams(
            dimension_semantics=("parallel",)),
    )(x_flat, slab)
    return out[:, :NUM_CLASSES]


# ---------------- parameter init (deterministic, synthetic) ----------------
def init_params(key):
    keys = iter(jax.random.split(key, 128))

    def nrm(shape, std=0.02):
        return jax.random.normal(next(keys), shape, jnp.float32) * std

    params = {
        "wte": nrm((VOCAB, N_EMBD)),
        "wpe": nrm((BLOCK_SIZE, N_EMBD)),
        "lnf_g": jnp.ones((N_EMBD,), jnp.float32),
        "lnf_b": jnp.zeros((N_EMBD,), jnp.float32),
        "blocks": [],
        "cls_w1": nrm((N_EMBD, HIDDEN)),
        "cls_b1": jnp.zeros((HIDDEN,), jnp.float32),
        "cls_ln_g": jnp.ones((HIDDEN,), jnp.float32),
        "cls_ln_b": jnp.zeros((HIDDEN,), jnp.float32),
        "cls_w2": nrm((HIDDEN, NUM_CLASSES)),
        "cls_b2": jnp.zeros((NUM_CLASSES,), jnp.float32),
    }
    for _ in range(N_LAYER):
        params["blocks"].append({
            "ln1_g": jnp.ones((N_EMBD,), jnp.float32),
            "ln1_b": jnp.zeros((N_EMBD,), jnp.float32),
            "attn_w": nrm((N_EMBD, 3 * N_EMBD)),
            "attn_b": jnp.zeros((3 * N_EMBD,), jnp.float32),
            "proj_w": nrm((N_EMBD, N_EMBD)),
            "proj_b": jnp.zeros((N_EMBD,), jnp.float32),
            "ln2_g": jnp.ones((N_EMBD,), jnp.float32),
            "ln2_b": jnp.zeros((N_EMBD,), jnp.float32),
            "fc_w": nrm((N_EMBD, 4 * N_EMBD)),
            "fc_b": jnp.zeros((4 * N_EMBD,), jnp.float32),
            "fcp_w": nrm((4 * N_EMBD, N_EMBD)),
            "fcp_b": jnp.zeros((N_EMBD,), jnp.float32),
        })
    return params


def pack_params(params):
    """One-time transform: fold 1/sqrt(D) into Q weights, pad classifier output
    to 128 lanes, precompute attention/pool/pos constants, and pack EVERYTHING
    into a single (SLAB_ROWS, 256) f32 slab (one DMA descriptor)."""
    slab = np.zeros((SLAB_ROWS, SLAB_W), np.float32)

    def put(name, arr):
        arr = np.asarray(arr, np.float32)
        if arr.ndim == 1:
            arr = arr[None, :]
        r0 = _LAYOUT[name]
        slab[r0:r0 + arr.shape[0], :arr.shape[1]] = arr

    scale = 1.0 / np.sqrt(float(HEAD_DIM))
    put("wte", params["wte"])
    put("pos_rep", np.tile(np.asarray(params["wpe"])[:T, :], (CHUNK_B, 1)))
    for l, blk in enumerate(params["blocks"]):
        attn_w = np.asarray(blk["attn_w"], np.float32).copy()
        attn_b = np.asarray(blk["attn_b"], np.float32).copy()
        attn_w[:, :N_EMBD] *= scale
        attn_b[:N_EMBD] *= scale
        put(f"l{l}_ln1_g", blk["ln1_g"]); put(f"l{l}_ln1_b", blk["ln1_b"])
        put(f"l{l}_attn_w", attn_w);      put(f"l{l}_attn_b", attn_b)
        put(f"l{l}_proj_w", blk["proj_w"]); put(f"l{l}_proj_b", blk["proj_b"])
        put(f"l{l}_ln2_g", blk["ln2_g"]); put(f"l{l}_ln2_b", blk["ln2_b"])
        put(f"l{l}_fc_w", blk["fc_w"]);   put(f"l{l}_fc_b", blk["fc_b"])
        put(f"l{l}_fcp_w", blk["fcp_w"]); put(f"l{l}_fcp_b", blk["fcp_b"])
    put("lnf_g", params["lnf_g"]); put("lnf_b", params["lnf_b"])
    put("cls_w1", params["cls_w1"]); put("cls_b1", params["cls_b1"])
    put("cls_ln_g", params["cls_ln_g"]); put("cls_ln_b", params["cls_ln_b"])
    put("cls_w2", params["cls_w2"])   # lanes 5..127 stay zero -> padded logits
    put("cls_b2", params["cls_b2"])

    # combined batch-block + causal ADDITIVE mask, heads stacked along rows
    r = np.arange(N_HEAD * M_ROWS) % M_ROWS
    c = np.arange(M_ROWS)
    valid = ((r[:, None] // T) == (c[None, :] // T)) & \
            ((c[None, :] % T) <= (r[:, None] % T))
    put("addmask", np.where(valid, 0.0, BIG_NEG).astype(np.float32))
    # per-head lane mask over the feature axis
    hrow = np.arange(N_HEAD * M_ROWS) // M_ROWS
    lane = np.arange(N_EMBD)
    put("headmask", ((lane[None, :] >= hrow[:, None] * HEAD_DIM) &
                     (lane[None, :] < (hrow[:, None] + 1) * HEAD_DIM)
                     ).astype(np.float32))
    # head-recombine matrix (M, H*M)
    comb = np.zeros((M_ROWS, N_HEAD * M_ROWS), np.float32)
    for hh in range(N_HEAD):
        comb[np.arange(M_ROWS), hh * M_ROWS + np.arange(M_ROWS)] = 1.0
    put("combine", comb)
    # mean-pool matrix (CHUNK_B, M)
    pool = np.zeros((CHUNK_B, M_ROWS), np.float32)
    for bb in range(CHUNK_B):
        pool[bb, bb * T:(bb + 1) * T] = 1.0 / T
    put("pool", pool)

    return jnp.asarray(slab)


# ---------------- pure-JAX reference (same math, canonical params) ----------------
def bci_forward_ref(params, x_tokens):
    def ln(x, g, b):
        mu = x.mean(-1, keepdims=True)
        var = ((x - mu) ** 2).mean(-1, keepdims=True)
        return (x - mu) / jnp.sqrt(var + EPS) * g + b

    Bq, Tq = x_tokens.shape
    h = params["wte"][x_tokens] + params["wpe"][:Tq][None]
    for blk in params["blocks"]:
        a = ln(h, blk["ln1_g"], blk["ln1_b"])
        qkv = a @ blk["attn_w"] + blk["attn_b"]
        qkv = qkv.reshape(Bq, Tq, 3, N_HEAD, HEAD_DIM)
        q = qkv[:, :, 0].transpose(0, 2, 1, 3)
        k = qkv[:, :, 1].transpose(0, 2, 1, 3)
        v = qkv[:, :, 2].transpose(0, 2, 1, 3)
        s = jnp.einsum("bhqd,bhkd->bhqk", q, k) / jnp.sqrt(jnp.float32(HEAD_DIM))
        mask = jnp.tril(jnp.ones((Tq, Tq), bool))
        s = jnp.where(mask[None, None], s, BIG_NEG)
        p = jax.nn.softmax(s, axis=-1)
        att = jnp.einsum("bhqk,bhkd->bhqd", p, v).transpose(0, 2, 1, 3)
        att = att.reshape(Bq, Tq, N_EMBD)
        h = h + (att @ blk["proj_w"] + blk["proj_b"])
        m = ln(h, blk["ln2_g"], blk["ln2_b"])
        m = jax.nn.gelu(m @ blk["fc_w"] + blk["fc_b"], approximate=False)
        h = h + (m @ blk["fcp_w"] + blk["fcp_b"])
    h = ln(h, params["lnf_g"], params["lnf_b"])
    pooled = h.mean(axis=1)
    c = pooled @ params["cls_w1"] + params["cls_b1"]
    c = ln(c, params["cls_ln_g"], params["cls_ln_b"])
    c = jax.nn.gelu(c, approximate=False)
    return c @ params["cls_w2"] + params["cls_b2"]


if __name__ == "__main__":
    key = jax.random.PRNGKey(0)
    k_param, k_x = jax.random.split(key)
    params = init_params(k_param)
    slab = pack_params(params)     # one-time weight transform + constant packing
    x = jax.random.randint(k_x, (B, T), 0, VOCAB, dtype=jnp.int32)

    fwd = jax.jit(bci_forward_pallas)
    logits = jax.block_until_ready(fwd(slab, x))
    assert logits.shape == (B, NUM_CLASSES)

    ref = bci_forward_ref(params, x)
    assert jnp.allclose(logits, ref, rtol=1e-3, atol=1e-3), (logits, ref)

    print("KERNEL_OK")
</pallas_src>

<mosaic_0001>
module attributes {stable_mosaic.version = 11 : i64} {
  func.func @_fused_kernel(%arg0: i32, %arg1: memref<64x1xi32, #tpu.memory_space<vmem>>, %arg2: memref<1624x256xf32, #tpu.memory_space<vmem>>, %arg3: memref<8x128xf32, #tpu.memory_space<vmem>>) attributes {dimension_semantics = [#tpu.dimension_semantics<parallel>], iteration_bounds = array<i64: 2>, scalar_prefetch = 0 : i64, scratch_operands = 0 : i64, tpu.core_type = #tpu.core_type<tc>, window_params = [{transform_indices = @transform_0, window_bounds = array<i64: 64, 1>}, {pipeline_mode = #tpu.pipeline_mode<synchronous>, transform_indices = @transform_1, window_bounds = array<i64: 1624, 256>}, {transform_indices = @transform_2, window_bounds = array<i64: 8, 128>}]} {
    %c0 = arith.constant 0 : index
    %c0_0 = arith.constant 0 : index
    %0 = vector.load %arg1[%c0, %c0_0] : memref<64x1xi32, #tpu.memory_space<vmem>>, vector<64x1xi32>
    %1 = tpu.iota {dimensions = array<i32: 1>} : vector<64x64xi32>
    %2 = vector.broadcast %0 : vector<64x1xi32> to vector<64x64xi32>
    %3 = arith.cmpi eq, %1, %2 : vector<64x64xi32>
    %cst = arith.constant 1.000000e+00 : f32
    %cst_1 = arith.constant 0.000000e+00 : f32
    %4 = vector.broadcast %cst : f32 to vector<64x64xf32>
    %5 = vector.broadcast %cst_1 : f32 to vector<64x64xf32>
    %6 = arith.select %3, %4, %5 : vector<64x64xi1>, vector<64x64xf32>
    %c0_2 = arith.constant 0 : index
    %c0_3 = arith.constant 0 : index
    %7 = vector.load %arg2[%c0_2, %c0_3] : memref<1624x256xf32, #tpu.memory_space<vmem>>, vector<64x32xf32>
    %cst_4 = arith.constant dense<0.000000e+00> : vector<64x32xf32>
    %8 = tpu.matmul %6, %7, %cst_4 {dimension_numbers = #tpu.dot_dimension_numbers<[1], [0], [0], [1], [0, 0, 1, 1], [], []>} : vector<64x64xf32>, vector<64x32xf32>, vector<64x32xf32> -> vector<64x32xf32>
    %c64 = arith.constant 64 : index
    %c0_5 = arith.constant 0 : index
    %9 = vector.load %arg2[%c64, %c0_5] : memref<1624x256xf32, #tpu.memory_space<vmem>>, vector<64x32xf32>
    %10 = arith.addf %8, %9 : vector<64x32xf32>
    %c1040 = arith.constant 1040 : index
    %c0_6 = arith.constant 0 : index
    %11 = vector.load %arg2[%c1040, %c0_6] : memref<1624x256xf32, #tpu.memory_space<vmem>>, vector<256x64xf32>
    %c1296 = arith.constant 1296 : index
    %c0_7 = arith.constant 0 : index
    %12 = vector.load %arg2[%c1296, %c0_7] : memref<1624x256xf32, #tpu.memory_space<vmem>>, vector<256x32xf32>
    %c1552 = arith.constant 1552 : index
    %c0_8 = arith.constant 0 : index
    %13 = vector.load %arg2[%c1552, %c0_8] : memref<1624x256xf32, #tpu.memory_space<vmem>>, vector<64x256xf32>
    %c128 = arith.constant 128 : index
    %c0_9 = arith.constant 0 : index
    %14 = vector.load %arg2[%c128, %c0_9] : memref<1624x256xf32, #tpu.memory_space<vmem>>, vector<1x32xf32>
    %c136 = arith.constant 136 : index
    %c0_10 = arith.constant 0 : index
    %15 = vector.load %arg2[%c136, %c0_10] : memref<1624x256xf32, #tpu.memory_space<vmem>>, vector<1x32xf32>
    %cst_11 = arith.constant dense<0.000000e+00> : vector<64xf32>
    %16 = vector.multi_reduction <add>, %10, %cst_11 [1] : vector<64x32xf32> to vector<64xf32>
    %17 = vector.shape_cast %16 : vector<64xf32> to vector<64x1xf32>
    %cst_12 = arith.constant 3.200000e+01 : f32
    %18 = vector.broadcast %cst_12 : f32 to vector<64x1xf32>
    %19 = arith.divf %17, %18 : vector<64x1xf32>
    %20 = vector.broadcast %19 : vector<64x1xf32> to vector<64x32xf32>
    %21 = arith.subf %10, %20 : vector<64x32xf32>
    %22 = arith.mulf %21, %21 : vector<64x32xf32>
    %cst_13 = arith.constant dense<0.000000e+00> : vector<64xf32>
    %23 = vector.multi_reduction <add>, %22, %cst_13 [1] : vector<64x32xf32> to vector<64xf32>
    %24 = vector.shape_cast %23 : vector<64xf32> to vector<64x1xf32>
    %cst_14 = arith.constant 3.200000e+01 : f32
    %25 = vector.broadcast %cst_14 : f32 to vector<64x1xf32>
    %26 = arith.divf %24, %25 : vector<64x1xf32>
    %27 = vector.broadcast %19 : vector<64x1xf32> to vector<64x32xf32>
    %28 = arith.subf %10, %27 : vector<64x32xf32>
    %cst_15 = arith.constant 9.99999974E-6 : f32
    %29 = vector.broadcast %cst_15 : f32 to vector<64x1xf32>
    %30 = arith.addf %26, %29 : vector<64x1xf32>
    %31 = math.rsqrt %30 : vector<64x1xf32>
    %32 = vector.broadcast %31 : vector<64x1xf32> to vector<64x32xf32>
    %33 = arith.mulf %28, %32 : vector<64x32xf32>
    %34 = vector.broadcast %14 : vector<1x32xf32> to vector<64x32xf32>
    %35 = arith.mulf %33, %34 : vector<64x32xf32>
    %36 = vector.broadcast %15 : vector<1x32xf32> to vector<64x32xf32>
    %37 = arith.addf %35, %36 : vector<64x32xf32>
    %c144 = arith.constant 144 : index
    %c0_16 = arith.constant 0 : index
    %38 = vector.load %arg2[%c144, %c0_16] : memref<1624x256xf32, #tpu.memory_space<vmem>>, vector<32x96xf32>
    %cst_17 = arith.constant dense<0.000000e+00> : vector<64x96xf32>
    %39 = tpu.matmul %37, %38, %cst_17 {dimension_numbers = #tpu.dot_dimension_numbers<[1], [0], [0], [1], [0, 0, 1, 1], [], []>} : vector<64x32xf32>, vector<32x96xf32>, vector<64x96xf32> -> vector<64x96xf32>
    %c176 = arith.constant 176 : index
    %c0_18 = arith.constant 0 : index
    %40 = vector.load %arg2[%c176, %c0_18] : memref<1624x256xf32, #tpu.memory_space<vmem>>, vector<1x96xf32>
    %41 = vector.broadcast %40 : vector<1x96xf32> to vector<64x96xf32>
    %42 = arith.addf %39, %41 : vector<64x96xf32>
    %43 = vector.extract_strided_slice %42 {offsets = [0, 0], sizes = [64, 32], strides = [1, 1]} : vector<64x96xf32> to vector<64x32xf32>
    %44 = vector.extract_strided_slice %42 {offsets = [0, 32], sizes = [64, 32], strides = [1, 1]} : vector<64x96xf32> to vector<64x32xf32>
    %45 = vector.extract_strided_slice %42 {offsets = [0, 64], sizes = [64, 32], strides = [1, 1]} : vector<64x96xf32> to vector<64x32xf32>
    %46 = tpu.concatenate %43, %43, %43, %43 in 0 : vector<64x32xf32>, vector<64x32xf32>, vector<64x32xf32>, vector<64x32xf32> -> vector<256x32xf32>
    %47 = arith.mulf %46, %12 : vector<256x32xf32>
    %cst_19 = arith.constant dense<0.000000e+00> : vector<256x64xf32>
    %48 = tpu.matmul %47, %44, %cst_19 {dimension_numbers = #tpu.dot_dimension_numbers<[1], [1], [0], [0], [0, 0, 1, 0], [], []>} : vector<256x32xf32>, vector<64x32xf32>, vector<256x64xf32> -> vector<256x64xf32>
    %49 = arith.addf %48, %11 : vector<256x64xf32>
    %cst_20 = arith.constant dense<0xFF800000> : vector<256xf32>
    %50 = vector.multi_reduction <maximumf>, %49, %cst_20 [1] : vector<256x64xf32> to vector<256xf32>
    %51 = vector.shape_cast %50 : vector<256xf32> to vector<256x1xf32>
    %52 = vector.broadcast %51 : vector<256x1xf32> to vector<256x64xf32>
    %53 = arith.subf %49, %52 : vector<256x64xf32>
    %54 = math.exp %53 : vector<256x64xf32>
    %cst_21 = arith.constant dense<0.000000e+00> : vector<256xf32>
    %55 = vector.multi_reduction <add>, %54, %cst_21 [1] : vector<256x64xf32> to vector<256xf32>
    %56 = vector.shape_cast %55 : vector<256xf32> to vector<256x1xf32>
    %57 = tpu.reciprocal %56 {approx = true} : vector<256x1xf32> -> vector<256x1xf32>
    %58 = vector.broadcast %57 : vector<256x1xf32> to vector<256x64xf32>
    %59 = arith.mulf %54, %58 : vector<256x64xf32>
    %cst_22 = arith.constant dense<0.000000e+00> : vector<256x32xf32>
    %60 = tpu.matmul %59, %45, %cst_22 {dimension_numbers = #tpu.dot_dimension_numbers<[1], [0], [0], [1], [0, 0, 1, 1], [], []>} : vector<256x64xf32>, vector<64x32xf32>, vector<256x32xf32> -> vector<256x32xf32>
    %61 = arith.mulf %60, %12 : vector<256x32xf32>
    %cst_23 = arith.constant dense<0.000000e+00> : vector<64x32xf32>
    %62 = tpu.matmul %13, %61, %cst_23 {dimension_numbers = #tpu.dot_dimension_numbers<[1], [0], [0], [1], [0, 0, 1, 1], [], []>} : vector<64x256xf32>, vector<256x32xf32>, vector<64x32xf32> -> vector<64x32xf32>
    %c184 = arith.constant 184 : index
    %c0_24 = arith.constant 0 : index
    %63 = vector.load %arg2[%c184, %c0_24] : memref<1624x256xf32, #tpu.memory_space<vmem>>, vector<32x32xf32>
    %cst_25 = arith.constant dense<0.000000e+00> : vector<64x32xf32>
    %64 = tpu.matmul %62, %63, %cst_25 {dimension_numbers = #tpu.dot_dimension_numbers<[1], [0], [0], [1], [0, 0, 1, 1], [], []>} : vector<64x32xf32>, vector<32x32xf32>, vector<64x32xf32> -> vector<64x32xf32>
    %c216 = arith.constant 216 : index
    %c0_26 = arith.constant 0 : index
    %65 = vector.load %arg2[%c216, %c0_26] : memref<1624x256xf32, #tpu.memory_space<vmem>>, vector<1x32xf32>
    %66 = vector.broadcast %65 : vector<1x32xf32> to vector<64x32xf32>
    %67 = arith.addf %64, %66 : vector<64x32xf32>
    %68 = arith.addf %10, %67 : vector<64x32xf32>
    %c224 = arith.constant 224 : index
    %c0_27 = arith.constant 0 : index
    %69 = vector.load %arg2[%c224, %c0_27] : memref<1624x256xf32, #tpu.memory_space<vmem>>, vector<1x32xf32>
    %c232 = arith.constant 232 : index
    %c0_28 = arith.constant 0 : index
    %70 = vector.load %arg2[%c232, %c0_28] : memref<1624x256xf32, #tpu.memory_space<vmem>>, vector<1x32xf32>
    %cst_29 = arith.constant dense<0.000000e+00> : vector<64xf32>
    %71 = vector.multi_reduction <add>, %68, %cst_29 [1] : vector<64x32xf32> to vector<64xf32>
    %72 = vector.shape_cast %71 : vector<64xf32> to vector<64x1xf32>
    %cst_30 = arith.constant 3.200000e+01 : f32
    %73 = vector.broadcast %cst_30 : f32 to vector<64x1xf32>
    %74 = arith.divf %72, %73 : vector<64x1xf32>
    %75 = vector.broadcast %74 : vector<64x1xf32> to vector<64x32xf32>
    %76 = arith.subf %68, %75 : vector<64x32xf32>
    %77 = arith.mulf %76, %76 : vector<64x32xf32>
    %cst_31 = arith.constant dense<0.000000e+00> : vector<64xf32>
    %78 = vector.multi_reduction <add>, %77, %cst_31 [1] : vector<64x32xf32> to vector<64xf32>
    %79 = vector.shape_cast %78 : vector<64xf32> to vector<64x1xf32>
    %cst_32 = arith.constant 3.200000e+01 : f32
    %80 = vector.broadcast %cst_32 : f32 to vector<64x1xf32>
    %81 = arith.divf %79, %80 : vector<64x1xf32>
    %82 = vector.broadcast %74 : vector<64x1xf32> to vector<64x32xf32>
    %83 = arith.subf %68, %82 : vector<64x32xf32>
    %cst_33 = arith.constant 9.99999974E-6 : f32
    %84 = vector.broadcast %cst_33 : f32 to vector<64x1xf32>
    %85 = arith.addf %81, %84 : vector<64x1xf32>
    %86 = math.rsqrt %85 : vector<64x1xf32>
    %87 = vector.broadcast %86 : vector<64x1xf32> to vector<64x32xf32>
    %88 = arith.mulf %83, %87 : vector<64x32xf32>
    %89 = vector.broadcast %69 : vector<1x32xf32> to vector<64x32xf32>
    %90 = arith.mulf %88, %89 : vector<64x32xf32>
    %91 = vector.broadcast %70 : vector<1x32xf32> to vector<64x32xf32>
    %92 = arith.addf %90, %91 : vector<64x32xf32>
    %c240 = arith.constant 240 : index
    %c0_34 = arith.constant 0 : index
    %93 = vector.load %arg2[%c240, %c0_34] : memref<1624x256xf32, #tpu.memory_space<vmem>>, vector<32x128xf32>
    %cst_35 = arith.constant dense<0.000000e+00> : vector<64x128xf32>
    %94 = tpu.matmul %92, %93, %cst_35 {dimension_numbers = #tpu.dot_dimension_numbers<[1], [0], [0], [1], [0, 0, 1, 1], [], []>} : vector<64x32xf32>, vector<32x128xf32>, vector<64x128xf32> -> vector<64x128xf32>
    %c272 = arith.constant 272 : index
    %c0_36 = arith.constant 0 : index
    %95 = vector.load %arg2[%c272, %c0_36] : memref<1624x256xf32, #tpu.memory_space<vmem>>, vector<1x128xf32>
    %96 = vector.broadcast %95 : vector<1x128xf32> to vector<64x128xf32>
    %97 = arith.addf %94, %96 : vector<64x128xf32>
    %98 = arith.mulf %97, %97 : vector<64x128xf32>
    %99 = arith.mulf %97, %98 : vector<64x128xf32>
    %cst_37 = arith.constant 4.471500e-02 : f32
    %100 = vector.broadcast %cst_37 : f32 to vector<64x128xf32>
    %101 = arith.mulf %100, %99 : vector<64x128xf32>
    %102 = arith.addf %97, %101 : vector<64x128xf32>
    %cst_38 = arith.constant 0.797884583 : f32
    %103 = vector.broadcast %cst_38 : f32 to vector<64x128xf32>
    %104 = arith.mulf %103, %102 : vector<64x128xf32>
    %105 = math.tanh %104 : vector<64x128xf32>
    %cst_39 = arith.constant 1.000000e+00 : f32
    %106 = vector.broadcast %cst_39 : f32 to vector<64x128xf32>
    %107 = arith.addf %106, %105 : vector<64x128xf32>
    %cst_40 = arith.constant 5.000000e-01 : f32
    %108 = vector.broadcast %cst_40 : f32 to vector<64x128xf32>
    %109 = arith.mulf %108, %107 : vector<64x128xf32>
    %110 = arith.mulf %97, %109 : vector<64x128xf32>
    %c280 = arith.constant 280 : index
    %c0_41 = arith.constant 0 : index
    %111 = vector.load %arg2[%c280, %c0_41] : memref<1624x256xf32, #tpu.memory_space<vmem>>, vector<128x32xf32>
    %cst_42 = arith.constant dense<0.000000e+00> : vector<64x32xf32>
    %112 = tpu.matmul %110, %111, %cst_42 {dimension_numbers = #tpu.dot_dimension_numbers<[1], [0], [0], [1], [0, 0, 1, 1], [], []>} : vector<64x128xf32>, vector<128x32xf32>, vector<64x32xf32> -> vector<64x32xf32>
    %c408 = arith.constant 408 : index
    %c0_43 = arith.constant 0 : index
    %113 = vector.load %arg2[%c408, %c0_43] : memref<1624x256xf32, #tpu.memory_space<vmem>>, vector<1x32xf32>
    %114 = vector.broadcast %113 : vector<1x32xf32> to vector<64x32xf32>
    %115 = arith.addf %112, %114 : vector<64x32xf32>
    %116 = arith.addf %68, %115 : vector<64x32xf32>
    %c416 = arith.constant 416 : index
    %c0_44 = arith.constant 0 : index
    %117 = vector.load %arg2[%c416, %c0_44] : memref<1624x256xf32, #tpu.memory_space<vmem>>, vector<1x32xf32>
    %c424 = arith.constant 424 : index
    %c0_45 = arith.constant 0 : index
    %118 = vector.load %arg2[%c424, %c0_45] : memref<1624x256xf32, #tpu.memory_space<vmem>>, vector<1x32xf32>
    %cst_46 = arith.constant dense<0.000000e+00> : vector<64xf32>
    %119 = vector.multi_reduction <add>, %116, %cst_46 [1] : vector<64x32xf32> to vector<64xf32>
    %120 = vector.shape_cast %119 : vector<64xf32> to vector<64x1xf32>
    %cst_47 = arith.constant 3.200000e+01 : f32
    %121 = vector.broadcast %cst_47 : f32 to vector<64x1xf32>
    %122 = arith.divf %120, %121 : vector<64x1xf32>
    %123 = vector.broadcast %122 : vector<64x1xf32> to vector<64x32xf32>
    %124 = arith.subf %116, %123 : vector<64x32xf32>
    %125 = arith.mulf %124, %124 : vector<64x32xf32>
    %cst_48 = arith.constant dense<0.000000e+00> : vector<64xf32>
    %126 = vector.multi_reduction <add>, %125, %cst_48 [1] : vector<64x32xf32> to vector<64xf32>
    %127 = vector.shape_cast %126 : vector<64xf32> to vector<64x1xf32>
    %cst_49 = arith.constant 3.200000e+01 : f32
    %128 = vector.broadcast %cst_49 : f32 to vector<64x1xf32>
    %129 = arith.divf %127, %128 : vector<64x1xf32>
    %130 = vector.broadcast %122 : vector<64x1xf32> to vector<64x32xf32>
    %131 = arith.subf %116, %130 : vector<64x32xf32>
    %cst_50 = arith.constant 9.99999974E-6 : f32
    %132 = vector.broadcast %cst_50 : f32 to vector<64x1xf32>
    %133 = arith.addf %129, %132 : vector<64x1xf32>
    %134 = math.rsqrt %133 : vector<64x1xf32>
    %135 = vector.broadcast %134 : vector<64x1xf32> to vector<64x32xf32>
    %136 = arith.mulf %131, %135 : vector<64x32xf32>
    %137 = vector.broadcast %117 : vector<1x32xf32> to vector<64x32xf32>
    %138 = arith.mulf %136, %137 : vector<64x32xf32>
    %139 = vector.broadcast %118 : vector<1x32xf32> to vector<64x32xf32>
    %140 = arith.addf %138, %139 : vector<64x32xf32>
    %c432 = arith.constant 432 : index
    %c0_51 = arith.constant 0 : index
    %141 = vector.load %arg2[%c432, %c0_51] : memref<1624x256xf32, #tpu.memory_space<vmem>>, vector<32x96xf32>
    %cst_52 = arith.constant dense<0.000000e+00> : vector<64x96xf32>
    %142 = tpu.matmul %140, %141, %cst_52 {dimension_numbers = #tpu.dot_dimension_numbers<[1], [0], [0], [1], [0, 0, 1, 1], [], []>} : vector<64x32xf32>, vector<32x96xf32>, vector<64x96xf32> -> vector<64x96xf32>
    %c464 = arith.constant 464 : index
    %c0_53 = arith.constant 0 : index
    %143 = vector.load %arg2[%c464, %c0_53] : memref<1624x256xf32, #tpu.memory_space<vmem>>, vector<1x96xf32>
    %144 = vector.broadcast %143 : vector<1x96xf32> to vector<64x96xf32>
    %145 = arith.addf %142, %144 : vector<64x96xf32>
    %146 = vector.extract_strided_slice %145 {offsets = [0, 0], sizes = [64, 32], strides = [1, 1]} : vector<64x96xf32> to vector<64x32xf32>
    %147 = vector.extract_strided_slice %145 {offsets = [0, 32], sizes = [64, 32], strides = [1, 1]} : vector<64x96xf32> to vector<64x32xf32>
    %148 = vector.extract_strided_slice %145 {offsets = [0, 64], sizes = [64, 32], strides = [1, 1]} : vector<64x96xf32> to vector<64x32xf32>
    %149 = tpu.concatenate %146, %146, %146, %146 in 0 : vector<64x32xf32>, vector<64x32xf32>, vector<64x32xf32>, vector<64x32xf32> -> vector<256x32xf32>
    %150 = arith.mulf %149, %12 : vector<256x32xf32>
    %cst_54 = arith.constant dense<0.000000e+00> : vector<256x64xf32>
    %151 = tpu.matmul %150, %147, %cst_54 {dimension_numbers = #tpu.dot_dimension_numbers<[1], [1], [0], [0], [0, 0, 1, 0], [], []>} : vector<256x32xf32>, vector<64x32xf32>, vector<256x64xf32> -> vector<256x64xf32>
    %152 = arith.addf %151, %11 : vector<256x64xf32>
    %cst_55 = arith.constant dense<0xFF800000> : vector<256xf32>
    %153 = vector.multi_reduction <maximumf>, %152, %cst_55 [1] : vector<256x64xf32> to vector<256xf32>
    %154 = vector.shape_cast %153 : vector<256xf32> to vector<256x1xf32>
    %155 = vector.broadcast %154 : vector<256x1xf32> to vector<256x64xf32>
    %156 = arith.subf %152, %155 : vector<256x64xf32>
    %157 = math.exp %156 : vector<256x64xf32>
    %cst_56 = arith.constant dense<0.000000e+00> : vector<256xf32>
    %158 = vector.multi_reduction <add>, %157, %cst_56 [1] : vector<256x64xf32> to vector<256xf32>
    %159 = vector.shape_cast %158 : vector<256xf32> to vector<256x1xf32>
    %160 = tpu.reciprocal %159 {approx = true} : vector<256x1xf32> -> vector<256x1xf32>
    %161 = vector.broadcast %160 : vector<256x1xf32> to vector<256x64xf32>
    %162 = arith.mulf %157, %161 : vector<256x64xf32>
    %cst_57 = arith.constant dense<0.000000e+00> : vector<256x32xf32>
    %163 = tpu.matmul %162, %148, %cst_57 {dimension_numbers = #tpu.dot_dimension_numbers<[1], [0], [0], [1], [0, 0, 1, 1], [], []>} : vector<256x64xf32>, vector<64x32xf32>, vector<256x32xf32> -> vector<256x32xf32>
    %164 = arith.mulf %163, %12 : vector<256x32xf32>
    %cst_58 = arith.constant dense<0.000000e+00> : vector<64x32xf32>
    %165 = tpu.matmul %13, %164, %cst_58 {dimension_numbers = #tpu.dot_dimension_numbers<[1], [0], [0], [1], [0, 0, 1, 1], [], []>} : vector<64x256xf32>, vector<256x32xf32>, vector<64x32xf32> -> vector<64x32xf32>
    %c472 = arith.constant 472 : index
    %c0_59 = arith.constant 0 : index
    %166 = vector.load %arg2[%c472, %c0_59] : memref<1624x256xf32, #tpu.memory_space<vmem>>, vector<32x32xf32>
    %cst_60 = arith.constant dense<0.000000e+00> : vector<64x32xf32>
    %167 = tpu.matmul %165, %166, %cst_60 {dimension_numbers = #tpu.dot_dimension_numbers<[1], [0], [0], [1], [0, 0, 1, 1], [], []>} : vector<64x32xf32>, vector<32x32xf32>, vector<64x32xf32> -> vector<64x32xf32>
    %c504 = arith.constant 504 : index
    %c0_61 = arith.constant 0 : index
    %168 = vector.load %arg2[%c504, %c0_61] : memref<1624x256xf32, #tpu.memory_space<vmem>>, vector<1x32xf32>
    %169 = vector.broadcast %168 : vector<1x32xf32> to vector<64x32xf32>
    %170 = arith.addf %167, %169 : vector<64x32xf32>
    %171 = arith.addf %116, %170 : vector<64x32xf32>
    %c512 = arith.constant 512 : index
    %c0_62 = arith.constant 0 : index
    %172 = vector.load %arg2[%c512, %c0_62] : memref<1624x256xf32, #tpu.memory_space<vmem>>, vector<1x32xf32>
    %c520 = arith.constant 520 : index
    %c0_63 = arith.constant 0 : index
    %173 = vector.load %arg2[%c520, %c0_63] : memref<1624x256xf32, #tpu.memory_space<vmem>>, vector<1x32xf32>
    %cst_64 = arith.constant dense<0.000000e+00> : vector<64xf32>
    %174 = vector.multi_reduction <add>, %171, %cst_64 [1] : vector<64x32xf32> to vector<64xf32>
    %175 = vector.shape_cast %174 : vector<64xf32> to vector<64x1xf32>
    %cst_65 = arith.constant 3.200000e+01 : f32
    %176 = vector.broadcast %cst_65 : f32 to vector<64x1xf32>
    %177 = arith.divf %175, %176 : vector<64x1xf32>
    %178 = vector.broadcast %177 : vector<64x1xf32> to vector<64x32xf32>
    %179 = arith.subf %171, %178 : vector<64x32xf32>
    %180 = arith.mulf %179, %179 : vector<64x32xf32>
    %cst_66 = arith.constant dense<0.000000e+00> : vector<64xf32>
    %181 = vector.multi_reduction <add>, %180, %cst_66 [1] : vector<64x32xf32> to vector<64xf32>
    %182 = vector.shape_cast %181 : vector<64xf32> to vector<64x1xf32>
    %cst_67 = arith.constant 3.200000e+01 : f32
    %183 = vector.broadcast %cst_67 : f32 to vector<64x1xf32>
    %184 = arith.divf %182, %183 : vector<64x1xf32>
    %185 = vector.broadcast %177 : vector<64x1xf32> to vector<64x32xf32>
    %186 = arith.subf %171, %185 : vector<64x32xf32>
    %cst_68 = arith.constant 9.99999974E-6 : f32
    %187 = vector.broadcast %cst_68 : f32 to vector<64x1xf32>
    %188 = arith.addf %184, %187 : vector<64x1xf32>
    %189 = math.rsqrt %188 : vector<64x1xf32>
    %190 = vector.broadcast %189 : vector<64x1xf32> to vector<64x32xf32>
    %191 = arith.mulf %186, %190 : vector<64x32xf32>
    %192 = vector.broadcast %172 : vector<1x32xf32> to vector<64x32xf32>
    %193 = arith.mulf %191, %192 : vector<64x32xf32>
    %194 = vector.broadcast %173 : vector<1x32xf32> to vector<64x32xf32>
    %195 = arith.addf %193, %194 : vector<64x32xf32>
    %c528 = arith.constant 528 : index
    %c0_69 = arith.constant 0 : index
    %196 = vector.load %arg2[%c528, %c0_69] : memref<1624x256xf32, #tpu.memory_space<vmem>>, vector<32x128xf32>
    %cst_70 = arith.constant dense<0.000000e+00> : vector<64x128xf32>
    %197 = tpu.matmul %195, %196, %cst_70 {dimension_numbers = #tpu.dot_dimension_numbers<[1], [0], [0], [1], [0, 0, 1, 1], [], []>} : vector<64x32xf32>, vector<32x128xf32>, vector<64x128xf32> -> vector<64x128xf32>
    %c560 = arith.constant 560 : index
    %c0_71 = arith.constant 0 : index
    %198 = vector.load %arg2[%c560, %c0_71] : memref<1624x256xf32, #tpu.memory_space<vmem>>, vector<1x128xf32>
    %199 = vector.broadcast %198 : vector<1x128xf32> to vector<64x128xf32>
    %200 = arith.addf %197, %199 : vector<64x128xf32>
    %201 = arith.mulf %200, %200 : vector<64x128xf32>
    %202 = arith.mulf %200, %201 : vector<64x128xf32>
    %cst_72 = arith.constant 4.471500e-02 : f32
    %203 = vector.broadcast %cst_72 : f32 to vector<64x128xf32>
    %204 = arith.mulf %203, %202 : vector<64x128xf32>
    %205 = arith.addf %200, %204 : vector<64x128xf32>
    %cst_73 = arith.constant 0.797884583 : f32
    %206 = vector.broadcast %cst_73 : f32 to vector<64x128xf32>
    %207 = arith.mulf %206, %205 : vector<64x128xf32>
    %208 = math.tanh %207 : vector<64x128xf32>
    %cst_74 = arith.constant 1.000000e+00 : f32
    %209 = vector.broadcast %cst_74 : f32 to vector<64x128xf32>
    %210 = arith.addf %209, %208 : vector<64x128xf32>
    %cst_75 = arith.constant 5.000000e-01 : f32
    %211 = vector.broadcast %cst_75 : f32 to vector<64x128xf32>
    %212 = arith.mulf %211, %210 : vector<64x128xf32>
    %213 = arith.mulf %200, %212 : vector<64x128xf32>
    %c568 = arith.constant 568 : index
    %c0_76 = arith.constant 0 : index
    %214 = vector.load %arg2[%c568, %c0_76] : memref<1624x256xf32, #tpu.memory_space<vmem>>, vector<128x32xf32>
    %cst_77 = arith.constant dense<0.000000e+00> : vector<64x32xf32>
    %215 = tpu.matmul %213, %214, %cst_77 {dimension_numbers = #tpu.dot_dimension_numbers<[1], [0], [0], [1], [0, 0, 1, 1], [], []>} : vector<64x128xf32>, vector<128x32xf32>, vector<64x32xf32> -> vector<64x32xf32>
    %c696 = arith.constant 696 : index
    %c0_78 = arith.constant 0 : index
    %216 = vector.load %arg2[%c696, %c0_78] : memref<1624x256xf32, #tpu.memory_space<vmem>>, vector<1x32xf32>
    %217 = vector.broadcast %216 : vector<1x32xf32> to vector<64x32xf32>
    %218 = arith.addf %215, %217 : vector<64x32xf32>
    %219 = arith.addf %171, %218 : vector<64x32xf32>
    %c704 = arith.constant 704 : index
    %c0_79 = arith.constant 0 : index
    %220 = vector.load %arg2[%c704, %c0_79] : memref<1624x256xf32, #tpu.memory_space<vmem>>, vector<1x32xf32>
    %c712 = arith.constant 712 : index
    %c0_80 = arith.constant 0 : index
    %221 = vector.load %arg2[%c712, %c0_80] : memref<1624x256xf32, #tpu.memory_space<vmem>>, vector<1x32xf32>
    %cst_81 = arith.constant dense<0.000000e+00> : vector<64xf32>
    %222 = vector.multi_reduction <add>, %219, %cst_81 [1] : vector<64x32xf32> to vector<64xf32>
    %223 = vector.shape_cast %222 : vector<64xf32> to vector<64x1xf32>
    %cst_82 = arith.constant 3.200000e+01 : f32
    %224 = vector.broadcast %cst_82 : f32 to vector<64x1xf32>
    %225 = arith.divf %223, %224 : vector<64x1xf32>
    %226 = vector.broadcast %225 : vector<64x1xf32> to vector<64x32xf32>
    %227 = arith.subf %219, %226 : vector<64x32xf32>
    %228 = arith.mulf %227, %227 : vector<64x32xf32>
    %cst_83 = arith.constant dense<0.000000e+00> : vector<64xf32>
    %229 = vector.multi_reduction <add>, %228, %cst_83 [1] : vector<64x32xf32> to vector<64xf32>
    %230 = vector.shape_cast %229 : vector<64xf32> to vector<64x1xf32>
    %cst_84 = arith.constant 3.200000e+01 : f32
    %231 = vector.broadcast %cst_84 : f32 to vector<64x1xf32>
    %232 = arith.divf %230, %231 : vector<64x1xf32>
    %233 = vector.broadcast %225 : vector<64x1xf32> to vector<64x32xf32>
    %234 = arith.subf %219, %233 : vector<64x32xf32>
    %cst_85 = arith.constant 9.99999974E-6 : f32
    %235 = vector.broadcast %cst_85 : f32 to vector<64x1xf32>
    %236 = arith.addf %232, %235 : vector<64x1xf32>
    %237 = math.rsqrt %236 : vector<64x1xf32>
    %238 = vector.broadcast %237 : vector<64x1xf32> to vector<64x32xf32>
    %239 = arith.mulf %234, %238 : vector<64x32xf32>
    %240 = vector.broadcast %220 : vector<1x32xf32> to vector<64x32xf32>
    %241 = arith.mulf %239, %240 : vector<64x32xf32>
    %242 = vector.broadcast %221 : vector<1x32xf32> to vector<64x32xf32>
    %243 = arith.addf %241, %242 : vector<64x32xf32>
    %c1616 = arith.constant 1616 : index
    %c0_86 = arith.constant 0 : index
    %244 = vector.load %arg2[%c1616, %c0_86] : memref<1624x256xf32, #tpu.memory_space<vmem>>, vector<8x64xf32>
    %cst_87 = arith.constant dense<0.000000e+00> : vector<8x32xf32>
    %245 = tpu.matmul %244, %243, %cst_87 {dimension_numbers = #tpu.dot_dimension_numbers<[1], [0], [0], [1], [0, 0, 1, 1], [], []>} : vector<8x64xf32>, vector<64x32xf32>, vector<8x32xf32> -> vector<8x32xf32>
    %c720 = arith.constant 720 : index
    %c0_88 = arith.constant 0 : index
    %246 = vector.load %arg2[%c720, %c0_88] : memref<1624x256xf32, #tpu.memory_space<vmem>>, vector<32x256xf32>
    %cst_89 = arith.constant dense<0.000000e+00> : vector<8x256xf32>
    %247 = tpu.matmul %245, %246, %cst_89 {dimension_numbers = #tpu.dot_dimension_numbers<[1], [0], [0], [1], [0, 0, 1, 1], [], []>} : vector<8x32xf32>, vector<32x256xf32>, vector<8x256xf32> -> vector<8x256xf32>
    %c752 = arith.constant 752 : index
    %c0_90 = arith.constant 0 : index
    %248 = vector.load %arg2[%c752, %c0_90] : memref<1624x256xf32, #tpu.memory_space<vmem>>, vector<1x256xf32>
    %249 = vector.broadcast %248 : vector<1x256xf32> to vector<8x256xf32>
    %250 = arith.addf %247, %249 : vector<8x256xf32>
    %c760 = arith.constant 760 : index
    %c0_91 = arith.constant 0 : index
    %251 = vector.load %arg2[%c760, %c0_91] : memref<1624x256xf32, #tpu.memory_space<vmem>>, vector<1x256xf32>
    %c768 = arith.constant 768 : index
    %c0_92 = arith.constant 0 : index
    %252 = vector.load %arg2[%c768, %c0_92] : memref<1624x256xf32, #tpu.memory_space<vmem>>, vector<1x256xf32>
    %cst_93 = arith.constant dense<0.000000e+00> : vector<8xf32>
    %253 = vector.multi_reduction <add>, %250, %cst_93 [1] : vector<8x256xf32> to vector<8xf32>
    %254 = vector.shape_cast %253 : vector<8xf32> to vector<8x1xf32>
    %cst_94 = arith.constant 2.560000e+02 : f32
    %255 = vector.broadcast %cst_94 : f32 to vector<8x1xf32>
    %256 = arith.divf %254, %255 : vector<8x1xf32>
    %257 = vector.broadcast %256 : vector<8x1xf32> to vector<8x256xf32>
    %258 = arith.subf %250, %257 : vector<8x256xf32>
    %259 = arith.mulf %258, %258 : vector<8x256xf32>
    %cst_95 = arith.constant dense<0.000000e+00> : vector<8xf32>
    %260 = vector.multi_reduction <add>, %259, %cst_95 [1] : vector<8x256xf32> to vector<8xf32>
    %261 = vector.shape_cast %260 : vector<8xf32> to vector<8x1xf32>
    %cst_96 = arith.constant 2.560000e+02 : f32
    %262 = vector.broadcast %cst_96 : f32 to vector<8x1xf32>
    %263 = arith.divf %261, %262 : vector<8x1xf32>
    %264 = vector.broadcast %256 : vector<8x1xf32> to vector<8x256xf32>
    %265 = arith.subf %250, %264 : vector<8x256xf32>
    %cst_97 = arith.constant 9.99999974E-6 : f32
    %266 = vector.broadcast %cst_97 : f32 to vector<8x1xf32>
    %267 = arith.addf %263, %266 : vector<8x1xf32>
    %268 = math.rsqrt %267 : vector<8x1xf32>
    %269 = vector.broadcast %268 : vector<8x1xf32> to vector<8x256xf32>
    %270 = arith.mulf %265, %269 : vector<8x256xf32>
    %271 = vector.broadcast %251 : vector<1x256xf32> to vector<8x256xf32>
    %272 = arith.mulf %270, %271 : vector<8x256xf32>
    %273 = vector.broadcast %252 : vector<1x256xf32> to vector<8x256xf32>
    %274 = arith.addf %272, %273 : vector<8x256xf32>
    %275 = arith.mulf %274, %274 : vector<8x256xf32>
    %276 = arith.mulf %274, %275 : vector<8x256xf32>
    %cst_98 = arith.constant 4.471500e-02 : f32
    %277 = vector.broadcast %cst_98 : f32 to vector<8x256xf32>
    %278 = arith.mulf %277, %276 : vector<8x256xf32>
    %279 = arith.addf %274, %278 : vector<8x256xf32>
    %cst_99 = arith.constant 0.797884583 : f32
    %280 = vector.broadcast %cst_99 : f32 to vector<8x256xf32>
    %281 = arith.mulf %280, %279 : vector<8x256xf32>
    %282 = math.tanh %281 : vector<8x256xf32>
    %cst_100 = arith.constant 1.000000e+00 : f32
    %283 = vector.broadcast %cst_100 : f32 to vector<8x256xf32>
    %284 = arith.addf %283, %282 : vector<8x256xf32>
    %cst_101 = arith.constant 5.000000e-01 : f32
    %285 = vector.broadcast %cst_101 : f32 to vector<8x256xf32>
    %286 = arith.mulf %285, %284 : vector<8x256xf32>
    %287 = arith.mulf %274, %286 : vector<8x256xf32>
    %c776 = arith.constant 776 : index
    %c0_102 = arith.constant 0 : index
    %288 = vector.load %arg2[%c776, %c0_102] : memref<1624x256xf32, #tpu.memory_space<vmem>>, vector<256x128xf32>
    %cst_103 = arith.constant dense<0.000000e+00> : vector<8x128xf32>
    %289 = tpu.matmul %287, %288, %cst_103 {dimension_numbers = #tpu.dot_dimension_numbers<[1], [0], [0], [1], [0, 0, 1, 1], [], []>} : vector<8x256xf32>, vector<256x128xf32>, vector<8x128xf32> -> vector<8x128xf32>
    %c1032 = arith.constant 1032 : index
    %c0_104 = arith.constant 0 : index
    %290 = vector.load %arg2[%c1032, %c0_104] : memref<1624x256xf32, #tpu.memory_space<vmem>>, vector<1x128xf32>
    %291 = vector.broadcast %290 : vector<1x128xf32> to vector<8x128xf32>
    %292 = arith.addf %289, %291 : vector<8x128xf32>
    %c0_105 = arith.constant 0 : index
    %c0_106 = arith.constant 0 : index
    %293 = vector.load %arg3[%c0_105, %c0_106] : memref<8x128xf32, #tpu.memory_space<vmem>>, vector<8x128xf32>
    tpu.vector_store %arg3[%c0_105, %c0_106], %292 {strides = array<i32>} : memref<8x128xf32, #tpu.memory_space<vmem>>, vector<8x128xf32>,
    return
  }
  func.func @transform_0(%arg0: i32) -> (i32, i32) {
    %c0_i32 = arith.constant 0 : i32
    %c0_i32_0 = arith.constant 0 : i32
    return %arg0, %c0_i32 : i32, i32
  }
  func.func @transform_1(%arg0: i32) -> (i32, i32) {
    %c0_i32 = arith.constant 0 : i32
    %c0_i32_0 = arith.constant 0 : i32
    %c0_i32_1 = arith.constant 0 : i32
    return %c0_i32, %c0_i32_0 : i32, i32
  }
  func.func @transform_2(%arg0: i32) -> (i32, i32) {
    %c0_i32 = arith.constant 0 : i32
    %c0_i32_0 = arith.constant 0 : i32
    return %arg0, %c0_i32 : i32, i32
  }
}

</mosaic_0001>

<bundles_post_ra>
// kernel: bci_forward_pallas.1
= control target key start
LH: loop header
LB: loop body
LE: loop exit
PB: predicated region body
PF: predicated region fallthrough
CT: control target
= control target key end

     0   :  { %7 = vsyncpa [#allocation3], 0  ;;  %s7328_s9 = smov 0   ;;  %s9048_s0 = inlined_call_operand.vmem [shape: s32[128,1], index: 0, kind: input, shape index: {}]   ;;  %s9049_s1 = inlined_call_operand.hbm [shape: f32[1624,256], index: 1, kind: input, shape index: {}]   ;;  %s9050_s2 = inlined_call_operand.vmem [shape: f32[16,128], index: 2, kind: output, shape index: {}]  }
   0x1 LB: > { %s7334_s10 = sadd.s32 4294967295, %s7302_s9   ;;  %p5130_p0 = scmp.ge.s32.totalorder %s7302_s9, 1  ;;  %s7302_s9 = sphi %s7328_s9, %s13_s9  }
   0x2   : > { %p91_p1 = scmp.lt.s32.totalorder %s7302_s9, 3  ;;  %s7304_s11 = smov [#allocation2]  }
   0x3   : > { %s103_s12 = sshll.u32 %s7304_s11, 4  ;;  %p9051_p3 = scmp.eq.s32.totalorder %s7334_s10, 0  ;;  %s104_s12 = int_to_ptr.vmem [resolvable:$true] %s103_s12 }
   0x4   : > { %p7338_p2 = pnand %p5130_p0, %p91_p1  ;;  %s7264_s17 = scalar_lea.hbm %s9049_s1, 51968 }
   0x5   : > { %p7265_p6 = scmp.ne.s32.totalorder %s9049_s1, %s7264_s17  ;;  %p7271_p10 = scmp.lt.u32.totalorder %s7264_s17, %s9049_s1 }
   0x6   : > { %s9053_s13 = scalar_select %p7338_p2, 1, 0 }
   0x7   : > { %p6641_p4 = pneg %p7338_p2 }
   0x9   : > { %p7347_p5 = pnand %p9051_p3, %p6641_p4 }
   0xb   : > { %p7266_p7 = pneg %p7347_p5 }
   0xd   : > { %p7267_p8 = pnand %p7266_p7, %p7265_p6 }
   0xf   : > { %p7268_p9 = pneg %p7267_p8 }
  0x11   : > { %p7273_p11 = pnand %p7271_p10, %p7268_p9 }
  0x13   : > { %7276 = shalt.err (!%p7273_p11)
}
  0x14   : > { %s7277_s22 = scalar_lea.vmem %s104_s12, 51968  ;;  %p7285_p1 = scmp.lt.s32.totalorder %s104_s12, %s104_s12 }
  0x15   : > { %p7278_p12 = scmp.ne.s32.totalorder %s104_s12, %s7277_s22  ;;  %p7286_p4 = scmp.lt.s32.totalorder %s7277_s22, %s7277_s22 }
  0x17   : > { %p7280_p13 = pnand %p7278_p12, %p7266_p7  ;;  %p7287_p3 = por %p7286_p4, %p7285_p1 }
  0x19   : > { %p7281_p0 = pneg %p7280_p13 }
  0x1b   : > { %p7288_p2 = pnand %p7287_p3, %p7281_p0 }
  0x1d   : > { %7291 = shalt.err (!%p7288_p2)
}
  0x1e   : > { %s7305_s23 = smov 256   ;;  %s7306_s24 = smov 16  }
  0x1f   : > { %6644 = dma.hbm_to_vmem [thread:$0]  (!%p7347_p5), %s9049_s1, 51968, %s104_s12, [#allocation3], %s7305_s23, %s7305_s23, %s7306_s24  }
  0x20   : > { %p9055_p6 = scmp.ne.s32.totalorder %s9053_s13, 0 }
  0x21   : > { %p9056_p8 = scmp.eq.s32.totalorder (!%p9055_p6), %s7334_s10, 0 }
  0x22   : > { %128 = sbr.rel (%p9055_p6) target bundleno = 7242 (0x1c4a), region = 28 }
  0x29   : > { %7297 = dma.done.wait (%p9056_p8), [#allocation3], 51968   ;;  %p9057_p7 = pmov %p9056_p8 }
  0x2a   : > { %s5135_s27 = sshll.u32 %s7334_s10, 3  ;;  %v7307_v0 = vmov 0   ;;  %v209_v5 = vld [vmem:[#allocation2] sm:$0xff]  ;;  %v210_v6 = vld [vmem:[#allocation2 + $0x10] sm:$0xff]  ;;  %v167_v21 = vlaneseq  ;;  %vm225_vm0 = vcmask 523264   ;;  %v7308_v25 = vmov 0.0  }
  0x2b   : > { %7299 = vsyncadd (%p9057_p7), [#allocation3], 4294915328  ;;  %6665 = vset.pattern.permute.xlu1 %v7307_v0  ;;  %6664 = vset.pattern.permute.xlu0 %v7307_v0  ;;  %p150_p2 = scmp.lt.s32.totalorder %s5135_s27, 15  ;;  %v211_v7 = vld [vmem:[#allocation2 + $0x20] sm:$0xff]  ;;  %v212_v8 = vld [vmem:[#allocation2 + $0x30] sm:$0xff]  ;;  %v6305_v9 = vpack.c.bf16 %v210_v6, %v209_v5  ;;  %vm437_vm9 = vcmask 261120  }
  0x2c   : > { %v6309_v10 = vpack.c.bf16 %v212_v8, %v211_v7  ;;  %v213_v11 = vld [vmem:[#allocation2 + $0x40] sm:$0xff]  ;;  %v214_v12 = vld [vmem:[#allocation2 + $0x50] sm:$0xff]  ;;  %v168_v22 = vand.u32 127, %v167_v21  ;;  %s7309_s4 = smov 96   ;;  %s7310_s5 = smov 64   ;;  %vm7528_vm10 = vmpackc.low %vm437_vm9, %vm437_vm9  ;;  %vm7312_vm11 = vmmov 0  }
  0x2d   : > { %s9061_s27 = smov (!%p150_p2, %s5135_s27), 15  ;;  %6306 = vmatprep.subr.bf16.mxu0 %v6305_v9  ;;  %v6313_v15 = vpack.c.bf16 %v214_v12, %v213_v11  ;;  %v215_v16 = vld [vmem:[#allocation2 + $0x60] sm:$0xff]  ;;  %v216_v17 = vld [vmem:[#allocation2 + $0x70] sm:$0xff]  ;;  %p155_p3 = scmp.lt.s32.totalorder %s7334_s10, 1 }
  0x2e   : > { %s5136_s28 = sshll.u32 %s9061_s27, 3  ;;  %6308 = vmatpush3.bf16.msra.mxu0 %v6305_v9  ;;  %v6317_v20 = vpack.c.bf16 %v216_v17, %v215_v16  ;;  %v218_v40 = vld [vmem:[#allocation2 + $0x90] sm:$0xff]  ;;  %v217_v41 = vld [vmem:[#allocation2 + $0x80] sm:$0xff] }
  0x2f   : > { %s153_s3 = scalar_lea.vmem %s9048_s0, %s5136_s28  ;;  %6310 = vmatprep.subr.bf16.mxu0 %v6309_v10  ;;  %v219_v47 = vld [vmem:[#allocation2 + $0xa0] sm:$0xff]  ;;  %v220_v50 = vld [vmem:[#allocation2 + $0xb0] sm:$0xff]  ;;  %s9063_s10 = smov (!%p155_p3, %s7334_s10), 1 }
  0x30   : > { %v161_v1 = vld [vmem:[%s153_s3 + $0x10] sm:$0xff]  ;;  %v159_v2 = vld [vmem:[%s153_s3] sm:$0xff]  ;;  %v162_v3 = vld [vmem:[%s153_s3 + $0x18] sm:$0xff]  ;;  %s5137_s6 = sshll.u32 %s9063_s10, 3 }
  0x31   : > { %176 = vperm.xlu1 %6665, %v161_v1   ;;  %170 = vperm.xlu0 %6664, %v159_v2   ;;  %v160_v4 = vld [vmem:[%s153_s3 + $0x8] sm:$0xff]  ;;  %v163_v14 = vld [vmem:[%s153_s3 + $0x20] sm:$0xff]  ;;  %v166_v18 = vld [vmem:[%s153_s3 + $0x38] sm:$0xff]  ;;  %s158_s11 = scalar_lea.vmem %s9050_s2, %s5137_s6 }
  0x32   : > { %v164_v13 = vld [vmem:[%s153_s3 + $0x28] sm:$0xff]  ;;  %v165_v19 = vld [vmem:[%s153_s3 + $0x30] sm:$0xff]  ;;  %6312 = vmatpush3.bf16.msra.mxu0 %v6309_v10  ;;  %v221_v53 = vld [vmem:[#allocation2 + $0xc0] sm:$0xff] }
  0x33   : > { %6314 = vmatprep.subr.bf16.mxu0 %v6313_v15  ;;  %v222_v57 = vld [vmem:[#allocation2 + $0xd0] sm:$0xff]  ;;  %v223_v60 = vld [vmem:[#allocation2 + $0xe0] sm:$0xff] }
  0x34   : > { %v224_v1 = vld [vmem:[#allocation2 + $0xf0] sm:$0xff] }
  0x35   : > { %179 = vperm.xlu1 %6665, %v162_v3   ;;  %173 = vperm.xlu0 %6664, %v160_v4  }
  0x36   : > { %6316 = vmatpush3.bf16.msra.mxu0 %v6313_v15 }
  0x37   : > { %6318 = vmatprep.subr.bf16.mxu0 %v6317_v20 }
  0x39   : > { %185 = vperm.xlu1 %6665, %v164_v13   ;;  %182 = vperm.xlu0 %6664, %v163_v14  }
  0x3a   : > { %6320 = vmatpush3.bf16.msra.mxu0 %v6317_v20 }
  0x3d   : > { %191 = vperm.xlu1 %6665, %v166_v18   ;;  %188 = vperm.xlu0 %6664, %v165_v19  }
  0xb0   : > { %v177_v23 = vpop.permute.xlu1 %176  ;;  %v171_v24 = vpop.permute.xlu0 %170 }
  0xb1   : > { %vm193_vm1 = vcmp.eq.s32.totalorder %v168_v22, %v171_v24  ;;  %vm195_vm2 = vcmp.eq.s32.totalorder %v168_v22, %v177_v23 }
  0xb2   : > { %v201_v26 = vsel %vm193_vm1, 1.0, %v7308_v25  ;;  %v203_v29 = vsel %vm195_vm2, 1.0, %v7308_v25 }
  0xb3   : > { %5810 = vmatprep.mubr.msk.f32.mxu0 %vm225_vm0, %v201_v26 }
  0xb4   : > { %v180_v27 = vpop.permute.xlu1 %179  ;;  %v174_v28 = vpop.permute.xlu0 %173 }
  0xb5   : > { %vm194_vm3 = vcmp.eq.s32.totalorder %v168_v22, %v174_v28  ;;  %vm196_vm4 = vcmp.eq.s32.totalorder %v168_v22, %v180_v27 }
  0xb6   : > { %v202_v30 = vsel %vm194_vm3, 1.0, %v7308_v25  ;;  %v204_v33 = vsel %vm196_vm4, 1.0, %v7308_v25 }
  0xb7   : > { %5811 = vmatmul.mubr.msk.f32.vlgmr.msra.gmra.mrb[0].mxu0 %vm225_vm0, %v202_v30 }
  0xb8   : > { %v186_v31 = vpop.permute.xlu1 %185  ;;  %5813 = vmatprep.mubr.msk.f32.mxu0 %vm225_vm0, %v203_v29  ;;  %v183_v32 = vpop.permute.xlu0 %182 }
  0xb9   : > { %vm197_vm5 = vcmp.eq.s32.totalorder %v168_v22, %v183_v32  ;;  %vm198_vm6 = vcmp.eq.s32.totalorder %v168_v22, %v186_v31 }
  0xba   : > { %v205_v34 = vsel %vm197_vm5, 1.0, %v7308_v25  ;;  %v206_v37 = vsel %vm198_vm6, 1.0, %v7308_v25 }
  0xbb   : > { %5814 = vmatmul.mubr.msk.f32.gmra.mrb[2].mxu0 %vm225_vm0, %v204_v33 }
  0xbc   : > { %v192_v35 = vpop.permute.xlu1 %191  ;;  %5816 = vmatprep.mubr.msk.f32.mxu0 %vm225_vm0, %v205_v34  ;;  %v189_v36 = vpop.permute.xlu0 %188 }
  0xbd   : > { %vm199_vm7 = vcmp.eq.s32.totalorder %v168_v22, %v189_v36  ;;  %vm200_vm8 = vcmp.eq.s32.totalorder %v168_v22, %v192_v35 }
  0xbe   : > { %v207_v38 = vsel %vm199_vm7, 1.0, %v7308_v25  ;;  %v208_v39 = vsel %vm200_vm8, 1.0, %v7308_v25 }
  0xbf   : > { %5817 = vmatmul.mubr.msk.f32.gmra.mrb[4].mxu0 %vm225_vm0, %v206_v37 }
  0xc0   : > { %5819 = vmatprep.mubr.msk.f32.mxu0 %vm225_vm0, %v207_v38 }
  0xc3   : > { %5820 = vmatmul.mubr.msk.f32.gmra.mrb[6].mxu0 %vm225_vm0, %v208_v39 }
 0x18a   : > { %v5812_v42 = vpop.f32.mrb[0].mxu0 }
 0x18b   : > { %v7394_v43 = vadd.f32 %v5812_v42, %v218_v40  ;;  %v316_v44 = vpop.f32.mrb[1].mxu0 }
 0x18c   : > { %v7396_v45 = vadd.f32 %v316_v44, %v217_v41 }
 0x18d   : > { %v441_v46 = vsel %vm437_vm9, %v7394_v43, 0.0 }
 0x18e   : > { %442 = vadd.xlane.f32.xlu1 %v441_v46  ;;  %v5815_v48 = vpop.f32.mrb[2].mxu0  ;;  %v438_v49 = vsel %vm437_vm9, %v7396_v45, 0.0 }
 0x18f   : > { %v326_v51 = vpop.f32.mrb[3].mxu0  ;;  %439 = vadd.xlane.f32.xlu0 %v438_v49  ;;  %v7404_v54 = vadd.f32 %v5815_v48, %v220_v50 }
 0x190   : > { %v7402_v52 = vadd.f32 %v326_v51, %v219_v47 }
 0x191   : > { %v447_v63 = vsel %vm437_vm9, %v7404_v54, 0.0 }
 0x192   : > { %v5818_v55 = vpop.f32.mrb[4].mxu0  ;;  %v444_v56 = vsel %vm437_vm9, %v7402_v52, 0.0 }
 0x193   : > { %445 = vadd.xlane.f32.xlu0 %v444_v56  ;;  %v336_v58 = vpop.f32.mrb[5].mxu0  ;;  %v7410_v61 = vadd.f32 %v5818_v55, %v222_v57  ;;  %v560_v55 = vld [vmem:[#allocation2 + $0x130] sm:$0xff]  ;;  %v561_v57 = vld [vmem:[#allocation2 + $0x140] sm:$0xff] }
 0x194   : > { %v7408_v59 = vadd.f32 %v336_v58, %v221_v53  ;;  %v559_v53 = vld [vmem:[#allocation2 + $0x120] sm:$0xff]  ;;  %v562_v58 = vld [vmem:[#allocation2 + $0x150] sm:$0xff] }
 0x195   : > { %v453_v5 = vsel %vm437_vm9, %v7410_v61, 0.0  ;;  %v6321_v56 = vpack.c.bf16 %v560_v55, %v559_v53 }
 0x196   : > { %v5821_v62 = vpop.f32.mrb[6].mxu0  ;;  %v450_v0 = vsel %vm437_vm9, %v7408_v59, 0.0 }
 0x197   : > { %448 = vadd.xlane.f32.xlu0 %v447_v63  ;;  %451 = vadd.xlane.f32.xlu1 %v450_v0  ;;  %v346_v2 = vpop.f32.mrb[7].mxu0  ;;  %v7418_v4 = vadd.f32 %v5821_v62, %v224_v1 }
 0x198   : > { %v7416_v3 = vadd.f32 %v346_v2, %v223_v60  ;;  %6322 = vmatprep.subr.bf16.mxu1 %v6321_v56  ;;  %v6325_v60 = vpack.c.bf16 %v562_v58, %v561_v57 }
 0x199   : > { %v459_v7 = vsel %vm437_vm9, %v7418_v4, 0.0  ;;  %6324 = vmatpush3.bf16.msra.mxu1 %v6321_v56 }
 0x19a   : > { %v456_v6 = vsel %vm437_vm9, %v7416_v3, 0.0  ;;  %6326 = vmatprep.subr.bf16.mxu1 %v6325_v60 }
 0x19b   : > { %454 = vadd.xlane.f32.xlu0 %v453_v5  ;;  %457 = vadd.xlane.f32.xlu1 %v456_v6 }
 0x19d   : > { %6328 = vmatpush3.bf16.msra.mxu1 %v6325_v60 }
 0x19f   : > { %460 = vadd.xlane.f32.xlu0 %v459_v7 }
 0x21b   : > { %v443_v8 = vpop.xlane.xlu1 %442 }
 0x21c   : > { %v464_v9 = vmul.f32 0.03125, %v443_v8  ;;  %v440_v10 = vpop.xlane.xlu0 %439 }
 0x21d   : > { %v463_v11 = vmul.f32 0.03125, %v440_v10 }
 0x21e   : > { %v7427_v12 = vsub.f32 %v7394_v43, %v464_v9 }
 0x21f   : > { %v7430_v13 = vsub.f32 %v7396_v45, %v463_v11 }
 0x220   : > { %v446_v14 = vpop.xlane.xlu0 %445  ;;  %v480_v15 = vmul.f32 %v7427_v12, %v7427_v12 }
 0x221   : > { %v465_v16 = vmul.f32 0.03125, %v446_v14  ;;  %v479_v17 = vmul.f32 %v7430_v13, %v7430_v13 }
 0x222   : > { %v490_v18 = vsel %vm437_vm9, %v480_v15, 0.0 }
 0x223   : > { %v7438_v19 = vsub.f32 %v7402_v52, %v465_v16  ;;  %491 = vadd.xlane.f32.xlu0 %v490_v18  ;;  %v487_v20 = vsel %vm437_vm9, %v479_v17, 0.0 }
 0x224   : > { %v452_v22 = vpop.xlane.xlu1 %451  ;;  %488 = vadd.xlane.f32.xlu1 %v487_v20  ;;  %v449_v23 = vpop.xlane.xlu0 %448 }
 0x225   : > { %v467_v24 = vmul.f32 0.03125, %v452_v22  ;;  %v466_v26 = vmul.f32 0.03125, %v449_v23  ;;  %v481_v27 = vmul.f32 %v7438_v19, %v7438_v19 }
 0x227   : > { %v7444_v28 = vsub.f32 %v7408_v59, %v467_v24  ;;  %v7447_v29 = vsub.f32 %v7404_v54, %v466_v26  ;;  %v493_v30 = vsel %vm437_vm9, %v481_v27, 0.0  ;;  %v435_v24 = vld [vmem:[#allocation2 + $0x100] ss:$0 sm:$0xff] }
 0x228   : > { %v458_v31 = vpop.xlane.xlu1 %457  ;;  %494 = vadd.xlane.f32.xlu1 %v493_v30  ;;  %v455_v32 = vpop.xlane.xlu0 %454 }
 0x229   : > { %v469_v33 = vmul.f32 0.03125, %v458_v31  ;;  %v468_v34 = vmul.f32 0.03125, %v455_v32  ;;  %v483_v35 = vmul.f32 %v7444_v28, %v7444_v28  ;;  %v482_v36 = vmul.f32 %v7447_v29, %v7447_v29 }
 0x22b   : > { %v7455_v37 = vsub.f32 %v7416_v3, %v469_v33  ;;  %v7458_v38 = vsub.f32 %v7410_v61, %v468_v34  ;;  %v499_v39 = vsel %vm437_vm9, %v483_v35, 0.0  ;;  %v496_v40 = vsel %vm437_vm9, %v482_v36, 0.0  ;;  %v436_v35 = vld [vmem:[#allocation2 + $0x110] ss:$0 sm:$0xff] }
 0x22c   : > { %500 = vadd.xlane.f32.xlu1 %v499_v39  ;;  %497 = vadd.xlane.f32.xlu0 %v496_v40  ;;  %v461_v41 = vpop.xlane.xlu0 %460 }
 0x22d   : > { %v470_v42 = vmul.f32 0.03125, %v461_v41  ;;  %v485_v44 = vmul.f32 %v7455_v37, %v7455_v37  ;;  %v484_v46 = vmul.f32 %v7458_v38, %v7458_v38 }
 0x22f   : > { %v7467_v47 = vsub.f32 %v7418_v4, %v470_v42  ;;  %v505_v48 = vsel %vm437_vm9, %v485_v44, 0.0  ;;  %v502_v49 = vsel %vm437_vm9, %v484_v46, 0.0 }
 0x230   : > { %506 = vadd.xlane.f32.xlu1 %v505_v48  ;;  %503 = vadd.xlane.f32.xlu0 %v502_v49 }
 0x231   : > { %v486_v50 = vmul.f32 %v7467_v47, %v7467_v47 }
 0x233   : > { %v508_v51 = vsel %vm437_vm9, %v486_v50, 0.0 }
 0x234   : > { %509 = vadd.xlane.f32.xlu0 %v508_v51 }
 0x2b0   : > { %v492_v62 = vpop.xlane.xlu0 %491 }
 0x2b1   : > { %v512_v63 = vmul.f32 0.03125, %v492_v62  ;;  %v489_v0 = vpop.xlane.xlu1 %488 }
 0x2b2   : > { %v511_v1 = vmul.f32 0.03125, %v489_v0 }
 0x2b3   : > { %v520_v2 = vadd.f32 1e-05, %v512_v63 }
 0x2b4   : > { %v519_v5 = vadd.f32 1e-05, %v511_v1 }
 0x2b5   : > { %6746 = vrsqrt.f32 %v520_v2  ;;  %v495_v6 = vpop.xlane.xlu1 %494 }
 0x2b6   : > { %6748 = vrsqrt.f32 %v519_v5  ;;  %v513_v7 = vmul.f32 0.03125, %v495_v6 }
 0x2b8   : > { %v521_v8 = vadd.f32 1e-05, %v513_v7 }
 0x2b9   : > { %v501_v9 = vpop.xlane.xlu1 %500  ;;  %v498_v10 = vpop.xlane.xlu0 %497 }
 0x2ba   : > { %6750 = vrsqrt.f32 %v521_v8  ;;  %v515_v11 = vmul.f32 0.03125, %v501_v9  ;;  %v514_v14 = vmul.f32 0.03125, %v498_v10  ;;  %v387_v9 = vld [vmem:[#allocation2 + $0xa20] sm:$0xff] }
 0x2bc   : > { %v523_v15 = vadd.f32 1e-05, %v515_v11  ;;  %v522_v16 = vadd.f32 1e-05, %v514_v14 }
 0x2bd   : > { %v507_v17 = vpop.xlane.xlu1 %506  ;;  %v504_v18 = vpop.xlane.xlu0 %503 }
 0x2be   : > { %6752 = vrsqrt.f32 %v523_v15  ;;  %v517_v20 = vmul.f32 0.03125, %v507_v17  ;;  %v516_v22 = vmul.f32 0.03125, %v504_v18 }
 0x2bf   : > { %v6747_v23 = vpop.eup %6746  ;;  %6754 = vrsqrt.f32 %v522_v16 }
 0x2c0   : > { %v6749_v26 = vpop.eup %6748  ;;  %v525_v27 = vadd.f32 1e-05, %v517_v20  ;;  %v524_v30 = vadd.f32 1e-05, %v516_v22  ;;  %v536_v31 = vmul.f32 %v6747_v23, %v7427_v12 }
 0x2c1   : > { %v510_v32 = vpop.xlane.xlu0 %509  ;;  %v535_v33 = vmul.f32 %v6749_v26, %v7430_v13 }
 0x2c2   : > { %6756 = vrsqrt.f32 %v525_v27  ;;  %v518_v34 = vmul.f32 0.03125, %v510_v32  ;;  %v544_v36 = vmul.f32 %v536_v31, %v435_v24 }
 0x2c3   : > { %6758 = vrsqrt.f32 %v524_v30  ;;  %v543_v39 = vmul.f32 %v535_v33, %v435_v24 }
 0x2c4   : > { %v6751_v40 = vpop.eup %6750  ;;  %v526_v41 = vadd.f32 1e-05, %v518_v34  ;;  %v552_v46 = vadd.f32 %v544_v36, %v436_v35 }
 0x2c5   : > { %v551_v42 = vadd.f32 %v543_v39, %v436_v35  ;;  %v537_v44 = vmul.f32 %v6751_v40, %v7438_v19  ;;  %v7155_v39 = vld [vmem:[#allocation2 + $0xa50] sm:$0xff] }
 0x2c6   : > { %6760 = vrsqrt.f32 %v526_v41 }
 0x2c7   : > { %5830 = vmatprep.mubr.msk.f32.mxu1 %vm437_vm9, %v551_v42  ;;  %v545_v48 = vmul.f32 %v537_v44, %v435_v24 }
 0x2c8   : > { %v6753_v12 = vpop.eup %6752  ;;  %5831 = vmatmul.mubr.msk.f32.vlgmr.msra.gmra.mrb[0].mxu1 %vm437_vm9, %v552_v46 }
 0x2c9   : > { %v6755_v13 = vpop.eup %6754  ;;  %v553_v49 = vadd.f32 %v545_v48, %v436_v35  ;;  %v539_v50 = vmul.f32 %v6753_v12, %v7444_v28 }
 0x2ca   : > { %v538_v51 = vmul.f32 %v6755_v13, %v7447_v29 }
 0x2cb   : > { %5833 = vmatprep.mubr.msk.f32.mxu1 %vm437_vm9, %v553_v49  ;;  %v547_v53 = vmul.f32 %v539_v50, %v435_v24 }
 0x2cc   : > { %v6757_v55 = vpop.eup %6756  ;;  %v546_v56 = vmul.f32 %v538_v51, %v435_v24 }
 0x2cd   : > { %v6759_v19 = vpop.eup %6758  ;;  %v555_v57 = vadd.f32 %v547_v53, %v436_v35  ;;  %v541_v58 = vmul.f32 %v6757_v55, %v7455_v37 }
 0x2ce   : > { %v554_v60 = vadd.f32 %v546_v56, %v436_v35  ;;  %v540_v62 = vmul.f32 %v6759_v19, %v7458_v38  ;;  %v563_v38 = vld [vmem:[#allocation2 + $0x160] ss:$0 sm:$0xff] }
 0x2cf   : > { %v549_v63 = vmul.f32 %v541_v58, %v435_v24 }
 0x2d0   : > { %v6761_v0 = vpop.eup %6760  ;;  %5834 = vmatmul.mubr.msk.f32.gmra.mrb[2].mxu1 %vm437_vm9, %v554_v60  ;;  %v548_v1 = vmul.f32 %v540_v62, %v435_v24 }
 0x2d1   : > { %5836 = vmatprep.mubr.msk.f32.mxu1 %vm437_vm9, %v555_v57  ;;  %v557_v28 = vadd.f32 %v549_v63, %v436_v35  ;;  %v542_v29 = vmul.f32 %v6761_v0, %v7467_v47 }
 0x2d2   : > { %v556_v2 = vadd.f32 %v548_v1, %v436_v35 }
 0x2d3   : > { %v550_v5 = vmul.f32 %v542_v29, %v435_v24 }
 0x2d4   : > { %5837 = vmatmul.mubr.msk.f32.gmra.mrb[4].mxu1 %vm437_vm9, %v556_v2 }
 0x2d5   : > { %5839 = vmatprep.mubr.msk.f32.mxu1 %vm437_vm9, %v557_v28  ;;  %v558_v37 = vadd.f32 %v550_v5, %v436_v35  ;;  %v388_v5 = vld [vmem:[#allocation2 + $0xa30] sm:$0xff] }
 0x2d8   : > { %5840 = vmatmul.mubr.msk.f32.gmra.mrb[6].mxu1 %vm437_vm9, %v558_v37  ;;  %v389_v37 = vld [vmem:[#allocation2 + $0xa40] sm:$0xff] }
 0x39b   : > { %v5832_v6 = vpop.f32.mrb[0].mxu1 }
 0x39c   : > { %v7490_v7 = vadd.f32 %v5832_v6, %v563_v38  ;;  %v654_v8 = vpop.f32.mrb[1].mxu1 }
 0x39d   : > { %v7492_v10 = vadd.f32 %v654_v8, %v563_v38  ;;  %v390_v8 = vld [vmem:[#allocation2 + $0xa50] sm:$0xff] }
 0x39f   : > { %v6666_v47 = vpack.i.bf16 %v7490_v7, %v7492_v10  ;;  %v693_v11 = vmul.f32 %v7492_v10, %v387_v9  ;;  %v391_v9 = vld [vmem:[#allocation2 + $0xa60] sm:$0xff] }
 0x3a1   : > { %6667 = vrot.lane.b32.xlu1 %v6666_v47, %s7309_s4  ;;  %5858 = vmatprep.mubr.msk.f32.mxu1 %vm437_vm9, %v693_v11 }
 0x3a3   : > { %v5835_v14 = vpop.f32.mrb[2].mxu1 }
 0x3a4   : > { %v7499_v15 = vadd.f32 %v5835_v14, %v563_v38  ;;  %v664_v16 = vpop.f32.mrb[3].mxu1  ;;  %v392_v14 = vld [vmem:[#allocation2 + $0xa70] sm:$0xff] }
 0x3a5   : > { %v7501_v17 = vadd.f32 %v664_v16, %v563_v38  ;;  %v393_v16 = vld [vmem:[#allocation2 + $0xa80] sm:$0xff] }
 0x3a7   : > { %v5838_v18 = vpop.f32.mrb[4].mxu1  ;;  %v6671_v20 = vpack.i.bf16 %v7499_v15, %v7501_v17  ;;  %v695_v6 = vmul.f32 %v7501_v17, %v389_v37  ;;  %v411_v37 = vld [vmem:[#allocation2 + $0xba0] sm:$0xff] }
 0x3a8   : > { %v7505_v22 = vadd.f32 %v5838_v18, %v563_v38  ;;  %v674_v23 = vpop.f32.mrb[5].mxu1 }
 0x3a9   : > { %v7507_v24 = vadd.f32 %v674_v23, %v563_v38  ;;  %6672 = vrot.lane.b32.xlu0 %v6671_v20, %s7309_s4  ;;  %v394_v23 = vld [vmem:[#allocation2 + $0xa90] sm:$0xff] }
 0x3aa   : > { %v698_v18 = vmul.f32 %v7505_v22, %v392_v14  ;;  %v414_v14 = vld [vmem:[#allocation2 + $0xbd0] sm:$0xff] }
 0x3ab   : > { %v5841_v26 = vpop.f32.mrb[6].mxu1  ;;  %v6676_v27 = vpack.i.bf16 %v7505_v22, %v7507_v24  ;;  %v697_v11 = vmul.f32 %v7507_v24, %v391_v9  ;;  %v413_v9 = vld [vmem:[#allocation2 + $0xbc0] sm:$0xff] }
 0x3ac   : > { %v7512_v30 = vadd.f32 %v5841_v26, %v563_v38  ;;  %v684_v31 = vpop.f32.mrb[7].mxu1  ;;  %v395_v26 = vld [vmem:[#allocation2 + $0xaa0] sm:$0xff] }
 0x3ad   : > { %v7514_v32 = vadd.f32 %v684_v31, %v563_v38  ;;  %6692 = vrot.lane.b32.xlu0 %v6671_v20, %s7310_s5  ;;  %6677 = vrot.lane.b32.xlu1 %v6676_v27, %s7309_s4  ;;  %v694_v38 = vmul.f32 %v7490_v7, %v388_v5  ;;  %v701_v31 = vmul.f32 %v7492_v10, %v395_v26  ;;  %v410_v5 = vld [vmem:[#allocation2 + $0xb90] sm:$0xff] }
 0x3ae   : > { %v418_v26 = vld [vmem:[#allocation2 + $0xc10] sm:$0xff] }
 0x3af   : > { %v7520_v33 = vpack.i.bf16 %v7512_v30, %v7514_v32  ;;  %v699_v20 = vmul.f32 %v7514_v32, %v393_v16  ;;  %v415_v16 = vld [vmem:[#allocation2 + $0xbe0] sm:$0xff] }
 0x3b1   : > { %6682 = vrot.lane.b32.xlu1 %v7520_v33, %s7309_s4 }
 0x3b5   : > { %6687 = vrot.lane.b32.xlu1 %v6666_v47, %s7310_s5  ;;  %v696_v47 = vmul.f32 %v7499_v15, %v390_v8  ;;  %v412_v8 = vld [vmem:[#allocation2 + $0xbb0] sm:$0xff] }
 0x3b9   : > { %6697 = vrot.lane.b32.xlu1 %v6676_v27, %s7310_s5  ;;  %v700_v27 = vmul.f32 %v7512_v30, %v394_v23  ;;  %v417_v23 = vld [vmem:[#allocation2 + $0xc00] sm:$0xff] }
 0x413   : > { %v6668_v34 = vpop.permute.xlu1 %6667 }
 0x414   : > { %v6670_v35 = vunpack.i.h.bf16 %v6668_v34  ;;  %v6669_v36 = vunpack.i.l.bf16 %v6668_v34  ;;  %v396_v34 = vld [vmem:[#allocation2 + $0xab0] sm:$0xff] }
 0x416   : > { %v6329_v40 = vpack.c.bf16 %v6670_v35, %v6669_v36  ;;  %v397_v35 = vld [vmem:[#allocation2 + $0xac0] sm:$0xff]  ;;  %v702_v36 = vmul.f32 %v7490_v7, %v396_v34 }
 0x418   : > { %6331 = vmatprep.subr.msk.bf16.mxu1 %vm7528_vm10, %v6329_v40 }
 0x419   : > { %6334 = vmatpush3.bf16.xpose.msk.msra.mxu1 %vm7528_vm10, %v6329_v40  ;;  %v703_v40 = vmul.f32 %v7501_v17, %v397_v35 }
 0x41b   : > { %v6673_v41 = vpop.permute.xlu0 %6672 }
 0x41c   : > { %v6675_v42 = vunpack.i.h.bf16 %v6673_v41  ;;  %v6674_v44 = vunpack.i.l.bf16 %v6673_v41  ;;  %v398_v41 = vld [vmem:[#allocation2 + $0xad0] sm:$0xff] }
 0x41e   : > { %v6335_v46 = vpack.c.bf16 %v6675_v42, %v6674_v44  ;;  %v399_v42 = vld [vmem:[#allocation2 + $0xae0] sm:$0xff]  ;;  %v704_v44 = vmul.f32 %v7499_v15, %v398_v41 }
 0x41f   : > { %v6678_v48 = vpop.permute.xlu1 %6677  ;;  %v6693_v51 = vpop.permute.xlu0 %6692 }
 0x420   : > { %v6680_v12 = vunpack.i.h.bf16 %v6678_v48  ;;  %v6679_v13 = vunpack.i.l.bf16 %v6678_v48  ;;  %6337 = vmatprep.subr.msk.bf16.mxu1 %vm7528_vm10, %v6335_v46  ;;  %v6695_v56 = vunpack.i.h.bf16 %v6693_v51  ;;  %v6694_v57 = vunpack.i.l.bf16 %v6693_v51  ;;  %v400_v48 = vld [vmem:[#allocation2 + $0xaf0] sm:$0xff]  ;;  %v403_v51 = vld [vmem:[#allocation2 + $0xb20] sm:$0xff] }
 0x421   : > { %6340 = vmatpush3.bf16.xpose.msk.msra.mxu1 %vm7528_vm10, %v6335_v46  ;;  %v705_v46 = vmul.f32 %v7507_v24, %v399_v42 }
 0x422   : > { %v6341_v49 = vpack.c.bf16 %v6680_v12, %v6679_v13  ;;  %v6357_v29 = vpack.c.bf16 %v6695_v56, %v6694_v57  ;;  %v401_v12 = vld [vmem:[#allocation2 + $0xb00] sm:$0xff]  ;;  %v706_v13 = vmul.f32 %v7505_v22, %v400_v48  ;;  %v404_v56 = vld [vmem:[#allocation2 + $0xb30] sm:$0xff] }
 0x423   : > { %v6683_v50 = vpop.permute.xlu1 %6682  ;;  %v710_v57 = vmul.f32 %v7490_v7, %v404_v56 }
 0x424   : > { %v6685_v53 = vunpack.i.h.bf16 %v6683_v50  ;;  %v6684_v55 = vunpack.i.l.bf16 %v6683_v50  ;;  %6343 = vmatprep.subr.msk.bf16.mxu1 %vm7528_vm10, %v6341_v49  ;;  %v402_v50 = vld [vmem:[#allocation2 + $0xb10] sm:$0xff] }
 0x426   : > { %v6347_v58 = vpack.c.bf16 %v6685_v53, %v6684_v55  ;;  %v708_v53 = vmul.f32 %v7512_v30, %v402_v50  ;;  %v709_v55 = vmul.f32 %v7492_v10, %v403_v51 }
 0x427   : > { %v6688_v19 = vpop.permute.xlu1 %6687 }
 0x428   : > { %v6690_v60 = vunpack.i.h.bf16 %v6688_v19  ;;  %v6689_v62 = vunpack.i.l.bf16 %v6688_v19  ;;  %v405_v19 = vld [vmem:[#allocation2 + $0xb40] sm:$0xff] }
 0x429   : > { %6346 = vmatpush3.bf16.xpose.msk.msra.mxu1 %vm7528_vm10, %v6341_v49  ;;  %v707_v49 = vmul.f32 %v7514_v32, %v401_v12 }
 0x42a   : > { %6349 = vmatprep.subr.msk.bf16.mxu1 %vm7528_vm10, %v6347_v58  ;;  %v6353_v63 = vpack.c.bf16 %v6690_v60, %v6689_v62  ;;  %v406_v60 = vld [vmem:[#allocation2 + $0xb50] sm:$0xff]  ;;  %v407_v62 = vld [vmem:[#allocation2 + $0xb60] sm:$0xff] }
 0x42b   : > { %v6698_v0 = vpop.permute.xlu1 %6697 }
 0x42c   : > { %v6700_v1 = vunpack.i.h.bf16 %v6698_v0  ;;  %v6699_v28 = vunpack.i.l.bf16 %v6698_v0  ;;  %6354 = vmatprep.subr.bf16.mxu0 %v6353_v63  ;;  %v713_v0 = vmul.f32 %v7507_v24, %v407_v62 }
 0x42d   : > { %6356 = vmatpush3.bf16.msra.mxu0 %v6353_v63  ;;  %v712_v63 = vmul.f32 %v7499_v15, %v406_v60 }
 0x42e   : > { %6358 = vmatprep.subr.bf16.mxu0 %v6357_v29  ;;  %v6361_v2 = vpack.c.bf16 %v6700_v1, %v6699_v28  ;;  %v408_v1 = vld [vmem:[#allocation2 + $0xb70] sm:$0xff]  ;;  %v409_v28 = vld [vmem:[#allocation2 + $0xb80] sm:$0xff] }
 0x431   : > { %6360 = vmatpush3.bf16.msra.mxu0 %v6357_v29  ;;  %6352 = vmatpush3.bf16.xpose.msk.msra.mxu1 %vm7528_vm10, %v6347_v58  ;;  %v711_v58 = vmul.f32 %v7501_v17, %v405_v19  ;;  %v714_v29 = vmul.f32 %v7505_v22, %v408_v1 }
 0x432   : > { %6362 = vmatprep.subr.bf16.mxu0 %v6361_v2 }
 0x435   : > { %6364 = vmatpush3.bf16.msra.mxu0 %v6361_v2  ;;  %v715_v2 = vmul.f32 %v7514_v32, %v409_v28 }
 0x438   : > { %5859 = vmatmul.mubr.msk.f32.vlgmr.msra.gmra.mrb[8].mxu1 %vm437_vm9, %v694_v38  ;;  %v716_v38 = vmul.f32 %v7512_v30, %v410_v5 }
 0x439   : > { %5861 = vmatprep.mubr.msk.f32.mxu1 %vm437_vm9, %v695_v6  ;;  %v717_v6 = vmul.f32 %v7492_v10, %v411_v37  ;;  %v721_v10 = vmul.f32 %v7507_v24, %v415_v16  ;;  %v355_v24 = vld [vmem:[#allocation2 + $0x820] sm:$0xff] }
 0x43c   : > { %5862 = vmatmul.mubr.msk.f32.gmra.mrb[10].mxu1 %vm437_vm9, %v696_v47  ;;  %v718_v47 = vmul.f32 %v7490_v7, %v412_v8 }
 0x43d   : > { %5864 = vmatprep.mubr.msk.f32.mxu1 %vm437_vm9, %v697_v11  ;;  %v719_v11 = vmul.f32 %v7501_v17, %v413_v9  ;;  %v723_v17 = vmul.f32 %v7514_v32, %v417_v23 }
 0x440   : > { %5865 = vmatmul.mubr.msk.f32.gmra.mrb[12].mxu1 %vm437_vm9, %v698_v18  ;;  %v720_v18 = vmul.f32 %v7499_v15, %v414_v14  ;;  %v356_v15 = vld [vmem:[#allocation2 + $0x830] sm:$0xff] }
 0x441   : > { %5867 = vmatprep.mubr.msk.f32.mxu1 %vm437_vm9, %v699_v20  ;;  %v416_v20 = vld [vmem:[#allocation2 + $0xbf0] sm:$0xff] }
 0x442   : > { %v722_v7 = vmul.f32 %v7505_v22, %v416_v20  ;;  %v358_v22 = vld [vmem:[#allocation2 + $0x850] sm:$0xff] }
 0x444   : > { %5868 = vmatmul.mubr.msk.f32.gmra.mrb[14].mxu1 %vm437_vm9, %v700_v27  ;;  %v724_v27 = vmul.f32 %v7512_v30, %v418_v26 }
 0x445   : > { %5870 = vmatprep.mubr.msk.f32.mxu1 %vm437_vm9, %v701_v31 }
 0x448   : > { %5871 = vmatmul.mubr.msk.f32.gmra.mrb[16].mxu1 %vm437_vm9, %v702_v36 }
 0x449   : > { %5873 = vmatprep.mubr.msk.f32.mxu1 %vm437_vm9, %v703_v40 }
 0x44c   : > { %5874 = vmatmul.mubr.msk.f32.gmra.mrb[18].mxu1 %vm437_vm9, %v704_v44  ;;  %v357_v44 = vld [vmem:[#allocation2 + $0x840] sm:$0xff] }
 0x44d   : > { %5876 = vmatprep.mubr.msk.f32.mxu1 %vm437_vm9, %v705_v46  ;;  %v359_v46 = vld [vmem:[#allocation2 + $0x860] sm:$0xff] }
 0x450   : > { %5877 = vmatmul.mubr.msk.f32.gmra.mrb[20].mxu1 %vm437_vm9, %v706_v13 }
 0x451   : > { %5879 = vmatprep.mubr.msk.f32.mxu1 %vm437_vm9, %v707_v49  ;;  %v360_v49 = vld [vmem:[#allocation2 + $0x870] sm:$0xff] }
 0x454   : > { %5880 = vmatmul.mubr.msk.f32.gmra.mrb[22].mxu1 %vm437_vm9, %v708_v53  ;;  %v361_v53 = vld [vmem:[#allocation2 + $0x880] sm:$0xff] }
 0x455   : > { %5882 = vmatprep.mubr.msk.f32.mxu1 %vm437_vm9, %v709_v55 }
 0x458   : > { %5883 = vmatmul.mubr.msk.f32.gmra.mrb[24].mxu1 %vm437_vm9, %v710_v57 }
 0x459   : > { %5885 = vmatprep.mubr.msk.f32.mxu1 %vm437_vm9, %v711_v58  ;;  %v362_v58 = vld [vmem:[#allocation2 + $0x890] sm:$0xff] }
 0x45c   : > { %5886 = vmatmul.mubr.msk.f32.gmra.mrb[26].mxu1 %vm437_vm9, %v712_v63  ;;  %v363_v63 = vld [vmem:[#allocation2 + $0x8a0] sm:$0xff] }
 0x45d   : > { %5888 = vmatprep.mubr.msk.f32.mxu1 %vm437_vm9, %v713_v0 }
 0x460   : > { %5889 = vmatmul.mubr.msk.f32.gmra.mrb[28].mxu1 %vm437_vm9, %v714_v29 }
 0x461   : > { %5891 = vmatprep.mubr.msk.f32.mxu1 %vm437_vm9, %v715_v2  ;;  %v364_v2 = vld [vmem:[#allocation2 + $0x8b0] sm:$0xff] }
 0x464   : > { %5892 = vmatmul.mubr.msk.f32.gmra.mrb[30].mxu1 %vm437_vm9, %v716_v38  ;;  %v365_v38 = vld [vmem:[#allocation2 + $0x8c0] sm:$0xff] }
 0x465   : > { %5894 = vmatprep.mubr.msk.f32.mxu1 %vm437_vm9, %v717_v6 }
 0x468   : > { %5895 = vmatmul.mubr.msk.f32.gmra.mrb[32].mxu1 %vm437_vm9, %v718_v47 }
 0x469   : > { %5897 = vmatprep.mubr.msk.f32.mxu1 %vm437_vm9, %v719_v11  ;;  %v366_v11 = vld [vmem:[#allocation2 + $0x8d0] sm:$0xff] }
 0x46c   : > { %5898 = vmatmul.mubr.msk.f32.gmra.mrb[34].mxu1 %vm437_vm9, %v720_v18  ;;  %v367_v18 = vld [vmem:[#allocation2 + $0x8e0] sm:$0xff] }
 0x46d   : > { %5900 = vmatprep.mubr.msk.f32.mxu1 %vm437_vm9, %v721_v10 }
 0x470   : > { %5901 = vmatmul.mubr.msk.f32.gmra.mrb[36].mxu1 %vm437_vm9, %v722_v7 }
 0x471   : > { %5903 = vmatprep.mubr.msk.f32.mxu1 %vm437_vm9, %v723_v17  ;;  %v368_v17 = vld [vmem:[#allocation2 + $0x8f0] sm:$0xff] }
 0x474   : > { %5904 = vmatmul.mubr.msk.f32.gmra.mrb[38].mxu1 %vm437_vm9, %v724_v27 }
 0x50b   : > { %v5860_v31 = vpop.f32.mrb[8].mxu1 }
 0x50c   : > { %v7610_v34 = vadd.f32 %v5860_v31, %v356_v15  ;;  %v927_v35 = vpop.f32.mrb[9].mxu1  ;;  %v369_v15 = vld [vmem:[#allocation2 + $0x900] sm:$0xff] }
 0x50d   : > { %v7612_v36 = vadd.f32 %v927_v35, %v355_v24 }
 0x50e   : > { %v1089_v32 = vsel %vm225_vm0, %v7610_v34, -inf }
 0x50f   : > { %1090 = vmax.xlane.f32.xlu1 %v1089_v32  ;;  %v5863_v40 = vpop.f32.mrb[10].mxu1  ;;  %v1086_v41 = vsel %vm225_vm0, %v7612_v36, -inf  ;;  %v370_v32 = vld [vmem:[#allocation2 + $0x910] sm:$0xff] }
 0x510   : > { %v7618_v30 = vadd.f32 %v5863_v40, %v358_v22  ;;  %v937_v42 = vpop.f32.mrb[11].mxu1  ;;  %1087 = vmax.xlane.f32.xlu0 %v1086_v41 }
 0x511   : > { %v7622_v12 = vadd.f32 %v937_v42, %v357_v44  ;;  %v371_v42 = vld [vmem:[#allocation2 + $0x920] sm:$0xff] }
 0x512   : > { %v1095_v48 = vsel %vm225_vm0, %v7618_v30, -inf }
 0x513   : > { %v5866_v13 = vpop.f32.mrb[12].mxu1  ;;  %v1092_v57 = vsel %vm225_vm0, %v7622_v12, -inf }
 0x514   : > { %v947_v50 = vpop.f32.mrb[13].mxu1  ;;  %1096 = vmax.xlane.f32.xlu0 %v1095_v48  ;;  %v7626_v55 = vadd.f32 %v5866_v13, %v360_v49  ;;  %v372_v49 = vld [vmem:[#allocation2 + $0x930] sm:$0xff] }
 0x515   : > { %v7624_v51 = vadd.f32 %v947_v50, %v359_v46 }
 0x516   : > { %v1101_v29 = vsel %vm225_vm0, %v7626_v55, -inf }
 0x517   : > { %v5869_v56 = vpop.f32.mrb[14].mxu1  ;;  %v1098_v19 = vsel %vm225_vm0, %v7624_v51, -inf }
 0x518   : > { %v957_v60 = vpop.f32.mrb[15].mxu1  ;;  %1099 = vmax.xlane.f32.xlu1 %v1098_v19  ;;  %1093 = vmax.xlane.f32.xlu0 %v1092_v57  ;;  %v7634_v0 = vadd.f32 %v5869_v56, %v362_v58  ;;  %v373_v56 = vld [vmem:[#allocation2 + $0x940] sm:$0xff] }
 0x519   : > { %v7632_v62 = vadd.f32 %v957_v60, %v361_v53 }
 0x51a   : > { %v1107_v47 = vsel %vm225_vm0, %v7634_v0, -inf }
 0x51b   : > { %v5872_v1 = vpop.f32.mrb[16].mxu1  ;;  %v1104_v28 = vsel %vm225_vm0, %v7632_v62, -inf }
 0x51c   : > { %v967_v5 = vpop.f32.mrb[17].mxu1  ;;  %1105 = vmax.xlane.f32.xlu1 %v1104_v28  ;;  %1102 = vmax.xlane.f32.xlu0 %v1101_v29  ;;  %v7642_v6 = vadd.f32 %v5872_v1, %v364_v2  ;;  %v375_v29 = vld [vmem:[#allocation2 + $0x960] sm:$0xff] }
 0x51d   : > { %v7640_v37 = vadd.f32 %v967_v5, %v363_v63  ;;  %v374_v63 = vld [vmem:[#allocation2 + $0x950] sm:$0xff] }
 0x51e   : > { %v1113_v7 = vsel %vm225_vm0, %v7642_v6, -inf }
 0x51f   : > { %v5875_v8 = vpop.f32.mrb[18].mxu1  ;;  %v1110_v9 = vsel %vm225_vm0, %v7640_v37, -inf }
 0x520   : > { %v977_v14 = vpop.f32.mrb[19].mxu1  ;;  %1111 = vmax.xlane.f32.xlu1 %v1110_v9  ;;  %1108 = vmax.xlane.f32.xlu0 %v1107_v47  ;;  %v7650_v10 = vadd.f32 %v5875_v8, %v366_v11  ;;  %v376_v9 = vld [vmem:[#allocation2 + $0x970] sm:$0xff] }
 0x521   : > { %v7648_v16 = vadd.f32 %v977_v14, %v365_v38  ;;  %v377_v14 = vld [vmem:[#allocation2 + $0x980] sm:$0xff] }
 0x522   : > { %v1119_v22 = vsel %vm225_vm0, %v7650_v10, -inf }
 0x523   : > { %v5878_v20 = vpop.f32.mrb[20].mxu1  ;;  %v1116_v23 = vsel %vm225_vm0, %v7648_v16, -inf }
 0x524   : > { %v987_v26 = vpop.f32.mrb[21].mxu1  ;;  %1117 = vmax.xlane.f32.xlu1 %v1116_v23  ;;  %1114 = vmax.xlane.f32.xlu0 %v1113_v7  ;;  %v7658_v24 = vadd.f32 %v5878_v20, %v368_v17  ;;  %v378_v17 = vld [vmem:[#allocation2 + $0x990] sm:$0xff] }
 0x525   : > { %v7656_v27 = vadd.f32 %v987_v26, %v367_v18 }
 0x526   : > { %v1125_v13 = vsel %vm225_vm0, %v7658_v24, -inf }
 0x527   : > { %v5881_v31 = vpop.f32.mrb[22].mxu1  ;;  %v1122_v35 = vsel %vm225_vm0, %v7656_v27, -inf }
 0x528   : > { %v997_v40 = vpop.f32.mrb[23].mxu1  ;;  %1123 = vmax.xlane.f32.xlu1 %v1122_v35  ;;  %1120 = vmax.xlane.f32.xlu0 %v1119_v22  ;;  %v7666_v44 = vadd.f32 %v5881_v31, %v370_v32  ;;  %v379_v31 = vld [vmem:[#allocation2 + $0x9a0] sm:$0xff] }
 0x529   : > { %v7664_v41 = vadd.f32 %v997_v40, %v369_v15 }
 0x52a   : > { %v1131_v60 = vsel %vm225_vm0, %v7666_v44, -inf }
 0x52b   : > { %v5884_v46 = vpop.f32.mrb[24].mxu1  ;;  %v1128_v48 = vsel %vm225_vm0, %v7664_v41, -inf }
 0x52c   : > { %v1007_v50 = vpop.f32.mrb[25].mxu1  ;;  %1129 = vmax.xlane.f32.xlu1 %v1128_v48  ;;  %1126 = vmax.xlane.f32.xlu0 %v1125_v13  ;;  %v7674_v19 = vadd.f32 %v5884_v46, %v372_v49  ;;  %v381_v13 = vld [vmem:[#allocation2 + $0x9c0] sm:$0xff] }
 0x52d   : > { %v7672_v53 = vadd.f32 %v1007_v50, %v371_v42  ;;  %v380_v42 = vld [vmem:[#allocation2 + $0x9b0] sm:$0xff] }
 0x52e   : > { %v1137_v8 = vsel %vm225_vm0, %v7674_v19, -inf }
 0x52f   : > { %v5887_v57 = vpop.f32.mrb[26].mxu1  ;;  %v1134_v58 = vsel %vm225_vm0, %v7672_v53, -inf }
 0x530   : > { %v1017_v1 = vpop.f32.mrb[27].mxu1  ;;  %1135 = vmax.xlane.f32.xlu1 %v1134_v58  ;;  %1132 = vmax.xlane.f32.xlu0 %v1131_v60  ;;  %v7682_v2 = vadd.f32 %v5887_v57, %v374_v63  ;;  %v382_v58 = vld [vmem:[#allocation2 + $0x9d0] sm:$0xff] }
 0x531   : > { %v7680_v28 = vadd.f32 %v1017_v1, %v373_v56  ;;  %v383_v1 = vld [vmem:[#allocation2 + $0x9e0] sm:$0xff] }
 0x532   : > { %v1143_v7 = vsel %vm225_vm0, %v7682_v2, -inf }
 0x533   : > { %v5890_v5 = vpop.f32.mrb[28].mxu1  ;;  %v1140_v38 = vsel %vm225_vm0, %v7680_v28, -inf }
 0x534   : > { %v1027_v47 = vpop.f32.mrb[29].mxu1  ;;  %1141 = vmax.xlane.f32.xlu1 %v1140_v38  ;;  %1138 = vmax.xlane.f32.xlu0 %v1137_v8  ;;  %v7690_v18 = vadd.f32 %v5890_v5, %v376_v9  ;;  %v384_v9 = vld [vmem:[#allocation2 + $0x9f0] sm:$0xff] }
 0x535   : > { %v7688_v11 = vadd.f32 %v1027_v47, %v375_v29 }
 0x536   : > { %v1149_v40 = vsel %vm225_vm0, %v7690_v18, -inf }
 0x537   : > { %v5893_v20 = vpop.f32.mrb[30].mxu1  ;;  %v1146_v23 = vsel %vm225_vm0, %v7688_v11, -inf }
 0x538   : > { %v1037_v26 = vpop.f32.mrb[31].mxu1  ;;  %1147 = vmax.xlane.f32.xlu1 %v1146_v23  ;;  %1144 = vmax.xlane.f32.xlu0 %v1143_v7  ;;  %v7698_v35 = vadd.f32 %v5893_v20, %v378_v17  ;;  %v385_v20 = vld [vmem:[#allocation2 + $0xa00] sm:$0xff] }
 0x539   : > { %v7696_v15 = vadd.f32 %v1037_v26, %v377_v14 }
 0x53a   : > { %v1155_v57 = vsel %vm225_vm0, %v7698_v35, -inf }
 0x53b   : > { %v5896_v22 = vpop.f32.mrb[32].mxu1  ;;  %v1152_v32 = vsel %vm225_vm0, %v7696_v15, -inf }
 0x53c   : > { %v1047_v46 = vpop.f32.mrb[33].mxu1  ;;  %1153 = vmax.xlane.f32.xlu1 %v1152_v32  ;;  %1150 = vmax.xlane.f32.xlu0 %v1149_v40  ;;  %v7706_v49 = vadd.f32 %v5896_v22, %v380_v42 }
 0x53d   : > { %v7704_v48 = vadd.f32 %v1047_v46, %v379_v31  ;;  %v386_v31 = vld [vmem:[#allocation2 + $0xa10] sm:$0xff] }
 0x53e   : > { %v1161_v8 = vsel %vm225_vm0, %v7706_v49, -inf }
 0x53f   : > { %v5899_v50 = vpop.f32.mrb[34].mxu1  ;;  %v1158_v56 = vsel %vm225_vm0, %v7704_v48, -inf }
 0x540   : > { %v1057_v60 = vpop.f32.mrb[35].mxu1  ;;  %1159 = vmax.xlane.f32.xlu1 %v1158_v56  ;;  %1156 = vmax.xlane.f32.xlu0 %v1155_v57  ;;  %v7714_v29 = vadd.f32 %v5899_v50, %v382_v58 }
 0x541   : > { %v7712_v63 = vadd.f32 %v1057_v60, %v381_v13 }
 0x542   : > { %v1167_v26 = vsel %vm225_vm0, %v7714_v29, -inf }
 0x543   : > { %v5902_v5 = vpop.f32.mrb[36].mxu1  ;;  %v1164_v38 = vsel %vm225_vm0, %v7712_v63, -inf }
 0x544   : > { %v1067_v47 = vpop.f32.mrb[37].mxu1  ;;  %1165 = vmax.xlane.f32.xlu1 %v1164_v38  ;;  %1162 = vmax.xlane.f32.xlu0 %v1161_v8  ;;  %v7722_v23 = vadd.f32 %v5902_v5, %v384_v9 }
 0x545   : > { %v7720_v14 = vadd.f32 %v1067_v47, %v383_v1 }
 0x546   : > { %v1173_v46 = vsel %vm225_vm0, %v7722_v23, -inf }
 0x547   : > { %v5905_v7 = vpop.f32.mrb[38].mxu1  ;;  %v1170_v17 = vsel %vm225_vm0, %v7720_v14, -inf }
 0x548   : > { %v1077_v22 = vpop.f32.mrb[39].mxu1  ;;  %1171 = vmax.xlane.f32.xlu1 %v1170_v17  ;;  %1168 = vmax.xlane.f32.xlu0 %v1167_v26  ;;  %v7730_v40 = vadd.f32 %v5905_v7, %v386_v31 }
 0x549   : > { %v7728_v32 = vadd.f32 %v1077_v22, %v385_v20 }
 0x54a   : > { %v1179_v13 = vsel %vm225_vm0, %v7730_v40, -inf }
 0x54b   : > { %v1176_v42 = vsel %vm225_vm0, %v7728_v32, -inf }
 0x54c   : > { %1177 = vmax.xlane.f32.xlu1 %v1176_v42  ;;  %1174 = vmax.xlane.f32.xlu0 %v1173_v46 }
 0x550   : > { %1180 = vmax.xlane.f32.xlu0 %v1179_v13 }
 0x59c   : > { %v1091_v50 = vpop.xlane.xlu1 %1090 }
 0x59d   : > { %v1183_v56 = vsub.f32 %v7610_v34, %v1091_v50  ;;  %v1088_v57 = vpop.xlane.xlu0 %1087 }
 0x59e   : > { %v1182_v58 = vsub.f32 %v7612_v36, %v1088_v57 }
 0x59f   : > { %v1216_v60 = vmul.f32 1.442695, %v1183_v56 }
 0x5a0   : > { %v1214_v1 = vmul.f32 1.442695, %v1182_v58 }
 0x5a1   : > { %6762 = vpow2.f32 %v1216_v60  ;;  %v1097_v5 = vpop.xlane.xlu0 %1096 }
 0x5a2   : > { %6764 = vpow2.f32 %v1214_v1  ;;  %v1185_v38 = vsub.f32 %v7618_v30, %v1097_v5 }
 0x5a4   : > { %v1220_v8 = vmul.f32 1.442695, %v1185_v38 }
 0x5a5   : > { %v1100_v9 = vpop.xlane.xlu1 %1099  ;;  %v1094_v47 = vpop.xlane.xlu0 %1093 }
 0x5a6   : > { %6766 = vpow2.f32 %v1220_v8  ;;  %v1186_v20 = vsub.f32 %v7624_v51, %v1100_v9  ;;  %v1184_v7 = vsub.f32 %v7622_v12, %v1094_v47 }
 0x5a8   : > { %v1218_v17 = vmul.f32 1.442695, %v1184_v7  ;;  %v1222_v34 = vmul.f32 1.442695, %v1186_v20 }
 0x5a9   : > { %v1106_v26 = vpop.xlane.xlu1 %1105  ;;  %v1103_v31 = vpop.xlane.xlu0 %1102 }
 0x5aa   : > { %v1187_v36 = vsub.f32 %v7626_v55, %v1103_v31  ;;  %6768 = vpow2.f32 %v1218_v17  ;;  %v1188_v51 = vsub.f32 %v7632_v62, %v1106_v26 }
 0x5ab   : > { %v7744_v22 = vpop.eup %6762  ;;  %6770 = vpow2.f32 %v1222_v34 }
 0x5ac   : > { %v7746_v42 = vpop.eup %6764  ;;  %v1224_v30 = vmul.f32 1.442695, %v1187_v36  ;;  %v1281_v46 = vsel %vm225_vm0, %v7744_v22, 0.0  ;;  %v1226_v1 = vmul.f32 1.442695, %v1188_v51 }
 0x5ad   : > { %v1112_v13 = vpop.xlane.xlu1 %1111  ;;  %1282 = vadd.xlane.f32.xlu0 %v1281_v46  ;;  %v1109_v12 = vpop.xlane.xlu0 %1108  ;;  %v1278_v50 = vsel %vm225_vm0, %v7746_v42, 0.0 }
 0x5ae   : > { %v1190_v55 = vsub.f32 %v7640_v37, %v1112_v13  ;;  %v1189_v56 = vsub.f32 %v7634_v0, %v1109_v12  ;;  %1279 = vadd.xlane.f32.xlu1 %v1278_v50  ;;  %6772 = vpow2.f32 %v1224_v30 }
 0x5b0   : > { %v7755_v57 = vpop.eup %6766  ;;  %v1230_v58 = vmul.f32 1.442695, %v1190_v55  ;;  %v1228_v60 = vmul.f32 1.442695, %v1189_v56 }
 0x5b1   : > { %v1115_v5 = vpop.xlane.xlu0 %1114  ;;  %v1287_v62 = vsel %vm225_vm0, %v7755_v57, 0.0  ;;  %v1118_v38 = vpop.xlane.xlu1 %1117 }
 0x5b2   : > { %6774 = vpow2.f32 %v1230_v58  ;;  %v1191_v8 = vsub.f32 %v7642_v6, %v1115_v5  ;;  %1288 = vadd.xlane.f32.xlu0 %v1287_v62  ;;  %v1192_v6 = vsub.f32 %v7648_v16, %v1118_v38 }
 0x5b3   : > { %6776 = vpow2.f32 %v1228_v60 }
 0x5b4   : > { %v7760_v37 = vpop.eup %6768  ;;  %6778 = vpow2.f32 %v1226_v1  ;;  %v1232_v0 = vmul.f32 1.442695, %v1191_v8  ;;  %v1234_v51 = vmul.f32 1.442695, %v1192_v6 }
 0x5b5   : > { %v1121_v9 = vpop.xlane.xlu0 %1120  ;;  %v1284_v20 = vsel %vm225_vm0, %v7760_v37, 0.0  ;;  %v7765_v7 = vpop.eup %6770 }
 0x5b6   : > { %v1193_v47 = vsub.f32 %v7650_v10, %v1121_v9  ;;  %1285 = vadd.xlane.f32.xlu1 %v1284_v20  ;;  %v1124_v17 = vpop.xlane.xlu1 %1123  ;;  %6780 = vpow2.f32 %v1232_v0  ;;  %v1290_v36 = vsel %vm225_vm0, %v7765_v7, 0.0 }
 0x5b7   : > { %v1194_v13 = vsub.f32 %v7656_v27, %v1124_v17 }
 0x5b8   : > { %v7767_v34 = vpop.eup %6772  ;;  %v1236_v26 = vmul.f32 1.442695, %v1193_v47 }
 0x5b9   : > { %v7770_v31 = vpop.xlane.xlu0 %1126  ;;  %v1293_v10 = vsel %vm225_vm0, %v7767_v34, 0.0  ;;  %v1238_v58 = vmul.f32 1.442695, %v1194_v13 }
 0x5ba   : > { %1291 = vadd.xlane.f32.xlu1 %v1290_v36  ;;  %1294 = vadd.xlane.f32.xlu0 %v1293_v10  ;;  %6782 = vpow2.f32 %v1236_v26  ;;  %v1130_v12 = vpop.xlane.xlu1 %1129 }
 0x5bb   : > { %6784 = vpow2.f32 %v1234_v51  ;;  %v1196_v62 = vsub.f32 %v7664_v41, %v1130_v12 }
 0x5bc   : > { %v7776_v30 = vpop.eup %6774  ;;  %6786 = vpow2.f32 %v1238_v58 }
 0x5bd   : > { %v7778_v46 = vpop.eup %6776  ;;  %v1302_v16 = vsel %vm225_vm0, %v7776_v30, 0.0  ;;  %v1133_v50 = vpop.xlane.xlu0 %1132  ;;  %v1242_v47 = vmul.f32 1.442695, %v1196_v62 }
 0x5be   : > { %v1299_v55 = vsel %vm225_vm0, %v7778_v46, 0.0  ;;  %v7785_v56 = vpop.eup %6778  ;;  %1303 = vadd.xlane.f32.xlu1 %v1302_v16  ;;  %v1197_v60 = vsub.f32 %v7666_v44, %v1133_v50  ;;  %v1136_v5 = vpop.xlane.xlu1 %1135 }
 0x5bf   : > { %1300 = vadd.xlane.f32.xlu0 %v1299_v55  ;;  %v1296_v27 = vsel %vm225_vm0, %v7785_v56, 0.0  ;;  %v1198_v41 = vsub.f32 %v7672_v53, %v1136_v5 }
 0x5c0   : > { %v7790_v1 = vpop.eup %6780  ;;  %v1244_v38 = vmul.f32 1.442695, %v1197_v60 }
 0x5c1   : > { %v1139_v8 = vpop.xlane.xlu0 %1138  ;;  %v1305_v0 = vsel %vm225_vm0, %v7790_v1, 0.0 }
 0x5c2   : > { %6788 = vpow2.f32 %v1244_v38  ;;  %v1199_v44 = vsub.f32 %v7674_v19, %v1139_v8  ;;  %v1142_v20 = vpop.xlane.xlu1 %1141  ;;  %v1246_v19 = vmul.f32 1.442695, %v1198_v41 }
 0x5c3   : > { %1297 = vadd.xlane.f32.xlu0 %v1296_v27  ;;  %6790 = vpow2.f32 %v1242_v47  ;;  %v1200_v55 = vsub.f32 %v7680_v28, %v1142_v20  ;;  %v1195_v20 = vsub.f32 %v7658_v24, %v7770_v31 }
 0x5c4   : > { %v7795_v9 = vpop.eup %6782  ;;  %v1248_v36 = vmul.f32 1.442695, %v1199_v44 }
 0x5c5   : > { %v1311_v17 = vsel %vm225_vm0, %v7795_v9, 0.0  ;;  %v7800_v6 = vpop.eup %6784  ;;  %v1145_v26 = vpop.xlane.xlu0 %1144 }
 0x5c6   : > { %v1308_v10 = vsel %vm225_vm0, %v7800_v6, 0.0  ;;  %v7805_v51 = vpop.eup %6786  ;;  %v1148_v13 = vpop.xlane.xlu1 %1147  ;;  %6792 = vpow2.f32 %v1248_v36  ;;  %v1201_v16 = vsub.f32 %v7682_v2, %v1145_v26  ;;  %v1250_v2 = vmul.f32 1.442695, %v1200_v55 }
 0x5c7   : > { %1306 = vadd.xlane.f32.xlu0 %v1305_v0  ;;  %v1314_v50 = vsel %vm225_vm0, %v7805_v51, 0.0  ;;  %6794 = vpow2.f32 %v1246_v19  ;;  %v1202_v0 = vsub.f32 %v7688_v11, %v1148_v13  ;;  %v1240_v36 = vmul.f32 1.442695, %v1195_v20 }
 0x5c8   : > { %v1252_v58 = vmul.f32 1.442695, %v1201_v16 }
 0x5c9   : > { %v1151_v12 = vpop.xlane.xlu0 %1150 }
 0x5ca   : > { %v1154_v60 = vpop.xlane.xlu1 %1153  ;;  %6796 = vpow2.f32 %v1252_v58  ;;  %v1203_v62 = vsub.f32 %v7690_v18, %v1151_v12  ;;  %v1254_v18 = vmul.f32 1.442695, %v1202_v0 }
 0x5cb   : > { %1312 = vadd.xlane.f32.xlu0 %v1311_v17  ;;  %6798 = vpow2.f32 %v1250_v2  ;;  %v1204_v41 = vsub.f32 %v7696_v15, %v1154_v60 }
 0x5cc   : > { %v7812_v53 = vpop.eup %6788  ;;  %v1256_v47 = vmul.f32 1.442695, %v1203_v62 }
 0x5cd   : > { %v1323_v27 = vsel %vm225_vm0, %v7812_v53, 0.0  ;;  %v1157_v5 = vpop.xlane.xlu0 %1156  ;;  %v1258_v31 = vmul.f32 1.442695, %v1204_v41 }
 0x5ce   : > { %v1160_v28 = vpop.xlane.xlu1 %1159  ;;  %6800 = vpow2.f32 %v1256_v47 }
 0x5cf   : > { %1309 = vadd.xlane.f32.xlu0 %v1308_v10  ;;  %6702 = vrot.lane.b32.xlu1 %v7520_v33, %s7310_s5  ;;  %v7817_v33 = vpop.eup %6790  ;;  %v1205_v10 = vsub.f32 %v7698_v35, %v1157_v5  ;;  %6802 = vpow2.f32 %v1254_v18  ;;  %v1206_v16 = vsub.f32 %v7704_v48, %v1160_v28 }
 0x5d0   : > { %v1320_v38 = vsel %vm225_vm0, %v7817_v33, 0.0  ;;  %v7822_v8 = vpop.eup %6792  ;;  %6804 = vpow2.f32 %v1240_v36 }
 0x5d1   : > { %v1163_v44 = vpop.xlane.xlu0 %1162  ;;  %v1329_v17 = vsel %vm225_vm0, %v7822_v8, 0.0  ;;  %v7829_v26 = vpop.eup %6794  ;;  %v1260_v12 = vmul.f32 1.442695, %v1205_v10  ;;  %6806 = vpow2.f32 %v1258_v31  ;;  %v1262_v58 = vmul.f32 1.442695, %v1206_v16 }
 0x5d2   : > { %v1166_v19 = vpop.xlane.xlu1 %1165  ;;  %v1326_v11 = vsel %vm225_vm0, %v7829_v26, 0.0  ;;  %v1207_v15 = vsub.f32 %v7706_v49, %v1163_v44 }
 0x5d3   : > { %1315 = vadd.xlane.f32.xlu0 %v1314_v50  ;;  %v1208_v60 = vsub.f32 %v7712_v63, %v1166_v19  ;;  %6808 = vpow2.f32 %v1260_v12 }
 0x5d4   : > { %v7835_v13 = vpop.eup %6796  ;;  %v1264_v5 = vmul.f32 1.442695, %v1207_v15  ;;  %6810 = vpow2.f32 %v1262_v58 }
 0x5d5   : > { %v1169_v24 = vpop.xlane.xlu0 %1168  ;;  %v1335_v50 = vsel %vm225_vm0, %v7835_v13, 0.0  ;;  %v7841_v35 = vpop.eup %6798  ;;  %v1266_v62 = vmul.f32 1.442695, %v1208_v60 }
 0x5d6   : > { %v1172_v55 = vpop.xlane.xlu1 %1171  ;;  %v1209_v48 = vsub.f32 %v7714_v29, %v1169_v24  ;;  %v1332_v2 = vsel %vm225_vm0, %v7841_v35, 0.0  ;;  %6812 = vpow2.f32 %v1264_v5 }
 0x5d7   : > { %1324 = vadd.xlane.f32.xlu0 %v1323_v27  ;;  %6814 = vpow2.f32 %v1266_v62 }
 0x5d8   : > { %v7847_v49 = vpop.eup %6800  ;;  %v1268_v28 = vmul.f32 1.442695, %v1209_v48 }
 0x5d9   : > { %v1175_v27 = vpop.xlane.xlu0 %1174  ;;  %v1341_v47 = vsel %vm225_vm0, %v7847_v49, 0.0  ;;  %v7853_v44 = vpop.eup %6802 }
 0x5da   : > { %v1178_v0 = vpop.xlane.xlu1 %1177  ;;  %v1211_v63 = vsub.f32 %v7722_v23, %v1175_v27  ;;  %v7855_v20 = vpop.eup %6804  ;;  %6816 = vpow2.f32 %v1268_v28  ;;  %v1338_v23 = vsel %vm225_vm0, %v7853_v44, 0.0 }
 0x5db   : > { %1321 = vadd.xlane.f32.xlu0 %v1320_v38  ;;  %v1210_v38 = vsub.f32 %v7720_v14, %v1172_v55  ;;  %v1212_v18 = vsub.f32 %v7728_v32, %v1178_v0  ;;  %v7861_v36 = vpop.eup %6806  ;;  %v1317_v10 = vsel %vm225_vm0, %v7855_v20, 0.0 }
 0x5dc   : > { %v1272_v14 = vmul.f32 1.442695, %v1211_v63  ;;  %v1344_v24 = vsel %vm225_vm0, %v7861_v36, 0.0 }
 0x5dd   : > { %v1181_v29 = vpop.xlane.xlu0 %1180  ;;  %v7865_v19 = vpop.eup %6808 }
 0x5de   : > { %v1213_v41 = vsub.f32 %v7730_v40, %v1181_v29  ;;  %v7869_v40 = vpop.eup %6810  ;;  %v1347_v31 = vsel %vm225_vm0, %v7865_v19, 0.0 }
 0x5df   : > { %1330 = vadd.xlane.f32.xlu0 %v1329_v17  ;;  %v1270_v17 = vmul.f32 1.442695, %v1210_v38  ;;  %v1350_v12 = vsel %vm225_vm0, %v7869_v40, 0.0 }
 0x5e0   : > { %v1276_v32 = vmul.f32 1.442695, %v1213_v41  ;;  %v7873_v16 = vpop.eup %6812 }
 0x5e1   : > { %6818 = vpow2.f32 %v1270_v17  ;;  %v7877_v15 = vpop.eup %6814 }
 0x5e2   : > { %6820 = vpow2.f32 %v1272_v14  ;;  %v1356_v58 = vsel %vm225_vm0, %v7877_v15, 0.0 }
 0x5e3   : > { %1327 = vadd.xlane.f32.xlu0 %v1326_v11  ;;  %v1274_v11 = vmul.f32 1.442695, %v1212_v18 }
 0x5e4   : > { %v7881_v55 = vpop.eup %6816 }
 0x5e5   : > { %6822 = vpow2.f32 %v1274_v11  ;;  %v1359_v27 = vsel %vm225_vm0, %v7881_v55, 0.0 }
 0x5e6   : > { %6824 = vpow2.f32 %v1276_v32 }
 0x5e7   : > { %1336 = vadd.xlane.f32.xlu0 %v1335_v50  ;;  %v1353_v50 = vsel %vm225_vm0, %v7873_v16, 0.0 }
 0x5eb   : > { %1333 = vadd.xlane.f32.xlu0 %v1332_v2  ;;  %v7885_v60 = vpop.eup %6818 }
 0x5ec   : > { %v7889_v5 = vpop.eup %6820  ;;  %v1362_v48 = vsel %vm225_vm0, %v7885_v60, 0.0 }
 0x5ed   : > { %v1365_v62 = vsel %vm225_vm0, %v7889_v5, 0.0 }
 0x5ef   : > { %1342 = vadd.xlane.f32.xlu0 %v1341_v47  ;;  %v7893_v2 = vpop.eup %6822 }
 0x5f0   : > { %v7897_v38 = vpop.eup %6824  ;;  %v1368_v28 = vsel %vm225_vm0, %v7893_v2, 0.0 }
 0x5f1   : > { %v1371_v0 = vsel %vm225_vm0, %v7897_v38, 0.0 }
 0x5f3   : > { %1339 = vadd.xlane.f32.xlu0 %v1338_v23  ;;  %1318 = vadd.xlane.f32.xlu1 %v1317_v10 }
 0x5f7   : > { %1345 = vadd.xlane.f32.xlu0 %v1344_v24  ;;  %1348 = vadd.xlane.f32.xlu1 %v1347_v31 }
 0x5fb   : > { %1351 = vadd.xlane.f32.xlu0 %v1350_v12  ;;  %1354 = vadd.xlane.f32.xlu1 %v1353_v50 }
 0x5ff   : > { %1357 = vadd.xlane.f32.xlu0 %v1356_v58  ;;  %1360 = vadd.xlane.f32.xlu1 %v1359_v27 }
 0x603   : > { %1363 = vadd.xlane.f32.xlu0 %v1362_v48  ;;  %1366 = vadd.xlane.f32.xlu1 %v1365_v62 }
 0x607   : > { %1369 = vadd.xlane.f32.xlu0 %v1368_v28  ;;  %1372 = vadd.xlane.f32.xlu1 %v1371_v0 }
 0x63a   : > { %v1283_v47 = vpop.xlane.xlu0 %1282 }
 0x63b   : > { %v1280_v63 = vpop.xlane.xlu1 %1279 }
 0x63c   : > { %6826 = vrcp.f32 %v1280_v63 }
 0x63d   : > { %6828 = vrcp.f32 %v1283_v47 }
 0x63f   : > { %v1289_v29 = vpop.xlane.xlu0 %1288 }
 0x643   : > { %v1286_v17 = vpop.xlane.xlu1 %1285 }
 0x644   : > { %6830 = vrcp.f32 %v1286_v17 }
 0x645   : > { %6832 = vrcp.f32 %v1289_v29 }
 0x646   : > { %v6827_v18 = vpop.eup %6826 }
 0x647   : > { %v1406_v14 = vmul.f32 %v6827_v18, %v7746_v42  ;;  %v1292_v41 = vpop.xlane.xlu1 %1291  ;;  %v1295_v23 = vpop.xlane.xlu0 %1294 }
 0x648   : > { %6834 = vrcp.f32 %v1292_v41  ;;  %v6829_v58 = vpop.eup %6828 }
 0x649   : > { %5922 = vmatprep.mubr.msk.f32.mxu0 %vm225_vm0, %v1406_v14  ;;  %6836 = vrcp.f32 %v1295_v23  ;;  %v1407_v48 = vmul.f32 %v6829_v58, %v7744_v22 }
 0x64b   : > { %v1304_v10 = vpop.xlane.xlu1 %1303 }
 0x64c   : > { %v1301_v11 = vpop.xlane.xlu0 %1300 }
 0x64e   : > { %v6831_v42 = vpop.eup %6830 }
 0x64f   : > { %v6703_v32 = vpop.permute.xlu1 %6702  ;;  %v6833_v62 = vpop.eup %6832  ;;  %v1408_v0 = vmul.f32 %v6831_v42, %v7760_v37 }
 0x650   : > { %v1298_v24 = vpop.xlane.xlu0 %1297  ;;  %v6705_v31 = vunpack.i.h.bf16 %v6703_v32  ;;  %v6704_v12 = vunpack.i.l.bf16 %v6703_v32  ;;  %v1409_v47 = vmul.f32 %v6833_v62, %v7755_v57 }
 0x651   : > { %6838 = vrcp.f32 %v1298_v24 }
 0x652   : > { %v6365_v50 = vpack.c.bf16 %v6705_v31, %v6704_v12  ;;  %6840 = vrcp.f32 %v1301_v11  ;;  %v6835_v63 = vpop.eup %6834 }
 0x653   : > { %6842 = vrcp.f32 %v1304_v10  ;;  %v6837_v29 = vpop.eup %6836  ;;  %v1410_v18 = vmul.f32 %v6835_v63, %v7765_v7 }
 0x654   : > { %v1307_v27 = vpop.xlane.xlu0 %1306  ;;  %6366 = vmatprep.subr.bf16.mxu0 %v6365_v50  ;;  %v1411_v22 = vmul.f32 %v6837_v29, %v7767_v34 }
 0x655   : > { %6368 = vmatpush3.bf16.msra.mxu0 %v6365_v50  ;;  %6844 = vrcp.f32 %v1307_v27 }
 0x658   : > { %v1313_v28 = vpop.xlane.xlu0 %1312  ;;  %5923 = vmatmul.mubr.msk.f32.vlgmr.msra.gmra.mrb[8].mxu0 %vm225_vm0, %v1407_v48 }
 0x659   : > { %5925 = vmatprep.mubr.msk.f32.mxu0 %vm225_vm0, %v1408_v0 }
 0x65b   : > { %v6839_v14 = vpop.eup %6838 }
 0x65c   : > { %v1310_v17 = vpop.xlane.xlu0 %1309  ;;  %5926 = vmatmul.mubr.msk.f32.gmra.mrb[10].mxu0 %vm225_vm0, %v1409_v47  ;;  %v6841_v37 = vpop.eup %6840  ;;  %v1412_v23 = vmul.f32 %v6839_v14, %v7785_v56 }
 0x65d   : > { %6846 = vrcp.f32 %v1310_v17  ;;  %5928 = vmatprep.mubr.msk.f32.mxu0 %vm225_vm0, %v1410_v18  ;;  %v6843_v10 = vpop.eup %6842  ;;  %v1413_v57 = vmul.f32 %v6841_v37, %v7778_v46 }
 0x65e   : > { %6848 = vrcp.f32 %v1313_v28  ;;  %v1414_v32 = vmul.f32 %v6843_v10, %v7776_v30 }
 0x65f   : > { %v6845_v7 = vpop.eup %6844 }
 0x660   : > { %v1316_v41 = vpop.xlane.xlu0 %1315  ;;  %5929 = vmatmul.mubr.msk.f32.gmra.mrb[12].mxu0 %vm225_vm0, %v1411_v22  ;;  %v1415_v24 = vmul.f32 %v6845_v7, %v7790_v1 }
 0x661   : > { %6850 = vrcp.f32 %v1316_v41  ;;  %5931 = vmatprep.mubr.msk.f32.mxu0 %vm225_vm0, %v1412_v23 }
 0x664   : > { %v1325_v11 = vpop.xlane.xlu0 %1324  ;;  %5932 = vmatmul.mubr.msk.f32.gmra.mrb[14].mxu0 %vm225_vm0, %v1413_v57 }
 0x665   : > { %5934 = vmatprep.mubr.msk.f32.mxu0 %vm225_vm0, %v1414_v32 }
 0x667   : > { %v6847_v34 = vpop.eup %6846 }
 0x668   : > { %v6849_v56 = vpop.eup %6848  ;;  %v1322_v31 = vpop.xlane.xlu0 %1321  ;;  %v1416_v12 = vmul.f32 %v6847_v34, %v7800_v6  ;;  %5935 = vmatmul.mubr.msk.f32.gmra.mrb[16].mxu0 %vm225_vm0, %v1415_v24 }
 0x669   : > { %v1417_v50 = vmul.f32 %v6849_v56, %v7795_v9  ;;  %6852 = vrcp.f32 %v1322_v31 }
 0x66a   : > { %5937 = vmatprep.mubr.msk.f32.mxu0 %vm225_vm0, %v1416_v12 }
 0x66b   : > { %v6851_v46 = vpop.eup %6850 }
 0x66c   : > { %v1331_v58 = vpop.xlane.xlu0 %1330  ;;  %v1418_v30 = vmul.f32 %v6851_v46, %v7805_v51  ;;  %5938 = vmatmul.mubr.msk.f32.gmra.mrb[18].mxu0 %vm225_vm0, %v1417_v50 }
 0x66e   : > { %5940 = vmatprep.mubr.msk.f32.mxu0 %vm225_vm0, %v1418_v30 }
 0x670   : > { %v1328_v27 = vpop.xlane.xlu0 %1327 }
 0x673   : > { %v6853_v0 = vpop.eup %6852 }
 0x674   : > { %v1337_v1 = vpop.xlane.xlu0 %1336  ;;  %v1420_v17 = vmul.f32 %v6853_v0, %v7817_v33  ;;  %v7120_v0 = vld [vmem:[#allocation2 + $0xa30] sm:$0xff] }
 0x678   : > { %v1334_v42 = vpop.xlane.xlu0 %1333 }
 0x67c   : > { %v1343_v48 = vpop.xlane.xlu0 %1342 }
 0x680   : > { %v1340_v62 = vpop.xlane.xlu0 %1339  ;;  %v1319_v6 = vpop.xlane.xlu1 %1318 }
 0x681   : > { %6854 = vrcp.f32 %v1319_v6 }
 0x682   : > { %6856 = vrcp.f32 %v1325_v11 }
 0x683   : > { %6858 = vrcp.f32 %v1328_v27 }
 0x684   : > { %v1346_v28 = vpop.xlane.xlu0 %1345  ;;  %6860 = vrcp.f32 %v1331_v58  ;;  %v1349_v9 = vpop.xlane.xlu1 %1348 }
 0x685   : > { %6862 = vrcp.f32 %v1334_v42 }
 0x686   : > { %6864 = vrcp.f32 %v1337_v1 }
 0x687   : > { %6866 = vrcp.f32 %v1340_v62 }
 0x688   : > { %v1352_v63 = vpop.xlane.xlu0 %1351  ;;  %v1355_v14 = vpop.xlane.xlu1 %1354  ;;  %6868 = vrcp.f32 %v1343_v48 }
 0x689   : > { %6870 = vrcp.f32 %v1346_v28  ;;  %v1920_v28 = vld [vmem:[#allocation2 + $0x170] sm:$0xff] }
 0x68a   : > { %6872 = vrcp.f32 %v1349_v9  ;;  %v1921_v9 = vld [vmem:[#allocation2 + $0x180] sm:$0xff] }
 0x68b   : > { %v6855_v51 = vpop.eup %6854  ;;  %6874 = vrcp.f32 %v1352_v63  ;;  %v6401_v63 = vpack.c.bf16 %v1921_v9, %v1920_v28 }
 0x68c   : > { %v1419_v47 = vmul.f32 %v6855_v51, %v7855_v20  ;;  %v6857_v29 = vpop.eup %6856  ;;  %v1358_v41 = vpop.xlane.xlu0 %1357  ;;  %6876 = vrcp.f32 %v1355_v14 }
 0x68d   : > { %v6859_v18 = vpop.eup %6858  ;;  %v1421_v22 = vmul.f32 %v6857_v29, %v7812_v53  ;;  %v1361_v33 = vpop.xlane.xlu1 %1360  ;;  %6878 = vrcp.f32 %v1358_v41  ;;  %6402 = vmatprep.subr.bf16.mxu1 %v6401_v63 }
 0x68e   : > { %5941 = vmatmul.mubr.msk.f32.gmra.mrb[20].mxu0 %vm225_vm0, %v1419_v47  ;;  %v6861_v37 = vpop.eup %6860  ;;  %v1422_v23 = vmul.f32 %v6859_v18, %v7829_v26  ;;  %6880 = vrcp.f32 %v1361_v33  ;;  %v7121_v47 = vld [vmem:[#allocation2 + $0xa20] sm:$0xff]  ;;  %6404 = vmatpush3.bf16.msra.mxu1 %v6401_v63 }
 0x68f   : > { %5943 = vmatprep.mubr.msk.f32.mxu0 %vm225_vm0, %v1420_v17  ;;  %v6863_v10 = vpop.eup %6862  ;;  %v1423_v20 = vmul.f32 %v6861_v37, %v7822_v8  ;;  %v7122_v17 = vld [vmem:[#allocation2 + $0xa50] sm:$0xff] }
 0x690   : > { %v6865_v57 = vpop.eup %6864  ;;  %v1424_v7 = vmul.f32 %v6863_v10, %v7841_v35  ;;  %v1364_v53 = vpop.xlane.xlu0 %1363  ;;  %v7124_v10 = vld [vmem:[#allocation2 + $0xa70] sm:$0xff] }
 0x691   : > { %v6867_v11 = vpop.eup %6866  ;;  %v1425_v26 = vmul.f32 %v6865_v57, %v7835_v13  ;;  %v1367_v56 = vpop.xlane.xlu1 %1366  ;;  %6882 = vrcp.f32 %v1364_v53  ;;  %v7125_v57 = vld [vmem:[#allocation2 + $0xa60] sm:$0xff] }
 0x692   : > { %5944 = vmatmul.mubr.msk.f32.gmra.mrb[22].mxu0 %vm225_vm0, %v1421_v22  ;;  %v6869_v32 = vpop.eup %6868  ;;  %v1426_v34 = vmul.f32 %v6867_v11, %v7853_v44  ;;  %6884 = vrcp.f32 %v1367_v56  ;;  %v7123_v22 = vld [vmem:[#allocation2 + $0xa40] sm:$0xff] }
 0x693   : > { %5946 = vmatprep.mubr.msk.f32.mxu0 %vm225_vm0, %v1422_v23  ;;  %v6871_v24 = vpop.eup %6870  ;;  %v1427_v8 = vmul.f32 %v6869_v32, %v7847_v49 }
 0x694   : > { %v6873_v35 = vpop.eup %6872  ;;  %v1370_v31 = vpop.xlane.xlu0 %1369  ;;  %v1428_v12 = vmul.f32 %v6871_v24, %v7861_v36  ;;  %v7127_v24 = vld [vmem:[#allocation2 + $0xa80] sm:$0xff] }
 0x695   : > { %v6875_v46 = vpop.eup %6874  ;;  %6886 = vrcp.f32 %v1370_v31  ;;  %v1373_v13 = vpop.xlane.xlu1 %1372  ;;  %v1429_v44 = vmul.f32 %v6873_v35, %v7865_v19  ;;  %v7128_v31 = vld [vmem:[#allocation2 + $0xab0] sm:$0xff] }
 0x696   : > { %5947 = vmatmul.mubr.msk.f32.gmra.mrb[24].mxu0 %vm225_vm0, %v1423_v20  ;;  %v6877_v50 = vpop.eup %6876  ;;  %v1430_v58 = vmul.f32 %v6875_v46, %v7869_v40  ;;  %6888 = vrcp.f32 %v1373_v13  ;;  %v7129_v13 = vld [vmem:[#allocation2 + $0xaa0] sm:$0xff] }
 0x697   : > { %5949 = vmatprep.mubr.msk.f32.mxu0 %vm225_vm0, %v1424_v7  ;;  %v6879_v30 = vpop.eup %6878  ;;  %v1431_v49 = vmul.f32 %v6877_v50, %v7873_v16 }
 0x698   : > { %v6881_v36 = vpop.eup %6880  ;;  %v1432_v27 = vmul.f32 %v6879_v30, %v7877_v15  ;;  %v7130_v30 = vld [vmem:[#allocation2 + $0xad0] sm:$0xff] }
 0x699   : > { %v1433_v19 = vmul.f32 %v6881_v36, %v7881_v55  ;;  %v420_v55 = vld [vmem:[#allocation2 + $0xc28] sm:$0xff] }
 0x69a   : > { %5950 = vmatmul.mubr.msk.f32.gmra.mrb[26].mxu0 %vm225_vm0, %v1425_v26  ;;  %v7126_v26 = vld [vmem:[#allocation2 + $0xa90] sm:$0xff] }
 0x69b   : > { %5952 = vmatprep.mubr.msk.f32.mxu0 %vm225_vm0, %v1426_v34  ;;  %v6883_v1 = vpop.eup %6882 }
 0x69c   : > { %v6885_v42 = vpop.eup %6884  ;;  %v1434_v40 = vmul.f32 %v6883_v1, %v7885_v60 }
 0x69d   : > { %v1435_v16 = vmul.f32 %v6885_v42, %v7889_v5 }
 0x69e   : > { %5953 = vmatmul.mubr.msk.f32.gmra.mrb[28].mxu0 %vm225_vm0, %v1427_v8 }
 0x69f   : > { %5955 = vmatprep.mubr.msk.f32.mxu0 %vm225_vm0, %v1428_v12  ;;  %v6887_v48 = vpop.eup %6886 }
 0x6a0   : > { %v6889_v62 = vpop.eup %6888  ;;  %v1436_v15 = vmul.f32 %v6887_v48, %v7893_v2 }
 0x6a1   : > { %v1437_v6 = vmul.f32 %v6889_v62, %v7897_v38  ;;  %v7133_v62 = vld [vmem:[#allocation2 + $0xae0] sm:$0xff] }
 0x6a2   : > { %5956 = vmatmul.mubr.msk.f32.gmra.mrb[30].mxu0 %vm225_vm0, %v1429_v44 }
 0x6a3   : > { %5958 = vmatprep.mubr.msk.f32.mxu0 %vm225_vm0, %v1430_v58 }
 0x6a6   : > { %5959 = vmatmul.mubr.msk.f32.gmra.mrb[32].mxu0 %vm225_vm0, %v1431_v49 }
 0x6a7   : > { %5961 = vmatprep.mubr.msk.f32.mxu0 %vm225_vm0, %v1432_v27  ;;  %v7131_v27 = vld [vmem:[#allocation2 + $0xac0] sm:$0xff] }
 0x6aa   : > { %5962 = vmatmul.mubr.msk.f32.gmra.mrb[34].mxu0 %vm225_vm0, %v1433_v19 }
 0x6ab   : > { %5964 = vmatprep.mubr.msk.f32.mxu0 %vm225_vm0, %v1434_v40  ;;  %v7132_v40 = vld [vmem:[#allocation2 + $0xaf0] sm:$0xff] }
 0x6ae   : > { %5965 = vmatmul.mubr.msk.f32.gmra.mrb[36].mxu0 %vm225_vm0, %v1435_v16 }
 0x6af   : > { %5967 = vmatprep.mubr.msk.f32.mxu0 %vm225_vm0, %v1436_v15 }
 0x6b2   : > { %5968 = vmatmul.mubr.msk.f32.gmra.mrb[38].mxu0 %vm225_vm0, %v1437_v6 }
 0x6b3   : > { %1879 = vmatprep.mubr.f32.mxu0 %v420_v55 }
 0x72b   : > { %v5924_v60 = vpop.f32.mrb[8].mxu0 }
 0x72c   : > { %v7967_v51 = vmul.f32 %v7120_v0, %v5924_v60  ;;  %v1624_v5 = vpop.f32.mrb[9].mxu0  ;;  %v7134_v60 = vld [vmem:[#allocation2 + $0xb10] sm:$0xff]  ;;  %v7135_v0 = vld [vmem:[#allocation2 + $0xb00] sm:$0xff] }
 0x72d   : > { %v7969_v2 = vmul.f32 %v7121_v47, %v1624_v5 }
 0x72f   : > { %v6371_v29 = vpack.c.bf16 %v7967_v51, %v7969_v2  ;;  %v5927_v38 = vpop.f32.mrb[10].mxu0 }
 0x730   : > { %v7973_v18 = vmul.f32 %v7122_v17, %v5927_v38  ;;  %v1634_v14 = vpop.f32.mrb[11].mxu0  ;;  %v7136_v38 = vld [vmem:[#allocation2 + $0xb30] sm:$0xff] }
 0x731   : > { %v7975_v37 = vmul.f32 %v7123_v22, %v1634_v14  ;;  %v7137_v22 = vld [vmem:[#allocation2 + $0xb20] sm:$0xff] }
 0x733   : > { %v6375_v41 = vpack.c.bf16 %v7973_v18, %v7975_v37  ;;  %v5930_v23 = vpop.f32.mrb[12].mxu0 }
 0x734   : > { %v7979_v33 = vmul.f32 %v7124_v10, %v5930_v23  ;;  %v1644_v20 = vpop.f32.mrb[13].mxu0 }
 0x735   : > { %v7981_v7 = vmul.f32 %v7125_v57, %v1644_v20  ;;  %v7138_v57 = vld [vmem:[#allocation2 + $0xb50] sm:$0xff] }
 0x737   : > { %v6379_v11 = vpack.c.bf16 %v7979_v33, %v7981_v7  ;;  %v5933_v53 = vpop.f32.mrb[14].mxu0 }
 0x738   : > { %v7985_v32 = vmul.f32 %v7126_v26, %v5933_v53  ;;  %v1654_v34 = vpop.f32.mrb[15].mxu0 }
 0x739   : > { %v7987_v56 = vmul.f32 %v7127_v24, %v1654_v34  ;;  %v7139_v34 = vld [vmem:[#allocation2 + $0xb40] sm:$0xff] }
 0x73b   : > { %v6383_v8 = vpack.c.bf16 %v7985_v32, %v7987_v56  ;;  %v5936_v35 = vpop.f32.mrb[16].mxu0 }
 0x73c   : > { %v7991_v12 = vmul.f32 %v7128_v31, %v5936_v35  ;;  %v1664_v46 = vpop.f32.mrb[17].mxu0 }
 0x73d   : > { %v7993_v44 = vmul.f32 %v7129_v13, %v1664_v46  ;;  %v7140_v46 = vld [vmem:[#allocation2 + $0xb70] sm:$0xff] }
 0x73f   : > { %v6387_v50 = vpack.c.bf16 %v7991_v12, %v7993_v44  ;;  %v5939_v58 = vpop.f32.mrb[18].mxu0 }
 0x740   : > { %v7997_v49 = vmul.f32 %v7130_v30, %v5939_v58  ;;  %v1674_v36 = vpop.f32.mrb[19].mxu0  ;;  %v7141_v30 = vld [vmem:[#allocation2 + $0xb60] sm:$0xff] }
 0x741   : > { %v7999_v1 = vmul.f32 %v7131_v27, %v1674_v36 }
 0x743   : > { %v6391_v19 = vpack.c.bf16 %v7997_v49, %v7999_v1  ;;  %v422_v49 = vld [vmem:[#allocation2 + $0xc38] sm:$0xff]  ;;  %v421_v1 = vld [vmem:[#allocation2 + $0xc30] sm:$0xff] }
 0x761   : > { %v5942_v42 = vpop.f32.mrb[20].mxu0 }
 0x762   : > { %v8003_v48 = vmul.f32 %v7132_v40, %v5942_v42  ;;  %v1684_v16 = vpop.f32.mrb[21].mxu0  ;;  %v7142_v40 = vld [vmem:[#allocation2 + $0xb90] sm:$0xff] }
 0x763   : > { %v8005_v15 = vmul.f32 %v7133_v62, %v1684_v16 }
 0x765   : > { %v6395_v6 = vpack.c.bf16 %v8003_v48, %v8005_v15  ;;  %v5945_v55 = vpop.f32.mrb[22].mxu0  ;;  %v425_v48 = vld [vmem:[#allocation2 + $0xc50] sm:$0xff]  ;;  %v428_v15 = vld [vmem:[#allocation2 + $0xc68] sm:$0xff] }
 0x766   : > { %v8009_v28 = vmul.f32 %v7134_v60, %v5945_v55  ;;  %v1694_v9 = vpop.f32.mrb[23].mxu0  ;;  %v7143_v55 = vld [vmem:[#allocation2 + $0xb80] sm:$0xff]  ;;  %v7144_v60 = vld [vmem:[#allocation2 + $0xbb0] sm:$0xff] }
 0x767   : > { %v8011_v5 = vmul.f32 %v7135_v0, %v1694_v9 }
 0x769   : > { %v6399_v63 = vpack.c.bf16 %v8009_v28, %v8011_v5  ;;  %v5948_v47 = vpop.f32.mrb[24].mxu0  ;;  %v429_v28 = vld [vmem:[#allocation2 + $0xc70] sm:$0xff]  ;;  %v432_v5 = vld [vmem:[#allocation2 + $0xc88] sm:$0xff] }
 0x76a   : > { %v1800_v17 = vmul.f32 %v7136_v38, %v5948_v47  ;;  %v1704_v14 = vpop.f32.mrb[25].mxu0  ;;  %v7145_v47 = vld [vmem:[#allocation2 + $0xba0] sm:$0xff]  ;;  %v7146_v38 = vld [vmem:[#allocation2 + $0xbd0] sm:$0xff] }
 0x76b   : > { %v1799_v23 = vmul.f32 %v7137_v22, %v1704_v14  ;;  %v7147_v22 = vld [vmem:[#allocation2 + $0xbc0] sm:$0xff] }
 0x76d   : > { %v6369_v10 = vpack.c.bf16 %v1800_v17, %v1799_v23  ;;  %v5951_v20 = vpop.f32.mrb[26].mxu0  ;;  %v7148_v23 = vld [vmem:[#allocation2 + $0xbf0] sm:$0xff] }
 0x76e   : > { %v1802_v53 = vmul.f32 %v7138_v57, %v5951_v20  ;;  %v1714_v26 = vpop.f32.mrb[27].mxu0  ;;  %v7149_v57 = vld [vmem:[#allocation2 + $0xbe0] sm:$0xff] }
 0x76f   : > { %v1801_v24 = vmul.f32 %v7139_v34, %v1714_v26  ;;  %6370 = vmatprep.subr.bf16.mxu0 %v6369_v10 }
 0x770   : > { %6372 = vmatpush3.bf16.msra.mxu0 %v6371_v29 }
 0x771   : > { %v6373_v35 = vpack.c.bf16 %v1802_v53, %v1801_v24  ;;  %v5954_v31 = vpop.f32.mrb[28].mxu0  ;;  %v7150_v53 = vld [vmem:[#allocation2 + $0xc10] sm:$0xff]  ;;  %v7151_v24 = vld [vmem:[#allocation2 + $0xc00] sm:$0xff] }
 0x772   : > { %v1804_v13 = vmul.f32 %v7140_v46, %v5954_v31  ;;  %v1724_v58 = vpop.f32.mrb[29].mxu0  ;;  %v426_v31 = vld [vmem:[#allocation2 + $0xc58] sm:$0xff] }
 0x773   : > { %v1803_v36 = vmul.f32 %v7141_v30, %v1724_v58  ;;  %6374 = vmatprep.subr.bf16.mxu0 %v6373_v35  ;;  %v423_v35 = vld [vmem:[#allocation2 + $0xc40] sm:$0xff]  ;;  %v430_v46 = vld [vmem:[#allocation2 + $0xc78] sm:$0xff]  ;;  %v433_v58 = vld [vmem:[#allocation2 + $0xc90] sm:$0xff] }
 0x774   : > { %6376 = vmatpush3.bf16.msra.mxu0 %v6375_v41  ;;  %v1922_v30 = vld [vmem:[#allocation2 + $0x190] sm:$0xff] }
 0x775   : > { %v6377_v27 = vpack.c.bf16 %v1804_v13, %v1803_v36  ;;  %v5957_v42 = vpop.f32.mrb[30].mxu0  ;;  %v434_v13 = vld [vmem:[#allocation2 + $0xc98] sm:$0xff]  ;;  %v1923_v36 = vld [vmem:[#allocation2 + $0x1a0] sm:$0xff] }
 0x776   : > { %v1806_v16 = vmul.f32 %v7142_v40, %v5957_v42  ;;  %v1734_v62 = vpop.f32.mrb[31].mxu0 }
 0x777   : > { %v1805_v51 = vmul.f32 %v7143_v55, %v1734_v62  ;;  %6378 = vmatprep.subr.bf16.mxu0 %v6377_v27  ;;  %v6405_v27 = vpack.c.bf16 %v1923_v36, %v1922_v30 }
 0x778   : > { %6380 = vmatpush3.bf16.msra.mxu0 %v6379_v11 }
 0x779   : > { %v6381_v2 = vpack.c.bf16 %v1806_v16, %v1805_v51  ;;  %v5960_v29 = vpop.f32.mrb[32].mxu0  ;;  %6406 = vmatprep.subr.bf16.mxu1 %v6405_v27 }
 0x77a   : > { %v1808_v9 = vmul.f32 %v7144_v60, %v5960_v29  ;;  %v1744_v0 = vpop.f32.mrb[33].mxu0  ;;  %6408 = vmatpush3.bf16.msra.mxu1 %v6405_v27 }
 0x77b   : > { %v1807_v18 = vmul.f32 %v7145_v47, %v1744_v0  ;;  %6382 = vmatprep.subr.bf16.mxu0 %v6381_v2 }
 0x77c   : > { %6384 = vmatpush3.bf16.msra.mxu0 %v6383_v8 }
 0x77d   : > { %v6385_v37 = vpack.c.bf16 %v1808_v9, %v1807_v18  ;;  %v5963_v41 = vpop.f32.mrb[34].mxu0 }
 0x77e   : > { %v1810_v17 = vmul.f32 %v7146_v38, %v5963_v41  ;;  %v1754_v14 = vpop.f32.mrb[35].mxu0 }
 0x77f   : > { %v1809_v33 = vmul.f32 %v7147_v22, %v1754_v14  ;;  %6386 = vmatprep.subr.bf16.mxu0 %v6385_v37 }
 0x780   : > { %6388 = vmatpush3.bf16.msra.mxu0 %v6387_v50  ;;  %v419_v50 = vld [vmem:[#allocation2 + $0xc20] sm:$0xff] }
 0x781   : > { %v6389_v7 = vpack.c.bf16 %v1810_v17, %v1809_v33  ;;  %v5966_v11 = vpop.f32.mrb[36].mxu0 }
 0x782   : > { %v1812_v10 = vmul.f32 %v7148_v23, %v5966_v11  ;;  %v1764_v20 = vpop.f32.mrb[37].mxu0 }
 0x783   : > { %v1811_v32 = vmul.f32 %v7149_v57, %v1764_v20  ;;  %6390 = vmatprep.subr.bf16.mxu0 %v6389_v7  ;;  %v1924_v20 = vld [vmem:[#allocation2 + $0x1b0] ss:$0 sm:$0xff] }
 0x784   : > { %6392 = vmatpush3.bf16.msra.mxu0 %v6391_v19  ;;  %v424_v19 = vld [vmem:[#allocation2 + $0xc48] sm:$0xff] }
 0x785   : > { %v6393_v56 = vpack.c.bf16 %v1812_v10, %v1811_v32  ;;  %v5969_v8 = vpop.f32.mrb[38].mxu0 }
 0x786   : > { %v1814_v26 = vmul.f32 %v7150_v53, %v5969_v8  ;;  %v1774_v34 = vpop.f32.mrb[39].mxu0 }
 0x787   : > { %v1813_v12 = vmul.f32 %v7151_v24, %v1774_v34  ;;  %6394 = vmatprep.subr.bf16.mxu0 %v6393_v56 }
 0x788   : > { %6396 = vmatpush3.bf16.msra.mxu0 %v6395_v6  ;;  %v427_v6 = vld [vmem:[#allocation2 + $0xc60] sm:$0xff] }
 0x789   : > { %v6397_v44 = vpack.c.bf16 %v1814_v26, %v1813_v12 }
 0x78b   : > { %6398 = vmatprep.subr.bf16.mxu0 %v6397_v44 }
 0x78c   : > { %6400 = vmatpush3.bf16.msra.mxu0 %v6399_v63  ;;  %v431_v63 = vld [vmem:[#allocation2 + $0xc80] sm:$0xff] }
 0x78f   : > { %1880 = vmatmul.mubr.f32.vlgmr.msra.gmra.mrb[40].mxu0 %v419_v50 }
 0x790   : > { %1884 = vmatprep.mubr.f32.mxu0 %v422_v49 }
 0x793   : > { %1885 = vmatmul.mubr.f32.gmra.mrb[42].mxu0 %v421_v1 }
 0x794   : > { %1889 = vmatprep.mubr.f32.mxu0 %v424_v19 }
 0x797   : > { %1890 = vmatmul.mubr.f32.gmra.mrb[44].mxu0 %v423_v35 }
 0x798   : > { %1894 = vmatprep.mubr.f32.mxu0 %v426_v31 }
 0x79b   : > { %1895 = vmatmul.mubr.f32.gmra.mrb[46].mxu0 %v425_v48 }
 0x79c   : > { %1899 = vmatprep.mubr.f32.mxu0 %v428_v15 }
 0x79f   : > { %1900 = vmatmul.mubr.f32.gmra.mrb[48].mxu0 %v427_v6 }
 0x7a0   : > { %1904 = vmatprep.mubr.f32.mxu0 %v430_v46 }
 0x7a3   : > { %1905 = vmatmul.mubr.f32.gmra.mrb[50].mxu0 %v429_v28 }
 0x7a4   : > { %1909 = vmatprep.mubr.f32.mxu0 %v432_v5 }
 0x7a7   : > { %1910 = vmatmul.mubr.f32.gmra.mrb[52].mxu0 %v431_v63 }
 0x7a8   : > { %1914 = vmatprep.mubr.f32.mxu0 %v434_v13 }
 0x7ab   : > { %1915 = vmatmul.mubr.f32.gmra.mrb[54].mxu0 %v433_v58 }
 0x862   : > { %v5482_v42 = vpop.f32.mrb[40].mxu0 }
 0x863   : > { %v5483_v40 = vpop.f32.mrb[41].mxu0 }
 0x864   : > { %v5484_v16 = vadd.f32 %v5483_v40, %v5482_v42 }
 0x866   : > { %v5485_v62 = vpop.f32.mrb[42].mxu0  ;;  %5978 = vmatprep.mubr.msk.f32.mxu1 %vm437_vm9, %v5484_v16 }
 0x867   : > { %v5486_v55 = vpop.f32.mrb[43].mxu0 }
 0x868   : > { %v5487_v51 = vadd.f32 %v5486_v55, %v5485_v62 }
 0x86a   : > { %5979 = vmatmul.mubr.msk.f32.vlgmr.msra.gmra.mrb[40].mxu1 %vm437_vm9, %v5487_v51  ;;  %v5488_v2 = vpop.f32.mrb[44].mxu0 }
 0x86b   : > { %v5489_v29 = vpop.f32.mrb[45].mxu0 }
 0x86c   : > { %v5490_v60 = vadd.f32 %v5489_v29, %v5488_v2 }
 0x86e   : > { %v5491_v9 = vpop.f32.mrb[46].mxu0  ;;  %5981 = vmatprep.mubr.msk.f32.mxu1 %vm437_vm9, %v5490_v60 }
 0x86f   : > { %v5492_v0 = vpop.f32.mrb[47].mxu0 }
 0x870   : > { %v5493_v47 = vadd.f32 %v5492_v0, %v5491_v9 }
 0x872   : > { %5982 = vmatmul.mubr.msk.f32.gmra.mrb[42].mxu1 %vm437_vm9, %v5493_v47  ;;  %v5494_v18 = vpop.f32.mrb[48].mxu0 }
 0x873   : > { %v5495_v37 = vpop.f32.mrb[49].mxu0 }
 0x874   : > { %v5496_v41 = vadd.f32 %v5495_v37, %v5494_v18 }
 0x876   : > { %v5497_v38 = vpop.f32.mrb[50].mxu0  ;;  %5984 = vmatprep.mubr.msk.f32.mxu1 %vm437_vm9, %v5496_v41 }
 0x877   : > { %v5498_v17 = vpop.f32.mrb[51].mxu0 }
 0x878   : > { %v5499_v14 = vadd.f32 %v5498_v17, %v5497_v38 }
 0x87a   : > { %5985 = vmatmul.mubr.msk.f32.gmra.mrb[44].mxu1 %vm437_vm9, %v5499_v14  ;;  %v5500_v22 = vpop.f32.mrb[52].mxu0 }
 0x87b   : > { %v5501_v33 = vpop.f32.mrb[53].mxu0 }
 0x87c   : > { %v5502_v7 = vadd.f32 %v5501_v33, %v5500_v22 }
 0x87e   : > { %v5503_v11 = vpop.f32.mrb[54].mxu0  ;;  %5987 = vmatprep.mubr.msk.f32.mxu1 %vm437_vm9, %v5502_v7 }
 0x87f   : > { %v5504_v23 = vpop.f32.mrb[55].mxu0 }
 0x880   : > { %v5505_v10 = vadd.f32 %v5504_v23, %v5503_v11 }
 0x882   : > { %5988 = vmatmul.mubr.msk.f32.gmra.mrb[46].mxu1 %vm437_vm9, %v5505_v10 }
 0x93d   : > { %v5980_v57 = vpop.f32.mrb[40].mxu1 }
 0x93e   : > { %v2021_v32 = vadd.f32 %v5980_v57, %v1924_v20  ;;  %v2015_v56 = vpop.f32.mrb[41].mxu1 }
 0x93f   : > { %v2016_v8 = vadd.f32 %v2015_v56, %v1924_v20 }
 0x940   : > { %v8048_v53 = vadd.f32 %v2021_v32, %v7394_v43 }
 0x941   : > { %v8051_v26 = vadd.f32 %v2016_v8, %v7396_v45 }
 0x942   : > { %v2067_v34 = vsel %vm437_vm9, %v8048_v53, 0.0 }
 0x943   : > { %2068 = vadd.xlane.f32.xlu1 %v2067_v34  ;;  %v2064_v24 = vsel %vm437_vm9, %v8051_v26, 0.0 }
 0x944   : > { %2065 = vadd.xlane.f32.xlu0 %v2064_v24 }
 0x945   : > { %v5983_v12 = vpop.f32.mrb[42].mxu1 }
 0x946   : > { %v2031_v44 = vadd.f32 %v5983_v12, %v1924_v20  ;;  %v2025_v50 = vpop.f32.mrb[43].mxu1 }
 0x947   : > { %v2026_v49 = vadd.f32 %v2025_v50, %v1924_v20 }
 0x948   : > { %v8058_v1 = vadd.f32 %v2031_v44, %v7404_v54 }
 0x949   : > { %v8061_v43 = vadd.f32 %v2026_v49, %v7402_v52 }
 0x94a   : > { %v2073_v45 = vsel %vm437_vm9, %v8058_v1, 0.0 }
 0x94b   : > { %2074 = vadd.xlane.f32.xlu1 %v2073_v45  ;;  %v2070_v19 = vsel %vm437_vm9, %v8061_v43, 0.0 }
 0x94c   : > { %2071 = vadd.xlane.f32.xlu0 %v2070_v19  ;;  %v2184_v19 = vld [vmem:[#allocation2 + $0x1e0] sm:$0xff] }
 0x94d   : > { %v5986_v35 = vpop.f32.mrb[44].mxu1 }
 0x94e   : > { %v2041_v31 = vadd.f32 %v5986_v35, %v1924_v20  ;;  %v2035_v48 = vpop.f32.mrb[45].mxu1  ;;  %v2185_v35 = vld [vmem:[#allocation2 + $0x1f0] sm:$0xff] }
 0x94f   : > { %v2036_v15 = vadd.f32 %v2035_v48, %v1924_v20  ;;  %v2186_v48 = vld [vmem:[#allocation2 + $0x200] sm:$0xff] }
 0x950   : > { %v8068_v6 = vadd.f32 %v2041_v31, %v7410_v61  ;;  %v6409_v31 = vpack.c.bf16 %v2185_v35, %v2184_v19 }
 0x951   : > { %v8071_v54 = vadd.f32 %v2036_v15, %v7408_v59  ;;  %v2187_v15 = vld [vmem:[#allocation2 + $0x210] sm:$0xff] }
 0x952   : > { %v2079_v52 = vsel %vm437_vm9, %v8068_v6, 0.0  ;;  %6410 = vmatprep.subr.bf16.mxu1 %v6409_v31 }
 0x953   : > { %2080 = vadd.xlane.f32.xlu1 %v2079_v52  ;;  %v2076_v46 = vsel %vm437_vm9, %v8071_v54, 0.0  ;;  %6412 = vmatpush3.bf16.msra.mxu1 %v6409_v31  ;;  %v6413_v52 = vpack.c.bf16 %v2187_v15, %v2186_v48 }
 0x954   : > { %2077 = vadd.xlane.f32.xlu0 %v2076_v46 }
 0x955   : > { %v5989_v28 = vpop.f32.mrb[46].mxu1  ;;  %6414 = vmatprep.subr.bf16.mxu1 %v6413_v52 }
 0x956   : > { %v2051_v5 = vadd.f32 %v5989_v28, %v1924_v20  ;;  %v2045_v63 = vpop.f32.mrb[47].mxu1 }
 0x957   : > { %v2046_v13 = vadd.f32 %v2045_v63, %v1924_v20  ;;  %6416 = vmatpush3.bf16.msra.mxu1 %v6413_v52 }
 0x958   : > { %v8078_v58 = vadd.f32 %v2051_v5, %v7418_v4 }
 0x959   : > { %v8081_v61 = vadd.f32 %v2046_v13, %v7416_v3 }
 0x95a   : > { %v2085_v59 = vsel %vm437_vm9, %v8078_v58, 0.0 }
 0x95b   : > { %2086 = vadd.xlane.f32.xlu1 %v2085_v59  ;;  %v2082_v30 = vsel %vm437_vm9, %v8081_v61, 0.0 }
 0x95c   : > { %2083 = vadd.xlane.f32.xlu0 %v2082_v30 }
 0x9d0   : > { %v2069_v36 = vpop.xlane.xlu1 %2068 }
 0x9d1   : > { %v2089_v27 = vmul.f32 0.03125, %v2069_v36  ;;  %v2066_v42 = vpop.xlane.xlu0 %2065 }
 0x9d2   : > { %v2088_v40 = vmul.f32 0.03125, %v2066_v42 }
 0x9d3   : > { %v8088_v16 = vsub.f32 %v8048_v53, %v2089_v27 }
 0x9d4   : > { %v8091_v4 = vsub.f32 %v8051_v26, %v2088_v40 }
 0x9d5   : > { %v2105_v3 = vmul.f32 %v8088_v16, %v8088_v16 }
 0x9d6   : > { %v2104_v62 = vmul.f32 %v8091_v4, %v8091_v4 }
 0x9d7   : > { %v2115_v55 = vsel %vm437_vm9, %v2105_v3, 0.0 }
 0x9d8   : > { %v2075_v51 = vpop.xlane.xlu1 %2074  ;;  %2116 = vadd.xlane.f32.xlu1 %v2115_v55  ;;  %v2112_v2 = vsel %vm437_vm9, %v2104_v62, 0.0  ;;  %v2062_v55 = vld [vmem:[#allocation2 + $0x1c0] ss:$0 sm:$0xff] }
 0x9d9   : > { %v2091_v29 = vmul.f32 0.03125, %v2075_v51  ;;  %2113 = vadd.xlane.f32.xlu0 %v2112_v2  ;;  %v2072_v60 = vpop.xlane.xlu0 %2071 }
 0x9da   : > { %v2090_v9 = vmul.f32 0.03125, %v2072_v60 }
 0x9db   : > { %v8100_v0 = vsub.f32 %v8058_v1, %v2091_v29 }
 0x9dc   : > { %v8103_v47 = vsub.f32 %v8061_v43, %v2090_v9 }
 0x9dd   : > { %v2107_v18 = vmul.f32 %v8100_v0, %v8100_v0 }
 0x9de   : > { %v2106_v37 = vmul.f32 %v8103_v47, %v8103_v47 }
 0x9df   : > { %v2121_v41 = vsel %vm437_vm9, %v2107_v18, 0.0 }
 0x9e0   : > { %v2081_v38 = vpop.xlane.xlu1 %2080  ;;  %2122 = vadd.xlane.f32.xlu1 %v2121_v41  ;;  %v2118_v17 = vsel %vm437_vm9, %v2106_v37, 0.0 }
 0x9e1   : > { %v2093_v14 = vmul.f32 0.03125, %v2081_v38  ;;  %2119 = vadd.xlane.f32.xlu0 %v2118_v17  ;;  %v2078_v22 = vpop.xlane.xlu0 %2077  ;;  %v2063_v38 = vld [vmem:[#allocation2 + $0x1d0] ss:$0 sm:$0xff] }
 0x9e2   : > { %v2092_v33 = vmul.f32 0.03125, %v2078_v22 }
 0x9e3   : > { %v8112_v7 = vsub.f32 %v8068_v6, %v2093_v14 }
 0x9e4   : > { %v8115_v11 = vsub.f32 %v8071_v54, %v2092_v33 }
 0x9e5   : > { %v2109_v23 = vmul.f32 %v8112_v7, %v8112_v7 }
 0x9e6   : > { %v2108_v10 = vmul.f32 %v8115_v11, %v8115_v11 }
 0x9e7   : > { %v2127_v20 = vsel %vm437_vm9, %v2109_v23, 0.0 }
 0x9e8   : > { %2128 = vadd.xlane.f32.xlu1 %v2127_v20  ;;  %v2087_v57 = vpop.xlane.xlu1 %2086  ;;  %v2124_v32 = vsel %vm437_vm9, %v2108_v10, 0.0 }
 0x9e9   : > { %v2095_v56 = vmul.f32 0.03125, %v2087_v57  ;;  %2125 = vadd.xlane.f32.xlu0 %v2124_v32  ;;  %v2084_v8 = vpop.xlane.xlu0 %2083 }
 0x9ea   : > { %v2094_v34 = vmul.f32 0.03125, %v2084_v8 }
 0x9eb   : > { %v8124_v24 = vsub.f32 %v8078_v58, %v2095_v56 }
 0x9ec   : > { %v8127_v12 = vsub.f32 %v8081_v61, %v2094_v34 }
 0x9ed   : > { %v2111_v44 = vmul.f32 %v8124_v24, %v8124_v24 }
 0x9ee   : > { %v2110_v50 = vmul.f32 %v8127_v12, %v8127_v12 }
 0x9ef   : > { %v2133_v49 = vsel %vm437_vm9, %v2111_v44, 0.0 }
 0x9f0   : > { %2134 = vadd.xlane.f32.xlu1 %v2133_v49  ;;  %v2130_v45 = vsel %vm437_vm9, %v2110_v50, 0.0 }
 0x9f1   : > { %2131 = vadd.xlane.f32.xlu0 %v2130_v45 }
 0xa65   : > { %v2117_v46 = vpop.xlane.xlu1 %2116 }
 0xa66   : > { %v2137_v28 = vmul.f32 0.03125, %v2117_v46  ;;  %v2114_v5 = vpop.xlane.xlu0 %2113 }
 0xa67   : > { %v2136_v63 = vmul.f32 0.03125, %v2114_v5 }
 0xa68   : > { %v2145_v13 = vadd.f32 1e-05, %v2137_v28 }
 0xa69   : > { %v2144_v59 = vadd.f32 1e-05, %v2136_v63 }
 0xa6a   : > { %6890 = vrsqrt.f32 %v2145_v13 }
 0xa6b   : > { %6892 = vrsqrt.f32 %v2144_v59 }
 0xa6d   : > { %v2123_v30 = vpop.xlane.xlu1 %2122 }
 0xa6e   : > { %v2139_v36 = vmul.f32 0.03125, %v2123_v30  ;;  %v2120_v27 = vpop.xlane.xlu0 %2119 }
 0xa6f   : > { %v2138_v42 = vmul.f32 0.03125, %v2120_v27  ;;  %v2391_v27 = vld [vmem:[#allocation2 + $0x240] sm:$0xff] }
 0xa70   : > { %v2147_v40 = vadd.f32 1e-05, %v2139_v36 }
 0xa71   : > { %v2146_v3 = vadd.f32 1e-05, %v2138_v42 }
 0xa72   : > { %6894 = vrsqrt.f32 %v2147_v40  ;;  %v2392_v40 = vld [vmem:[#allocation2 + $0x250] sm:$0xff] }
 0xa73   : > { %6896 = vrsqrt.f32 %v2146_v3  ;;  %v2393_v3 = vld [vmem:[#allocation2 + $0x260] sm:$0xff] }
 0xa74   : > { %v6891_v62 = vpop.eup %6890 }
 0xa75   : > { %v6893_v51 = vpop.eup %6892  ;;  %v2161_v2 = vmul.f32 %v6891_v62, %v8088_v16  ;;  %v2129_v29 = vpop.xlane.xlu1 %2128  ;;  %v6421_v62 = vpack.c.bf16 %v2393_v3, %v2392_v40 }
 0xa76   : > { %v2141_v60 = vmul.f32 0.03125, %v2129_v29  ;;  %v2126_v9 = vpop.xlane.xlu0 %2125  ;;  %v2160_v18 = vmul.f32 %v6893_v51, %v8091_v4 }
 0xa77   : > { %v2169_v37 = vmul.f32 %v2161_v2, %v2062_v55  ;;  %v2140_v41 = vmul.f32 0.03125, %v2126_v9  ;;  %v2397_v2 = vld [vmem:[#allocation2 + $0x2a0] sm:$0xff] }
 0xa78   : > { %v2149_v17 = vadd.f32 1e-05, %v2141_v60  ;;  %v2168_v14 = vmul.f32 %v2160_v18, %v2062_v55  ;;  %v2398_v60 = vld [vmem:[#allocation2 + $0x2b0] sm:$0xff]  ;;  %v2399_v9 = vld [vmem:[#allocation2 + $0x2c0] sm:$0xff] }
 0xa79   : > { %v2148_v22 = vadd.f32 1e-05, %v2140_v41  ;;  %v2177_v23 = vadd.f32 %v2169_v37, %v2063_v38  ;;  %v6433_v18 = vpack.c.bf16 %v2399_v9, %v2398_v60  ;;  %v2400_v37 = vld [vmem:[#allocation2 + $0x2d0] sm:$0xff]  ;;  %v2401_v41 = vld [vmem:[#allocation2 + $0x2e0] sm:$0xff] }
 0xa7a   : > { %6898 = vrsqrt.f32 %v2149_v17  ;;  %v2176_v33 = vadd.f32 %v2168_v14, %v2063_v38  ;;  %v2402_v17 = vld [vmem:[#allocation2 + $0x2f0] sm:$0xff]  ;;  %v2403_v14 = vld [vmem:[#allocation2 + $0x300] sm:$0xff] }
 0xa7b   : > { %6900 = vrsqrt.f32 %v2148_v22  ;;  %v6441_v22 = vpack.c.bf16 %v2403_v14, %v2402_v17 }
 0xa7c   : > { %v6895_v10 = vpop.eup %6894  ;;  %5998 = vmatprep.mubr.msk.f32.mxu1 %vm437_vm9, %v2176_v33  ;;  %v2404_v33 = vld [vmem:[#allocation2 + $0x310] sm:$0xff] }
 0xa7d   : > { %v6897_v20 = vpop.eup %6896  ;;  %v2135_v16 = vpop.xlane.xlu1 %2134  ;;  %5999 = vmatmul.mubr.msk.f32.vlgmr.msra.gmra.mrb[48].mxu1 %vm437_vm9, %v2177_v23  ;;  %v2163_v57 = vmul.f32 %v6895_v10, %v8100_v0  ;;  %v2405_v23 = vld [vmem:[#allocation2 + $0x320] sm:$0xff] }
 0xa7e   : > { %v2143_v4 = vmul.f32 0.03125, %v2135_v16  ;;  %v2132_v32 = vpop.xlane.xlu0 %2131  ;;  %v2162_v56 = vmul.f32 %v6897_v20, %v8103_v47  ;;  %v6445_v10 = vpack.c.bf16 %v2405_v23, %v2404_v33  ;;  %v2188_v20 = vld [vmem:[#allocation2 + $0x220] ss:$0 sm:$0xff] }
 0xa7f   : > { %v2142_v8 = vmul.f32 0.03125, %v2132_v32  ;;  %v2171_v34 = vmul.f32 %v2163_v57, %v2062_v55 }
 0xa80   : > { %v2151_v44 = vadd.f32 1e-05, %v2143_v4  ;;  %v2170_v50 = vmul.f32 %v2162_v56, %v2062_v55 }
 0xa81   : > { %v2150_v49 = vadd.f32 1e-05, %v2142_v8  ;;  %v2179_v19 = vadd.f32 %v2171_v34, %v2063_v38 }
 0xa82   : > { %6902 = vrsqrt.f32 %v2151_v44  ;;  %v2178_v45 = vadd.f32 %v2170_v50, %v2063_v38 }
 0xa83   : > { %6904 = vrsqrt.f32 %v2150_v49 }
 0xa84   : > { %v6899_v35 = vpop.eup %6898  ;;  %6001 = vmatprep.mubr.msk.f32.mxu1 %vm437_vm9, %v2178_v45 }
 0xa85   : > { %v6901_v31 = vpop.eup %6900  ;;  %6002 = vmatmul.mubr.msk.f32.gmra.mrb[50].mxu1 %vm437_vm9, %v2179_v19  ;;  %v2165_v0 = vmul.f32 %v6899_v35, %v8112_v7 }
 0xa86   : > { %v2164_v48 = vmul.f32 %v6901_v31, %v8115_v11  ;;  %v2390_v11 = vld [vmem:[#allocation2 + $0x230] sm:$0xff] }
 0xa87   : > { %v2173_v47 = vmul.f32 %v2165_v0, %v2062_v55  ;;  %v6417_v42 = vpack.c.bf16 %v2391_v27, %v2390_v11 }
 0xa88   : > { %v2172_v15 = vmul.f32 %v2164_v48, %v2062_v55 }
 0xa89   : > { %v2181_v46 = vadd.f32 %v2173_v47, %v2063_v38  ;;  %6418 = vmatprep.subr.bf16.mxu0 %v6417_v42 }
 0xa8a   : > { %v2180_v52 = vadd.f32 %v2172_v15, %v2063_v38  ;;  %6420 = vmatpush3.bf16.msra.mxu0 %v6417_v42 }
 0xa8b   : > { %6422 = vmatprep.subr.bf16.mxu0 %v6421_v62 }
 0xa8c   : > { %v6903_v28 = vpop.eup %6902  ;;  %6004 = vmatprep.mubr.msk.f32.mxu1 %vm437_vm9, %v2180_v52 }
 0xa8d   : > { %v6905_v5 = vpop.eup %6904  ;;  %6005 = vmatmul.mubr.msk.f32.gmra.mrb[52].mxu1 %vm437_vm9, %v2181_v46  ;;  %v2167_v63 = vmul.f32 %v6903_v28, %v8124_v24  ;;  %v2394_v24 = vld [vmem:[#allocation2 + $0x270] sm:$0xff] }
 0xa8e   : > { %v2166_v13 = vmul.f32 %v6905_v5, %v8127_v12  ;;  %6424 = vmatpush3.bf16.msra.mxu0 %v6421_v62  ;;  %v2395_v12 = vld [vmem:[#allocation2 + $0x280] sm:$0xff] }
 0xa8f   : > { %v2175_v59 = vmul.f32 %v2167_v63, %v2062_v55  ;;  %v6425_v51 = vpack.c.bf16 %v2395_v12, %v2394_v24 }
 0xa90   : > { %v2174_v30 = vmul.f32 %v2166_v13, %v2062_v55  ;;  %v2396_v55 = vld [vmem:[#allocation2 + $0x290] sm:$0xff] }
 0xa91   : > { %v2183_v7 = vadd.f32 %v2175_v59, %v2063_v38  ;;  %6426 = vmatprep.subr.bf16.mxu0 %v6425_v51  ;;  %v6429_v29 = vpack.c.bf16 %v2397_v2, %v2396_v55 }
 0xa92   : > { %v2182_v36 = vadd.f32 %v2174_v30, %v2063_v38  ;;  %6428 = vmatpush3.bf16.msra.mxu0 %v6425_v51  ;;  %v6437_v38 = vpack.c.bf16 %v2401_v41, %v2400_v37 }
 0xa93   : > { %6430 = vmatprep.subr.bf16.mxu0 %v6429_v29 }
 0xa94   : > { %6007 = vmatprep.mubr.msk.f32.mxu1 %vm437_vm9, %v2182_v36 }
 0xa95   : > { %6008 = vmatmul.mubr.msk.f32.gmra.mrb[54].mxu1 %vm437_vm9, %v2183_v7 }
 0xa96   : > { %6432 = vmatpush3.bf16.msra.mxu0 %v6429_v29 }
 0xa97   : > { %6434 = vmatprep.subr.bf16.mxu0 %v6433_v18 }
 0xa9a   : > { %6436 = vmatpush3.bf16.msra.mxu0 %v6433_v18 }
 0xa9b   : > { %6438 = vmatprep.subr.bf16.mxu0 %v6437_v38 }
 0xa9e   : > { %6440 = vmatpush3.bf16.msra.mxu0 %v6437_v38 }
 0xa9f   : > { %6442 = vmatprep.subr.bf16.mxu0 %v6441_v22 }
 0xaa2   : > { %6444 = vmatpush3.bf16.msra.mxu0 %v6441_v22 }
 0xaa3   : > { %6446 = vmatprep.subr.bf16.mxu0 %v6445_v10 }
 0xaa6   : > { %6448 = vmatpush3.bf16.msra.mxu0 %v6445_v10 }
 0xb50   : > { %v6000_v16 = vpop.f32.mrb[48].mxu1 }
 0xb51   : > { %v2285_v57 = vadd.f32 %v6000_v16, %v2188_v20  ;;  %v2279_v4 = vpop.f32.mrb[49].mxu1 }
 0xb52   : > { %v2280_v32 = vadd.f32 %v2279_v4, %v2188_v20 }
 0xb53   : > { %v2319_v56 = vmul.f32 %v2285_v57, %v2285_v57 }
 0xb54   : > { %v2318_v8 = vmul.f32 %v2280_v32, %v2280_v32 }
 0xb55   : > { %v2327_v34 = vmul.f32 %v2319_v56, %v2285_v57 }
 0xb56   : > { %v2326_v44 = vmul.f32 %v2318_v8, %v2280_v32 }
 0xb57   : > { %v2335_v50 = vmul.f32 0.044715, %v2327_v34 }
 0xb58   : > { %v2334_v49 = vmul.f32 0.044715, %v2326_v44  ;;  %v6003_v45 = vpop.f32.mrb[50].mxu1 }
 0xb59   : > { %v2343_v19 = vadd.f32 %v2335_v50, %v2285_v57  ;;  %v8151_v35 = vadd.f32 %v6003_v45, %v2188_v20  ;;  %v2289_v31 = vpop.f32.mrb[51].mxu1 }
 0xb5a   : > { %v2342_v0 = vadd.f32 %v2334_v49, %v2280_v32  ;;  %v8153_v48 = vadd.f32 %v2289_v31, %v2188_v20 }
 0xb5b   : > { %v2351_v47 = vmul.f32 0.7978846, %v2343_v19  ;;  %v2321_v15 = vmul.f32 %v8151_v35, %v8151_v35 }
 0xb5c   : > { %v2350_v52 = vmul.f32 0.7978846, %v2342_v0  ;;  %v2320_v46 = vmul.f32 %v8153_v48, %v8153_v48 }
 0xb5d   : > { %6906 = vtanh.f32 %v2351_v47  ;;  %v2329_v28 = vmul.f32 %v2321_v15, %v8151_v35 }
 0xb5e   : > { %v2328_v5 = vmul.f32 %v2320_v46, %v8153_v48  ;;  %6908 = vtanh.f32 %v2350_v52 }
 0xb5f   : > { %v2337_v63 = vmul.f32 0.044715, %v2329_v28 }
 0xb60   : > { %v2336_v13 = vmul.f32 0.044715, %v2328_v5  ;;  %v6006_v59 = vpop.f32.mrb[52].mxu1 }
 0xb61   : > { %v2345_v30 = vadd.f32 %v2337_v63, %v8151_v35  ;;  %v8162_v36 = vadd.f32 %v6006_v59, %v2188_v20  ;;  %v2299_v7 = vpop.f32.mrb[53].mxu1 }
 0xb62   : > { %v2344_v11 = vadd.f32 %v2336_v13, %v8153_v48  ;;  %v2300_v27 = vadd.f32 %v2299_v7, %v2188_v20 }
 0xb63   : > { %v2353_v42 = vmul.f32 0.7978846, %v2345_v30  ;;  %v2323_v40 = vmul.f32 %v8162_v36, %v8162_v36 }
 0xb64   : > { %v2352_v3 = vmul.f32 0.7978846, %v2344_v11  ;;  %v2322_v62 = vmul.f32 %v2300_v27, %v2300_v27 }
 0xb65   : > { %v2331_v24 = vmul.f32 %v2323_v40, %v8162_v36  ;;  %6910 = vtanh.f32 %v2353_v42 }
 0xb66   : > { %v2330_v12 = vmul.f32 %v2322_v62, %v2300_v27  ;;  %6912 = vtanh.f32 %v2352_v3 }
 0xb67   : > { %v6907_v51 = vpop.eup %6906  ;;  %v2339_v55 = vmul.f32 0.044715, %v2331_v24 }
 0xb68   : > { %v6909_v2 = vpop.eup %6908  ;;  %v2367_v29 = vadd.f32 1.0, %v6907_v51  ;;  %v2338_v60 = vmul.f32 0.044715, %v2330_v12  ;;  %v6009_v9 = vpop.f32.mrb[54].mxu1 }
 0xb69   : > { %v2347_v18 = vadd.f32 %v2339_v55, %v8162_v36  ;;  %v2315_v37 = vadd.f32 %v6009_v9, %v2188_v20  ;;  %v2309_v41 = vpop.f32.mrb[55].mxu1  ;;  %v2366_v38 = vadd.f32 1.0, %v6909_v2  ;;  %v2406_v55 = vld [vmem:[#allocation2 + $0x330] ss:$0 sm:$0xff] }
 0xb6a   : > { %v2375_v17 = vmul.f32 0.5, %v2367_v29  ;;  %v2346_v14 = vadd.f32 %v2338_v60, %v2300_v27  ;;  %v2310_v22 = vadd.f32 %v2309_v41, %v2188_v20 }
 0xb6b   : > { %v2355_v33 = vmul.f32 0.7978846, %v2347_v18  ;;  %v2325_v23 = vmul.f32 %v2315_v37, %v2315_v37  ;;  %v2374_v10 = vmul.f32 0.5, %v2366_v38 }
 0xb6c   : > { %v2354_v16 = vmul.f32 0.7978846, %v2346_v14  ;;  %v2324_v4 = vmul.f32 %v2310_v22, %v2310_v22  ;;  %v2383_v34 = vmul.f32 %v2375_v17, %v2285_v57 }
 0xb6d   : > { %v2333_v56 = vmul.f32 %v2325_v23, %v2315_v37  ;;  %v2382_v8 = vmul.f32 %v2374_v10, %v2280_v32  ;;  %6914 = vtanh.f32 %v2355_v33 }
 0xb6e   : > { %v2332_v44 = vmul.f32 %v2324_v4, %v2310_v22  ;;  %6916 = vtanh.f32 %v2354_v16 }
 0xb6f   : > { %v6911_v50 = vpop.eup %6910  ;;  %v2341_v49 = vmul.f32 0.044715, %v2333_v56  ;;  %6042 = vmatprep.mubr.f32.mxu0 %v2382_v8 }
 0xb70   : > { %v6913_v45 = vpop.eup %6912  ;;  %v2340_v19 = vmul.f32 0.044715, %v2332_v44  ;;  %6043 = vmatmul.mubr.f32.vlgmr.msra.gmra.mrb[56].mxu0 %v2383_v34  ;;  %v2369_v31 = vadd.f32 1.0, %v6911_v50 }
 0xb71   : > { %v2349_v0 = vadd.f32 %v2341_v49, %v2315_v37  ;;  %v2368_v20 = vadd.f32 1.0, %v6913_v45 }
 0xb72   : > { %v2348_v47 = vadd.f32 %v2340_v19, %v2310_v22  ;;  %v2377_v15 = vmul.f32 0.5, %v2369_v31 }
 0xb73   : > { %v2357_v52 = vmul.f32 0.7978846, %v2349_v0  ;;  %v2376_v46 = vmul.f32 0.5, %v2368_v20 }
 0xb74   : > { %v2356_v28 = vmul.f32 0.7978846, %v2348_v47  ;;  %v2385_v57 = vmul.f32 %v2377_v15, %v8151_v35 }
 0xb75   : > { %v2384_v32 = vmul.f32 %v2376_v46, %v8153_v48  ;;  %6918 = vtanh.f32 %v2357_v52 }
 0xb76   : > { %6920 = vtanh.f32 %v2356_v28 }
 0xb77   : > { %v6915_v5 = vpop.eup %6914  ;;  %6045 = vmatprep.mubr.f32.mxu0 %v2384_v32 }
 0xb78   : > { %v6917_v63 = vpop.eup %6916  ;;  %6046 = vmatmul.mubr.f32.gmra.mrb[58].mxu0 %v2385_v57  ;;  %v2371_v13 = vadd.f32 1.0, %v6915_v5 }
 0xb79   : > { %v2370_v59 = vadd.f32 1.0, %v6917_v63 }
 0xb7a   : > { %v2379_v30 = vmul.f32 0.5, %v2371_v13 }
 0xb7b   : > { %v2378_v7 = vmul.f32 0.5, %v2370_v59 }
 0xb7c   : > { %v2387_v42 = vmul.f32 %v2379_v30, %v8162_v36 }
 0xb7d   : > { %v2386_v11 = vmul.f32 %v2378_v7, %v2300_v27 }
 0xb7f   : > { %v6919_v40 = vpop.eup %6918  ;;  %6048 = vmatprep.mubr.f32.mxu0 %v2386_v11 }
 0xb80   : > { %v6921_v3 = vpop.eup %6920  ;;  %6049 = vmatmul.mubr.f32.gmra.mrb[60].mxu0 %v2387_v42  ;;  %v2373_v48 = vadd.f32 1.0, %v6919_v40 }
 0xb81   : > { %v2372_v62 = vadd.f32 1.0, %v6921_v3 }
 0xb82   : > { %v2381_v24 = vmul.f32 0.5, %v2373_v48 }
 0xb83   : > { %v2380_v35 = vmul.f32 0.5, %v2372_v62 }
 0xb84   : > { %v2389_v51 = vmul.f32 %v2381_v24, %v2315_v37 }
 0xb85   : > { %v2388_v12 = vmul.f32 %v2380_v35, %v2310_v22 }
 0xb87   : > { %6051 = vmatprep.mubr.f32.mxu0 %v2388_v12 }
 0xb88   : > { %6052 = vmatmul.mubr.f32.gmra.mrb[62].mxu0 %v2389_v51 }
 0xc43   : > { %v6044_v2 = vpop.f32.mrb[56].mxu0 }
 0xc44   : > { %v2479_v29 = vadd.f32 %v6044_v2, %v2406_v55  ;;  %v2473_v60 = vpop.f32.mrb[57].mxu0 }
 0xc45   : > { %v2474_v9 = vadd.f32 %v2473_v60, %v2406_v55 }
 0xc46   : > { %v8173_v27 = vadd.f32 %v2479_v29, %v8048_v53 }
 0xc47   : > { %v8176_v36 = vadd.f32 %v2474_v9, %v8051_v26 }
 0xc48   : > { %v2525_v18 = vsel %vm437_vm9, %v8173_v27, 0.0 }
 0xc49   : > { %2526 = vadd.xlane.f32.xlu1 %v2525_v18  ;;  %v2522_v37 = vsel %vm437_vm9, %v8176_v36, 0.0 }
 0xc4a   : > { %2523 = vadd.xlane.f32.xlu0 %v2522_v37 }
 0xc4b   : > { %v6047_v41 = vpop.f32.mrb[58].mxu0 }
 0xc4c   : > { %v2489_v38 = vadd.f32 %v6047_v41, %v2406_v55  ;;  %v2483_v17 = vpop.f32.mrb[59].mxu0 }
 0xc4d   : > { %v2484_v14 = vadd.f32 %v2483_v17, %v2406_v55 }
 0xc4e   : > { %v8183_v22 = vadd.f32 %v2489_v38, %v8058_v1 }
 0xc4f   : > { %v8186_v53 = vadd.f32 %v2484_v14, %v8061_v43 }
 0xc50   : > { %v2531_v26 = vsel %vm437_vm9, %v8183_v22, 0.0 }
 0xc51   : > { %2532 = vadd.xlane.f32.xlu1 %v2531_v26  ;;  %v2528_v33 = vsel %vm437_vm9, %v8186_v53, 0.0 }
 0xc52   : > { %2529 = vadd.xlane.f32.xlu0 %v2528_v33  ;;  %v2642_v33 = vld [vmem:[#allocation2 + $0x360] sm:$0xff] }
 0xc53   : > { %v6050_v23 = vpop.f32.mrb[60].mxu0 }
 0xc54   : > { %v2499_v10 = vadd.f32 %v6050_v23, %v2406_v55  ;;  %v2493_v16 = vpop.f32.mrb[61].mxu0  ;;  %v2643_v23 = vld [vmem:[#allocation2 + $0x370] sm:$0xff] }
 0xc55   : > { %v2494_v4 = vadd.f32 %v2493_v16, %v2406_v55  ;;  %v2644_v16 = vld [vmem:[#allocation2 + $0x380] sm:$0xff] }
 0xc56   : > { %v8193_v56 = vadd.f32 %v2499_v10, %v8068_v6  ;;  %v6449_v10 = vpack.c.bf16 %v2643_v23, %v2642_v33 }
 0xc57   : > { %v8196_v1 = vadd.f32 %v2494_v4, %v8071_v54  ;;  %v2645_v4 = vld [vmem:[#allocation2 + $0x390] sm:$0xff] }
 0xc58   : > { %v2537_v43 = vsel %vm437_vm9, %v8193_v56, 0.0  ;;  %6450 = vmatprep.subr.bf16.mxu1 %v6449_v10 }
 0xc59   : > { %2538 = vadd.xlane.f32.xlu1 %v2537_v43  ;;  %v2534_v8 = vsel %vm437_vm9, %v8196_v1, 0.0  ;;  %6452 = vmatpush3.bf16.msra.mxu1 %v6449_v10  ;;  %v6453_v43 = vpack.c.bf16 %v2645_v4, %v2644_v16 }
 0xc5a   : > { %2535 = vadd.xlane.f32.xlu0 %v2534_v8 }
 0xc5b   : > { %v6053_v34 = vpop.f32.mrb[62].mxu0  ;;  %6454 = vmatprep.subr.bf16.mxu1 %v6453_v43 }
 0xc5c   : > { %v2509_v44 = vadd.f32 %v6053_v34, %v2406_v55  ;;  %v2503_v50 = vpop.f32.mrb[63].mxu0 }
 0xc5d   : > { %v2504_v49 = vadd.f32 %v2503_v50, %v2406_v55  ;;  %6456 = vmatpush3.bf16.msra.mxu1 %v6453_v43 }
 0xc5e   : > { %v8203_v45 = vadd.f32 %v2509_v44, %v8078_v58 }
 0xc5f   : > { %v8206_v6 = vadd.f32 %v2504_v49, %v8081_v61 }
 0xc60   : > { %v2543_v54 = vsel %vm437_vm9, %v8203_v45, 0.0 }
 0xc61   : > { %2544 = vadd.xlane.f32.xlu1 %v2543_v54  ;;  %v2540_v19 = vsel %vm437_vm9, %v8206_v6, 0.0 }
 0xc62   : > { %2541 = vadd.xlane.f32.xlu0 %v2540_v19 }
 0xcd6   : > { %v2527_v31 = vpop.xlane.xlu1 %2526 }
 0xcd7   : > { %v2547_v0 = vmul.f32 0.03125, %v2527_v31  ;;  %v2524_v20 = vpop.xlane.xlu0 %2523 }
 0xcd8   : > { %v2546_v47 = vmul.f32 0.03125, %v2524_v20 }
 0xcd9   : > { %v8213_v15 = vsub.f32 %v8173_v27, %v2547_v0 }
 0xcda   : > { %v8216_v58 = vsub.f32 %v8176_v36, %v2546_v47 }
 0xcdb   : > { %v2563_v61 = vmul.f32 %v8213_v15, %v8213_v15 }
 0xcdc   : > { %v2562_v52 = vmul.f32 %v8216_v58, %v8216_v58 }
 0xcdd   : > { %v2573_v46 = vsel %vm437_vm9, %v2563_v61, 0.0 }
 0xcde   : > { %v2533_v28 = vpop.xlane.xlu1 %2532  ;;  %2574 = vadd.xlane.f32.xlu1 %v2573_v46  ;;  %v2570_v32 = vsel %vm437_vm9, %v2562_v52, 0.0  ;;  %v2520_v46 = vld [vmem:[#allocation2 + $0x340] ss:$0 sm:$0xff] }
 0xcdf   : > { %v2549_v57 = vmul.f32 0.03125, %v2533_v28  ;;  %2571 = vadd.xlane.f32.xlu0 %v2570_v32  ;;  %v2530_v5 = vpop.xlane.xlu0 %2529 }
 0xce0   : > { %v2548_v63 = vmul.f32 0.03125, %v2530_v5 }
 0xce1   : > { %v8225_v13 = vsub.f32 %v8183_v22, %v2549_v57 }
 0xce2   : > { %v8228_v59 = vsub.f32 %v8186_v53, %v2548_v63 }
 0xce3   : > { %v2565_v30 = vmul.f32 %v8225_v13, %v8225_v13 }
 0xce4   : > { %v2564_v7 = vmul.f32 %v8228_v59, %v8228_v59 }
 0xce5   : > { %v2579_v11 = vsel %vm437_vm9, %v2565_v30, 0.0 }
 0xce6   : > { %v2539_v42 = vpop.xlane.xlu1 %2538  ;;  %2580 = vadd.xlane.f32.xlu1 %v2579_v11  ;;  %v2576_v40 = vsel %vm437_vm9, %v2564_v7, 0.0 }
 0xce7   : > { %v2551_v3 = vmul.f32 0.03125, %v2539_v42  ;;  %2577 = vadd.xlane.f32.xlu0 %v2576_v40  ;;  %v2536_v48 = vpop.xlane.xlu0 %2535  ;;  %v2521_v42 = vld [vmem:[#allocation2 + $0x350] ss:$0 sm:$0xff] }
 0xce8   : > { %v2550_v62 = vmul.f32 0.03125, %v2536_v48 }
 0xce9   : > { %v8237_v24 = vsub.f32 %v8193_v56, %v2551_v3 }
 0xcea   : > { %v8240_v35 = vsub.f32 %v8196_v1, %v2550_v62 }
 0xceb   : > { %v2567_v12 = vmul.f32 %v8237_v24, %v8237_v24 }
 0xcec   : > { %v2566_v51 = vmul.f32 %v8240_v35, %v8240_v35 }
 0xced   : > { %v2585_v55 = vsel %vm437_vm9, %v2567_v12, 0.0 }
 0xcee   : > { %2586 = vadd.xlane.f32.xlu1 %v2585_v55  ;;  %v2545_v2 = vpop.xlane.xlu1 %2544  ;;  %v2582_v29 = vsel %vm437_vm9, %v2566_v51, 0.0 }
 0xcef   : > { %v2553_v60 = vmul.f32 0.03125, %v2545_v2  ;;  %2583 = vadd.xlane.f32.xlu0 %v2582_v29  ;;  %v2542_v9 = vpop.xlane.xlu0 %2541 }
 0xcf0   : > { %v2552_v18 = vmul.f32 0.03125, %v2542_v9 }
 0xcf1   : > { %v8249_v37 = vsub.f32 %v8203_v45, %v2553_v60 }
 0xcf2   : > { %v8252_v41 = vsub.f32 %v8206_v6, %v2552_v18 }
 0xcf3   : > { %v2569_v38 = vmul.f32 %v8249_v37, %v8249_v37 }
 0xcf4   : > { %v2568_v17 = vmul.f32 %v8252_v41, %v8252_v41 }
 0xcf5   : > { %v2591_v14 = vsel %vm437_vm9, %v2569_v38, 0.0 }
 0xcf6   : > { %2592 = vadd.xlane.f32.xlu1 %v2591_v14  ;;  %v2588_v26 = vsel %vm437_vm9, %v2568_v17, 0.0 }
 0xcf7   : > { %2589 = vadd.xlane.f32.xlu0 %v2588_v26 }
 0xd6b   : > { %v2575_v8 = vpop.xlane.xlu1 %2574 }
 0xd6c   : > { %v2595_v34 = vmul.f32 0.03125, %v2575_v8  ;;  %v2572_v44 = vpop.xlane.xlu0 %2571 }
 0xd6d   : > { %v2594_v50 = vmul.f32 0.03125, %v2572_v44 }
 0xd6e   : > { %v2603_v49 = vadd.f32 1e-05, %v2595_v34 }
 0xd6f   : > { %v2602_v54 = vadd.f32 1e-05, %v2594_v50 }
 0xd70   : > { %6922 = vrsqrt.f32 %v2603_v49 }
 0xd71   : > { %6924 = vrsqrt.f32 %v2602_v54 }
 0xd73   : > { %v2581_v19 = vpop.xlane.xlu1 %2580 }
 0xd74   : > { %v2597_v31 = vmul.f32 0.03125, %v2581_v19  ;;  %v2578_v0 = vpop.xlane.xlu0 %2577 }
 0xd75   : > { %v2596_v20 = vmul.f32 0.03125, %v2578_v0 }
 0xd76   : > { %v2605_v47 = vadd.f32 1e-05, %v2597_v31 }
 0xd77   : > { %v2604_v61 = vadd.f32 1e-05, %v2596_v20 }
 0xd78   : > { %6926 = vrsqrt.f32 %v2605_v47 }
 0xd79   : > { %6928 = vrsqrt.f32 %v2604_v61 }
 0xd7a   : > { %v6923_v52 = vpop.eup %6922 }
 0xd7b   : > { %v6925_v28 = vpop.eup %6924  ;;  %v2619_v32 = vmul.f32 %v6923_v52, %v8213_v15  ;;  %v2587_v57 = vpop.xlane.xlu1 %2586  ;;  %v7152_v52 = vld [vmem:[#allocation2 + $0xa20] sm:$0xff] }
 0xd7c   : > { %v2599_v5 = vmul.f32 0.03125, %v2587_v57  ;;  %v2584_v63 = vpop.xlane.xlu0 %2583  ;;  %v2618_v30 = vmul.f32 %v6925_v28, %v8216_v58 }
 0xd7d   : > { %v2627_v7 = vmul.f32 %v2619_v32, %v2520_v46  ;;  %v2598_v11 = vmul.f32 0.03125, %v2584_v63 }
 0xd7e   : > { %v2607_v40 = vadd.f32 1e-05, %v2599_v5  ;;  %v2626_v3 = vmul.f32 %v2618_v30, %v2520_v46 }
 0xd7f   : > { %v2606_v48 = vadd.f32 1e-05, %v2598_v11  ;;  %v2635_v12 = vadd.f32 %v2627_v7, %v2521_v42 }
 0xd80   : > { %6930 = vrsqrt.f32 %v2607_v40  ;;  %v2634_v62 = vadd.f32 %v2626_v3, %v2521_v42 }
 0xd81   : > { %6932 = vrsqrt.f32 %v2606_v48 }
 0xd82   : > { %v6927_v51 = vpop.eup %6926  ;;  %6062 = vmatprep.mubr.msk.f32.mxu1 %vm437_vm9, %v2634_v62 }
 0xd83   : > { %v6929_v55 = vpop.eup %6928  ;;  %v2593_v15 = vpop.xlane.xlu1 %2592  ;;  %6063 = vmatmul.mubr.msk.f32.vlgmr.msra.gmra.mrb[56].mxu1 %vm437_vm9, %v2635_v12  ;;  %v2621_v2 = vmul.f32 %v6927_v51, %v8225_v13 }
 0xd84   : > { %v2601_v58 = vmul.f32 0.03125, %v2593_v15  ;;  %v2590_v29 = vpop.xlane.xlu0 %2589  ;;  %v2620_v60 = vmul.f32 %v6929_v55, %v8228_v59 }
 0xd85   : > { %v2600_v9 = vmul.f32 0.03125, %v2590_v29  ;;  %v2629_v18 = vmul.f32 %v2621_v2, %v2520_v46 }
 0xd86   : > { %v2609_v38 = vadd.f32 1e-05, %v2601_v58  ;;  %v2628_v17 = vmul.f32 %v2620_v60, %v2520_v46 }
 0xd87   : > { %v2608_v14 = vadd.f32 1e-05, %v2600_v9  ;;  %v2637_v33 = vadd.f32 %v2629_v18, %v2521_v42 }
 0xd88   : > { %6934 = vrsqrt.f32 %v2609_v38  ;;  %v2636_v26 = vadd.f32 %v2628_v17, %v2521_v42 }
 0xd89   : > { %6936 = vrsqrt.f32 %v2608_v14 }
 0xd8a   : > { %v6931_v23 = vpop.eup %6930  ;;  %6065 = vmatprep.mubr.msk.f32.mxu1 %vm437_vm9, %v2636_v26 }
 0xd8b   : > { %v6933_v10 = vpop.eup %6932  ;;  %6066 = vmatmul.mubr.msk.f32.gmra.mrb[58].mxu1 %vm437_vm9, %v2637_v33  ;;  %v2623_v13 = vmul.f32 %v6931_v23, %v8237_v24 }
 0xd8c   : > { %v2622_v16 = vmul.f32 %v6933_v10, %v8240_v35  ;;  %v2646_v35 = vld [vmem:[#allocation2 + $0x3a0] ss:$0 sm:$0xff] }
 0xd8d   : > { %v2631_v59 = vmul.f32 %v2623_v13, %v2520_v46 }
 0xd8e   : > { %v2630_v4 = vmul.f32 %v2622_v16, %v2520_v46 }
 0xd8f   : > { %v2639_v8 = vadd.f32 %v2631_v59, %v2521_v42 }
 0xd90   : > { %v2638_v43 = vadd.f32 %v2630_v4, %v2521_v42 }
 0xd92   : > { %v6935_v34 = vpop.eup %6934  ;;  %6068 = vmatprep.mubr.msk.f32.mxu1 %vm437_vm9, %v2638_v43 }
 0xd93   : > { %v6937_v44 = vpop.eup %6936  ;;  %6069 = vmatmul.mubr.msk.f32.gmra.mrb[60].mxu1 %vm437_vm9, %v2639_v8  ;;  %v2625_v50 = vmul.f32 %v6935_v34, %v8249_v37 }
 0xd94   : > { %v2624_v49 = vmul.f32 %v6937_v44, %v8252_v41 }
 0xd95   : > { %v2633_v54 = vmul.f32 %v2625_v50, %v2520_v46  ;;  %v7153_v50 = vld [vmem:[#allocation2 + $0xa30] sm:$0xff] }
 0xd96   : > { %v2632_v19 = vmul.f32 %v2624_v49, %v2520_v46 }
 0xd97   : > { %v2641_v24 = vadd.f32 %v2633_v54, %v2521_v42  ;;  %v7154_v54 = vld [vmem:[#allocation2 + $0xa40] sm:$0xff] }
 0xd98   : > { %v2640_v31 = vadd.f32 %v2632_v19, %v2521_v42 }
 0xd9a   : > { %6071 = vmatprep.mubr.msk.f32.mxu1 %vm437_vm9, %v2640_v31 }
 0xd9b   : > { %6072 = vmatmul.mubr.msk.f32.gmra.mrb[62].mxu1 %vm437_vm9, %v2641_v24  ;;  %v7156_v24 = vld [vmem:[#allocation2 + $0xa60] sm:$0xff] }
 0xe56   : > { %v6064_v0 = vpop.f32.mrb[56].mxu1 }
 0xe57   : > { %v8276_v20 = vadd.f32 %v6064_v0, %v2646_v35  ;;  %v2737_v47 = vpop.f32.mrb[57].mxu1  ;;  %v7157_v0 = vld [vmem:[#allocation2 + $0xa70] sm:$0xff] }
 0xe58   : > { %v8278_v61 = vadd.f32 %v2737_v47, %v2646_v35 }
 0xe59   : > { %v2777_v49 = vmul.f32 %v7153_v50, %v8276_v20  ;;  %v7175_v50 = vld [vmem:[#allocation2 + $0xb90] sm:$0xff] }
 0xe5a   : > { %v6706_v37 = vpack.i.bf16 %v8276_v20, %v8278_v61  ;;  %v2776_v41 = vmul.f32 %v7152_v52, %v8278_v61 }
 0xe5c   : > { %6707 = vrot.lane.b32.xlu0 %v6706_v37, %s7309_s4  ;;  %6090 = vmatprep.mubr.msk.f32.mxu0 %vm437_vm9, %v2776_v41  ;;  %v7159_v41 = vld [vmem:[#allocation2 + $0xa90] sm:$0xff] }
 0xe5e   : > { %v6067_v46 = vpop.f32.mrb[58].mxu1 }
 0xe5f   : > { %v8285_v28 = vadd.f32 %v6067_v46, %v2646_v35  ;;  %v2747_v32 = vpop.f32.mrb[59].mxu1 }
 0xe60   : > { %v8287_v57 = vadd.f32 %v2747_v32, %v2646_v35  ;;  %v7160_v32 = vld [vmem:[#allocation2 + $0xaa0] sm:$0xff] }
 0xe61   : > { %v2779_v31 = vmul.f32 %v7155_v39, %v8285_v28  ;;  %v7177_v39 = vld [vmem:[#allocation2 + $0xbb0] sm:$0xff] }
 0xe62   : > { %v6711_v5 = vpack.i.bf16 %v8285_v28, %v8287_v57  ;;  %v2778_v19 = vmul.f32 %v7154_v54, %v8287_v57  ;;  %v7176_v54 = vld [vmem:[#allocation2 + $0xba0] sm:$0xff] }
 0xe64   : > { %6712 = vrot.lane.b32.xlu1 %v6711_v5, %s7309_s4 }
 0xe66   : > { %v6070_v63 = vpop.f32.mrb[60].mxu1 }
 0xe67   : > { %v8292_v30 = vadd.f32 %v6070_v63, %v2646_v35  ;;  %v2757_v7 = vpop.f32.mrb[61].mxu1  ;;  %v7161_v63 = vld [vmem:[#allocation2 + $0xab0] sm:$0xff] }
 0xe68   : > { %v8294_v11 = vadd.f32 %v2757_v7, %v2646_v35  ;;  %v2785_v7 = vmul.f32 %v7161_v63, %v8276_v20 }
 0xe69   : > { %v2781_v47 = vmul.f32 %v7157_v0, %v8292_v30  ;;  %v7179_v0 = vld [vmem:[#allocation2 + $0xbd0] sm:$0xff] }
 0xe6a   : > { %v8298_v42 = vpack.i.bf16 %v8292_v30, %v8294_v11 }
 0xe6c   : > { %6717 = vrot.lane.b32.xlu1 %v8298_v42, %s7309_s4 }
 0xe6e   : > { %v6073_v40 = vpop.f32.mrb[62].mxu1 }
 0xe6f   : > { %v8302_v3 = vadd.f32 %v6073_v40, %v2646_v35  ;;  %v2767_v48 = vpop.f32.mrb[63].mxu1  ;;  %v7162_v40 = vld [vmem:[#allocation2 + $0xac0] sm:$0xff] }
 0xe70   : > { %v8304_v62 = vadd.f32 %v2767_v48, %v2646_v35  ;;  %6732 = vrot.lane.b32.xlu1 %v6711_v5, %s7310_s5  ;;  %v2780_v35 = vmul.f32 %v7156_v24, %v8294_v11  ;;  %v2784_v5 = vmul.f32 %v7160_v32, %v8278_v61  ;;  %v2786_v48 = vmul.f32 %v7162_v40, %v8287_v57  ;;  %v7178_v24 = vld [vmem:[#allocation2 + $0xbc0] sm:$0xff]  ;;  %v7184_v32 = vld [vmem:[#allocation2 + $0x830] sm:$0xff] }
 0xe71   : > { %v2783_v46 = vmul.f32 %v7159_v41, %v8302_v3  ;;  %v7182_v41 = vld [vmem:[#allocation2 + $0xc00] sm:$0xff] }
 0xe72   : > { %v8309_v12 = vpack.i.bf16 %v8302_v3, %v8304_v62 }
 0xe74   : > { %6722 = vrot.lane.b32.xlu0 %v8309_v12, %s7309_s4 }
 0xe78   : > { %6727 = vrot.lane.b32.xlu0 %v6706_v37, %s7310_s5  ;;  %v7158_v37 = vld [vmem:[#allocation2 + $0xa80] sm:$0xff] }
 0xe79   : > { %v2782_v52 = vmul.f32 %v7158_v37, %v8304_v62  ;;  %v7180_v37 = vld [vmem:[#allocation2 + $0xbe0] sm:$0xff] }
 0xece   : > { %v6708_v51 = vpop.permute.xlu0 %6707 }
 0xecf   : > { %v6710_v55 = vunpack.i.h.bf16 %v6708_v51  ;;  %v6709_v15 = vunpack.i.l.bf16 %v6708_v51  ;;  %v7163_v51 = vld [vmem:[#allocation2 + $0xad0] sm:$0xff] }
 0xed1   : > { %v6457_v2 = vpack.c.bf16 %v6710_v55, %v6709_v15  ;;  %v2787_v55 = vmul.f32 %v7163_v51, %v8285_v28  ;;  %v7164_v15 = vld [vmem:[#allocation2 + $0xae0] sm:$0xff]  ;;  %v7186_v51 = vld [vmem:[#allocation2 + $0x850] sm:$0xff] }
 0xed3   : > { %6459 = vmatprep.subr.msk.bf16.mxu0 %vm7528_vm10, %v6457_v2 }
 0xed4   : > { %6462 = vmatpush3.bf16.xpose.msk.msra.mxu0 %vm7528_vm10, %v6457_v2  ;;  %v2788_v2 = vmul.f32 %v7164_v15, %v8294_v11 }
 0xed6   : > { %v6713_v58 = vpop.permute.xlu1 %6712 }
 0xed7   : > { %v6715_v29 = vunpack.i.h.bf16 %v6713_v58  ;;  %v6714_v60 = vunpack.i.l.bf16 %v6713_v58  ;;  %v7165_v58 = vld [vmem:[#allocation2 + $0xaf0] sm:$0xff] }
 0xed9   : > { %v6463_v9 = vpack.c.bf16 %v6715_v29, %v6714_v60  ;;  %v2789_v29 = vmul.f32 %v7165_v58, %v8292_v30  ;;  %v7166_v60 = vld [vmem:[#allocation2 + $0xb00] sm:$0xff] }
 0xedb   : > { %6465 = vmatprep.subr.msk.bf16.mxu0 %vm7528_vm10, %v6463_v9 }
 0xedc   : > { %6468 = vmatpush3.bf16.xpose.msk.msra.mxu0 %vm7528_vm10, %v6463_v9  ;;  %v2790_v9 = vmul.f32 %v7166_v60, %v8304_v62  ;;  %v7188_v60 = vld [vmem:[#allocation2 + $0x840] sm:$0xff] }
 0xede   : > { %v6718_v18 = vpop.permute.xlu1 %6717 }
 0xedf   : > { %v6720_v38 = vunpack.i.h.bf16 %v6718_v18  ;;  %v6719_v17 = vunpack.i.l.bf16 %v6718_v18  ;;  %v7167_v18 = vld [vmem:[#allocation2 + $0xb10] sm:$0xff] }
 0xee1   : > { %v6469_v14 = vpack.c.bf16 %v6720_v38, %v6719_v17  ;;  %v2791_v38 = vmul.f32 %v7167_v18, %v8302_v3  ;;  %v7168_v17 = vld [vmem:[#allocation2 + $0xb20] sm:$0xff] }
 0xee2   : > { %v6733_v10 = vpop.permute.xlu1 %6732 }
 0xee3   : > { %6471 = vmatprep.subr.msk.bf16.mxu0 %vm7528_vm10, %v6469_v14  ;;  %v6735_v59 = vunpack.i.h.bf16 %v6733_v10  ;;  %v6734_v4 = vunpack.i.l.bf16 %v6733_v10 }
 0xee4   : > { %6474 = vmatpush3.bf16.xpose.msk.msra.mxu0 %vm7528_vm10, %v6469_v14  ;;  %v2792_v14 = vmul.f32 %v7168_v17, %v8278_v61 }
 0xee5   : > { %v6485_v44 = vpack.c.bf16 %v6735_v59, %v6734_v4  ;;  %v7172_v59 = vld [vmem:[#allocation2 + $0xb60] sm:$0xff] }
 0xee6   : > { %v6723_v26 = vpop.permute.xlu0 %6722  ;;  %v2796_v4 = vmul.f32 %v7172_v59, %v8294_v11 }
 0xee7   : > { %v6725_v33 = vunpack.i.h.bf16 %v6723_v26  ;;  %v6724_v23 = vunpack.i.l.bf16 %v6723_v26  ;;  %v7169_v26 = vld [vmem:[#allocation2 + $0xb30] sm:$0xff] }
 0xee9   : > { %v6475_v13 = vpack.c.bf16 %v6725_v33, %v6724_v23  ;;  %v2793_v33 = vmul.f32 %v7169_v26, %v8276_v20  ;;  %v7170_v23 = vld [vmem:[#allocation2 + $0xb40] sm:$0xff] }
 0xeea   : > { %v6728_v16 = vpop.permute.xlu0 %6727  ;;  %v2794_v10 = vmul.f32 %v7170_v23, %v8287_v57  ;;  %v7189_v26 = vld [vmem:[#allocation2 + $0x880] sm:$0xff] }
 0xeeb   : > { %v6730_v43 = vunpack.i.h.bf16 %v6728_v16  ;;  %v6729_v8 = vunpack.i.l.bf16 %v6728_v16  ;;  %6477 = vmatprep.subr.msk.bf16.mxu0 %vm7528_vm10, %v6475_v13  ;;  %v7190_v23 = vld [vmem:[#allocation2 + $0x860] sm:$0xff] }
 0xeec   : > { %6480 = vmatpush3.bf16.xpose.msk.msra.mxu0 %vm7528_vm10, %v6475_v13  ;;  %v7171_v13 = vld [vmem:[#allocation2 + $0xb50] sm:$0xff] }
 0xeed   : > { %v6481_v34 = vpack.c.bf16 %v6730_v43, %v6729_v8  ;;  %v2795_v16 = vmul.f32 %v7171_v13, %v8285_v28  ;;  %v7173_v43 = vld [vmem:[#allocation2 + $0xb70] sm:$0xff] }
 0xeee   : > { %v2797_v8 = vmul.f32 %v7173_v43, %v8292_v30  ;;  %v7191_v43 = vld [vmem:[#allocation2 + $0x8a0] sm:$0xff] }
 0xeef   : > { %6482 = vmatprep.subr.bf16.mxu0 %v6481_v34  ;;  %6629 = vmatprep.subr.bf16.mxu1 %v6481_v34 }
 0xef0   : > { %6633 = vmatpush3.bf16.msra.mxu1 %v6481_v34 }
 0xef1   : > { %6630 = vmatprep.subr.bf16.mxu1 %v6485_v44 }
 0xef3   : > { %6091 = vmatmul.mubr.msk.f32.vlgmr.msra.gmra.mrb[64].mxu0 %vm437_vm9, %v2777_v49  ;;  %v2799_v49 = vmul.f32 %v7175_v50, %v8302_v3 }
 0xef4   : > { %6093 = vmatprep.mubr.msk.f32.mxu0 %vm437_vm9, %v2778_v19  ;;  %6484 = vmatpush3.bf16.msra.mxu0 %v6481_v34  ;;  %v7174_v34 = vld [vmem:[#allocation2 + $0xb80] sm:$0xff]  ;;  %v2800_v19 = vmul.f32 %v7176_v54, %v8278_v61  ;;  %v2804_v61 = vmul.f32 %v7180_v37, %v8294_v11 }
 0xef5   : > { %6634 = vmatpush3.bf16.msra.mxu1 %v6485_v44  ;;  %6486 = vmatprep.subr.bf16.mxu0 %v6485_v44 }
 0xef7   : > { %6094 = vmatmul.mubr.msk.f32.gmra.mrb[66].mxu0 %vm437_vm9, %v2779_v31  ;;  %v2801_v31 = vmul.f32 %v7177_v39, %v8276_v20  ;;  %v7193_v39 = vld [vmem:[#allocation2 + $0x8c0] sm:$0xff] }
 0xef8   : > { %6096 = vmatprep.mubr.msk.f32.mxu0 %vm437_vm9, %v2780_v35  ;;  %6488 = vmatpush3.bf16.msra.mxu0 %v6485_v44  ;;  %v2798_v44 = vmul.f32 %v7174_v34, %v8304_v62  ;;  %v2802_v35 = vmul.f32 %v7178_v24, %v8287_v57  ;;  %v2806_v57 = vmul.f32 %v7182_v41, %v8304_v62  ;;  %v7192_v34 = vld [vmem:[#allocation2 + $0x890] sm:$0xff] }
 0xef9   : > { %v7194_v24 = vld [vmem:[#allocation2 + $0x8b0] sm:$0xff] }
 0xefa   : > { %v7196_v41 = vld [vmem:[#allocation2 + $0x8d0] sm:$0xff] }
 0xefb   : > { %6097 = vmatmul.mubr.msk.f32.gmra.mrb[68].mxu0 %vm437_vm9, %v2781_v47  ;;  %v2803_v47 = vmul.f32 %v7179_v0, %v8285_v28 }
 0xefc   : > { %6099 = vmatprep.mubr.msk.f32.mxu0 %vm437_vm9, %v2782_v52  ;;  %v7181_v52 = vld [vmem:[#allocation2 + $0xbf0] sm:$0xff] }
 0xefd   : > { %v2805_v20 = vmul.f32 %v7181_v52, %v8292_v30  ;;  %v7195_v52 = vld [vmem:[#allocation2 + $0x8e0] sm:$0xff] }
 0xeff   : > { %6100 = vmatmul.mubr.msk.f32.gmra.mrb[70].mxu0 %vm437_vm9, %v2783_v46  ;;  %v7183_v46 = vld [vmem:[#allocation2 + $0xc10] sm:$0xff] }
 0xf00   : > { %6102 = vmatprep.mubr.msk.f32.mxu0 %vm437_vm9, %v2784_v5  ;;  %v2807_v28 = vmul.f32 %v7183_v46, %v8302_v3 }
 0xf03   : > { %6103 = vmatmul.mubr.msk.f32.gmra.mrb[72].mxu0 %vm437_vm9, %v2785_v7  ;;  %v7185_v7 = vld [vmem:[#allocation2 + $0x820] sm:$0xff] }
 0xf04   : > { %6105 = vmatprep.mubr.msk.f32.mxu0 %vm437_vm9, %v2786_v48 }
 0xf07   : > { %6106 = vmatmul.mubr.msk.f32.gmra.mrb[74].mxu0 %vm437_vm9, %v2787_v55 }
 0xf08   : > { %6108 = vmatprep.mubr.msk.f32.mxu0 %vm437_vm9, %v2788_v2  ;;  %v7187_v2 = vld [vmem:[#allocation2 + $0x870] sm:$0xff] }
 0xf0b   : > { %6109 = vmatmul.mubr.msk.f32.gmra.mrb[76].mxu0 %vm437_vm9, %v2789_v29 }
 0xf0c   : > { %6111 = vmatprep.mubr.msk.f32.mxu0 %vm437_vm9, %v2790_v9 }
 0xf0f   : > { %6112 = vmatmul.mubr.msk.f32.gmra.mrb[78].mxu0 %vm437_vm9, %v2791_v38 }
 0xf10   : > { %6114 = vmatprep.mubr.msk.f32.mxu0 %vm437_vm9, %v2792_v14 }
 0xf13   : > { %6115 = vmatmul.mubr.msk.f32.gmra.mrb[80].mxu0 %vm437_vm9, %v2793_v33 }
 0xf14   : > { %6117 = vmatprep.mubr.msk.f32.mxu0 %vm437_vm9, %v2794_v10 }
 0xf17   : > { %6118 = vmatmul.mubr.msk.f32.gmra.mrb[82].mxu0 %vm437_vm9, %v2795_v16 }
 0xf18   : > { %6120 = vmatprep.mubr.msk.f32.mxu0 %vm437_vm9, %v2796_v4 }
 0xf1b   : > { %6121 = vmatmul.mubr.msk.f32.gmra.mrb[84].mxu0 %vm437_vm9, %v2797_v8 }
 0xf1c   : > { %6123 = vmatprep.mubr.msk.f32.mxu0 %vm437_vm9, %v2798_v44 }
 0xf1f   : > { %6124 = vmatmul.mubr.msk.f32.gmra.mrb[86].mxu0 %vm437_vm9, %v2799_v49 }
 0xf20   : > { %6126 = vmatprep.mubr.msk.f32.mxu0 %vm437_vm9, %v2800_v19 }
 0xf23   : > { %6127 = vmatmul.mubr.msk.f32.gmra.mrb[88].mxu0 %vm437_vm9, %v2801_v31 }
 0xf24   : > { %6129 = vmatprep.mubr.msk.f32.mxu0 %vm437_vm9, %v2802_v35 }
 0xf27   : > { %6130 = vmatmul.mubr.msk.f32.gmra.mrb[90].mxu0 %vm437_vm9, %v2803_v47 }
 0xf28   : > { %6132 = vmatprep.mubr.msk.f32.mxu0 %vm437_vm9, %v2804_v61 }
 0xf2b   : > { %6133 = vmatmul.mubr.msk.f32.gmra.mrb[92].mxu0 %vm437_vm9, %v2805_v20 }
 0xf2c   : > { %6135 = vmatprep.mubr.msk.f32.mxu0 %vm437_vm9, %v2806_v57 }
 0xf2f   : > { %6136 = vmatmul.mubr.msk.f32.gmra.mrb[94].mxu0 %vm437_vm9, %v2807_v28 }
 0xfc6   : > { %v6092_v11 = vpop.f32.mrb[64].mxu0 }
 0xfc7   : > { %v8392_v5 = vadd.f32 %v7184_v32, %v6092_v11  ;;  %v3010_v63 = vpop.f32.mrb[65].mxu0 }
 0xfc8   : > { %v8394_v40 = vadd.f32 %v7185_v7, %v3010_v63  ;;  %v7197_v63 = vld [vmem:[#allocation2 + $0x900] sm:$0xff] }
 0xfc9   : > { %v3172_v30 = vsel %vm225_vm0, %v8392_v5, -inf }
 0xfca   : > { %3173 = vmax.xlane.f32.xlu1 %v3172_v30  ;;  %v6095_v62 = vpop.f32.mrb[66].mxu0  ;;  %v3169_v3 = vsel %vm225_vm0, %v8394_v40, -inf  ;;  %v7198_v30 = vld [vmem:[#allocation2 + $0x8f0] sm:$0xff] }
 0xfcb   : > { %v3020_v48 = vpop.f32.mrb[67].mxu0  ;;  %v8398_v55 = vadd.f32 %v7186_v51, %v6095_v62 }
 0xfcc   : > { %v8404_v9 = vadd.f32 %v7188_v60, %v3020_v48  ;;  %v7200_v60 = vld [vmem:[#allocation2 + $0x910] sm:$0xff] }
 0xfcd   : > { %v3178_v38 = vsel %vm225_vm0, %v8398_v55, -inf }
 0xfce   : > { %v6098_v15 = vpop.f32.mrb[68].mxu0  ;;  %3170 = vmax.xlane.f32.xlu1 %v3169_v3  ;;  %v3175_v13 = vsel %vm225_vm0, %v8404_v9, -inf }
 0xfcf   : > { %v8402_v58 = vadd.f32 %v7187_v2, %v6098_v15  ;;  %v3030_v29 = vpop.f32.mrb[69].mxu0  ;;  %v7199_v15 = vld [vmem:[#allocation2 + $0x930] sm:$0xff] }
 0xfd0   : > { %v8412_v10 = vadd.f32 %v7190_v23, %v3030_v29 }
 0xfd1   : > { %v3184_v18 = vsel %vm225_vm0, %v8402_v58, -inf }
 0xfd2   : > { %3185 = vmax.xlane.f32.xlu0 %v3184_v18  ;;  %v6101_v17 = vpop.f32.mrb[70].mxu0  ;;  %3179 = vmax.xlane.f32.xlu1 %v3178_v38  ;;  %v3181_v50 = vsel %vm225_vm0, %v8412_v10, -inf }
 0xfd3   : > { %v3040_v14 = vpop.f32.mrb[71].mxu0  ;;  %v8420_v44 = vadd.f32 %v7192_v34, %v6101_v17 }
 0xfd4   : > { %v8410_v33 = vadd.f32 %v7189_v26, %v3040_v14  ;;  %v7201_v14 = vld [vmem:[#allocation2 + $0x920] sm:$0xff] }
 0xfd5   : > { %v3190_v0 = vsel %vm225_vm0, %v8420_v44, -inf }
 0xfd6   : > { %v6104_v16 = vpop.f32.mrb[72].mxu0  ;;  %3176 = vmax.xlane.f32.xlu1 %v3175_v13  ;;  %v3187_v59 = vsel %vm225_vm0, %v8410_v33, -inf }
 0xfd7   : > { %v3050_v4 = vpop.f32.mrb[73].mxu0  ;;  %3188 = vmax.xlane.f32.xlu0 %v3187_v59  ;;  %v8428_v35 = vadd.f32 %v7194_v24, %v6104_v16  ;;  %v7202_v59 = vld [vmem:[#allocation2 + $0x950] sm:$0xff] }
 0xfd8   : > { %v8418_v8 = vadd.f32 %v7191_v43, %v3050_v4 }
 0xfd9   : > { %v3196_v46 = vsel %vm225_vm0, %v8428_v35, -inf }
 0xfda   : > { %v6107_v49 = vpop.f32.mrb[74].mxu0  ;;  %3182 = vmax.xlane.f32.xlu1 %v3181_v50  ;;  %v3193_v54 = vsel %vm225_vm0, %v8418_v8, -inf  ;;  %v7203_v50 = vld [vmem:[#allocation2 + $0x970] sm:$0xff] }
 0xfdb   : > { %v3060_v19 = vpop.f32.mrb[75].mxu0  ;;  %3194 = vmax.xlane.f32.xlu0 %v3193_v54  ;;  %v8436_v57 = vadd.f32 %v7196_v41, %v6107_v49 }
 0xfdc   : > { %v8426_v31 = vadd.f32 %v7193_v39, %v3060_v19  ;;  %v7204_v39 = vld [vmem:[#allocation2 + $0x940] sm:$0xff] }
 0xfdd   : > { %v3202_v48 = vsel %vm225_vm0, %v8436_v57, -inf }
 0xfde   : > { %v6110_v47 = vpop.f32.mrb[76].mxu0  ;;  %3191 = vmax.xlane.f32.xlu1 %v3190_v0  ;;  %v3199_v37 = vsel %vm225_vm0, %v8426_v31, -inf }
 0xfdf   : > { %v3070_v61 = vpop.f32.mrb[77].mxu0  ;;  %3200 = vmax.xlane.f32.xlu0 %v3199_v37  ;;  %v8444_v62 = vadd.f32 %v7198_v30, %v6110_v47  ;;  %v7205_v37 = vld [vmem:[#allocation2 + $0x990] sm:$0xff] }
 0xfe0   : > { %v8434_v20 = vadd.f32 %v7195_v52, %v3070_v61 }
 0xfe1   : > { %v3208_v38 = vsel %vm225_vm0, %v8444_v62, -inf }
 0xfe2   : > { %v6113_v28 = vpop.f32.mrb[78].mxu0  ;;  %3197 = vmax.xlane.f32.xlu1 %v3196_v46  ;;  %v3205_v11 = vsel %vm225_vm0, %v8434_v20, -inf  ;;  %v7206_v46 = vld [vmem:[#allocation2 + $0x960] sm:$0xff] }
 0xfe3   : > { %v3080_v32 = vpop.f32.mrb[79].mxu0  ;;  %3206 = vmax.xlane.f32.xlu0 %v3205_v11  ;;  %v8452_v18 = vadd.f32 %v7200_v60, %v6113_v28 }
 0xfe4   : > { %v8442_v7 = vadd.f32 %v7197_v63, %v3080_v32  ;;  %v7207_v63 = vld [vmem:[#allocation2 + $0x9b0] sm:$0xff] }
 0xfe5   : > { %v3214_v16 = vsel %vm225_vm0, %v8452_v18, -inf }
 0xfe6   : > { %v6116_v51 = vpop.f32.mrb[80].mxu0  ;;  %3203 = vmax.xlane.f32.xlu1 %v3202_v48  ;;  %v3211_v3 = vsel %vm225_vm0, %v8442_v7, -inf }
 0xfe7   : > { %v8450_v2 = vadd.f32 %v7199_v15, %v6116_v51  ;;  %v3090_v29 = vpop.f32.mrb[81].mxu0  ;;  %3212 = vmax.xlane.f32.xlu0 %v3211_v3  ;;  %v7208_v3 = vld [vmem:[#allocation2 + $0x980] sm:$0xff] }
 0xfe8   : > { %v8458_v26 = vadd.f32 %v7201_v14, %v3090_v29 }
 0xfe9   : > { %v3220_v17 = vsel %vm225_vm0, %v8450_v2, -inf }
 0xfea   : > { %v6119_v23 = vpop.f32.mrb[82].mxu0  ;;  %3209 = vmax.xlane.f32.xlu1 %v3208_v38  ;;  %v3217_v34 = vsel %vm225_vm0, %v8458_v26, -inf  ;;  %v7209_v38 = vld [vmem:[#allocation2 + $0x9d0] sm:$0xff] }
 0xfeb   : > { %v3100_v13 = vpop.f32.mrb[83].mxu0  ;;  %3221 = vmax.xlane.f32.xlu0 %v3220_v17  ;;  %v8462_v4 = vadd.f32 %v7202_v59, %v6119_v23 }
 0xfec   : > { %v8470_v24 = vadd.f32 %v7204_v39, %v3100_v13  ;;  %v7210_v13 = vld [vmem:[#allocation2 + $0x9a0] sm:$0xff] }
 0xfed   : > { %v3226_v47 = vsel %vm225_vm0, %v8462_v4, -inf  ;;  %v7212_v39 = vld [vmem:[#allocation2 + $0x9c0] sm:$0xff] }
 0xfee   : > { %v6122_v43 = vpop.f32.mrb[84].mxu0  ;;  %3215 = vmax.xlane.f32.xlu1 %v3214_v16  ;;  %v3223_v32 = vsel %vm225_vm0, %v8470_v24, -inf }
 0xfef   : > { %v8466_v49 = vadd.f32 %v7203_v50, %v6122_v43  ;;  %v3110_v54 = vpop.f32.mrb[85].mxu0  ;;  %3218 = vmax.xlane.f32.xlu0 %v3217_v34  ;;  %v7211_v34 = vld [vmem:[#allocation2 + $0x9f0] sm:$0xff] }
 0xff0   : > { %v8478_v28 = vadd.f32 %v7206_v46, %v3110_v54 }
 0xff1   : > { %v3232_v19 = vsel %vm225_vm0, %v8466_v49, -inf }
 0xff2   : > { %v6125_v0 = vpop.f32.mrb[86].mxu0  ;;  %3233 = vmax.xlane.f32.xlu1 %v3232_v19  ;;  %v3229_v60 = vsel %vm225_vm0, %v8478_v28, -inf }
 0xff3   : > { %v8474_v61 = vadd.f32 %v7205_v37, %v6125_v0  ;;  %v3120_v52 = vpop.f32.mrb[87].mxu0  ;;  %3227 = vmax.xlane.f32.xlu0 %v3226_v47 }
 0xff4   : > { %v8486_v15 = vadd.f32 %v7208_v3, %v3120_v52  ;;  %v7213_v52 = vld [vmem:[#allocation2 + $0xa10] sm:$0xff] }
 0xff5   : > { %v3238_v41 = vsel %vm225_vm0, %v8474_v61, -inf }
 0xff6   : > { %v6128_v11 = vpop.f32.mrb[88].mxu0  ;;  %3239 = vmax.xlane.f32.xlu1 %v3238_v41  ;;  %v3235_v43 = vsel %vm225_vm0, %v8486_v15, -inf }
 0xff7   : > { %v8482_v30 = vadd.f32 %v7207_v63, %v6128_v11  ;;  %v3130_v48 = vpop.f32.mrb[89].mxu0  ;;  %3224 = vmax.xlane.f32.xlu0 %v3223_v32  ;;  %v7214_v32 = vld [vmem:[#allocation2 + $0x9e0] sm:$0xff] }
 0xff8   : > { %v8494_v16 = vadd.f32 %v7210_v13, %v3130_v48 }
 0xff9   : > { %v3244_v51 = vsel %vm225_vm0, %v8482_v30, -inf }
 0xffa   : > { %v6131_v29 = vpop.f32.mrb[90].mxu0  ;;  %3245 = vmax.xlane.f32.xlu1 %v3244_v51  ;;  %v3241_v37 = vsel %vm225_vm0, %v8494_v16, -inf  ;;  %v7215_v51 = vld [vmem:[#allocation2 + $0xa00] sm:$0xff] }
 0xffb   : > { %v8490_v17 = vadd.f32 %v7209_v38, %v6131_v29  ;;  %v3140_v14 = vpop.f32.mrb[91].mxu0  ;;  %3230 = vmax.xlane.f32.xlu0 %v3229_v60 }
 0xffc   : > { %v8502_v0 = vadd.f32 %v7212_v39, %v3140_v14 }
 0xffd   : > { %v3250_v23 = vsel %vm225_vm0, %v8490_v17, -inf }
 0xffe   : > { %v6134_v59 = vpop.f32.mrb[92].mxu0  ;;  %3251 = vmax.xlane.f32.xlu1 %v3250_v23  ;;  %v3247_v48 = vsel %vm225_vm0, %v8502_v0, -inf }
 0xfff   : > { %v8498_v50 = vadd.f32 %v7211_v34, %v6134_v59  ;;  %v3150_v54 = vpop.f32.mrb[93].mxu0  ;;  %3236 = vmax.xlane.f32.xlu0 %v3235_v43 }
0x1000   : > { %v8510_v63 = vadd.f32 %v7214_v32, %v3150_v54 }
0x1001   : > { %v3256_v19 = vsel %vm225_vm0, %v8498_v50, -inf }
0x1002   : > { %v6137_v47 = vpop.f32.mrb[94].mxu0  ;;  %3257 = vmax.xlane.f32.xlu1 %v3256_v19  ;;  %v3253_v29 = vsel %vm225_vm0, %v8510_v63, -inf }
0x1003   : > { %v8506_v41 = vadd.f32 %v7213_v52, %v6137_v47  ;;  %v3160_v46 = vpop.f32.mrb[95].mxu0  ;;  %3242 = vmax.xlane.f32.xlu0 %v3241_v37 }
0x1004   : > { %v8514_v3 = vadd.f32 %v7215_v51, %v3160_v46 }
0x1005   : > { %v3262_v11 = vsel %vm225_vm0, %v8506_v41, -inf }
0x1006   : > { %3263 = vmax.xlane.f32.xlu1 %v3262_v11  ;;  %v3259_v60 = vsel %vm225_vm0, %v8514_v3, -inf }
0x1007   : > { %3248 = vmax.xlane.f32.xlu0 %v3247_v48 }
0x100b   : > { %3254 = vmax.xlane.f32.xlu0 %v3253_v29 }
0x100f   : > { %3260 = vmax.xlane.f32.xlu0 %v3259_v60 }
0x1025   : > { %6737 = vrot.lane.b32.xlu0 %v8298_v42, %s7310_s5 }
0x1057   : > { %v3174_v38 = vpop.xlane.xlu1 %3173 }
0x105b   : > { %v8522_v14 = vpop.xlane.xlu1 %3170 }
0x105f   : > { %v3186_v23 = vpop.xlane.xlu0 %3185  ;;  %v8524_v13 = vpop.xlane.xlu1 %3179 }
0x1060   : > { %v3270_v59 = vsub.f32 %v8402_v58, %v3186_v23 }
0x1062   : > { %v3307_v43 = vmul.f32 1.442695, %v3270_v59 }
0x1063   : > { %v3177_v34 = vpop.xlane.xlu1 %3176 }
0x1064   : > { %6938 = vpow2.f32 %v3307_v43  ;;  %v3189_v54 = vpop.xlane.xlu0 %3188 }
0x1065   : > { %v3271_v19 = vsub.f32 %v8410_v33, %v3189_v54 }
0x1067   : > { %v3183_v39 = vpop.xlane.xlu1 %3182  ;;  %v3309_v52 = vmul.f32 1.442695, %v3271_v19 }
0x1068   : > { %v3269_v47 = vsub.f32 %v8412_v10, %v3183_v39  ;;  %v3195_v37 = vpop.xlane.xlu0 %3194 }
0x1069   : > { %v3273_v46 = vsub.f32 %v8418_v8, %v3195_v37  ;;  %v3266_v8 = vsub.f32 %v8392_v5, %v3174_v38 }
0x106a   : > { %v3305_v42 = vmul.f32 1.442695, %v3269_v47 }
0x106b   : > { %v3192_v11 = vpop.xlane.xlu1 %3191  ;;  %v3313_v51 = vmul.f32 1.442695, %v3273_v46  ;;  %v3299_v37 = vmul.f32 1.442695, %v3266_v8 }
0x106c   : > { %6940 = vpow2.f32 %v3305_v42  ;;  %v3272_v32 = vsub.f32 %v8420_v44, %v3192_v11  ;;  %v3201_v48 = vpop.xlane.xlu0 %3200 }
0x106d   : > { %6942 = vpow2.f32 %v3309_v52  ;;  %v3275_v44 = vsub.f32 %v8426_v31, %v3201_v48  ;;  %v3267_v52 = vsub.f32 %v8404_v9, %v3177_v34 }
0x106e   : > { %v8531_v58 = vpop.eup %6938  ;;  %v3311_v29 = vmul.f32 1.442695, %v3272_v32 }
0x106f   : > { %v3198_v60 = vpop.xlane.xlu1 %3197  ;;  %v3376_v33 = vsel %vm225_vm0, %v8531_v58, 0.0  ;;  %v3317_v42 = vmul.f32 1.442695, %v3275_v44 }
0x1070   : > { %6944 = vpow2.f32 %v3311_v29  ;;  %v3274_v10 = vsub.f32 %v8428_v35, %v3198_v60  ;;  %v3207_v23 = vpop.xlane.xlu0 %3206  ;;  %3377 = vadd.xlane.f32.xlu1 %v3376_v33 }
0x1071   : > { %v3277_v59 = vsub.f32 %v8434_v20, %v3207_v23  ;;  %6946 = vpow2.f32 %v3313_v51 }
0x1072   : > { %v3315_v43 = vmul.f32 1.442695, %v3274_v10 }
0x1073   : > { %v3321_v54 = vmul.f32 1.442695, %v3277_v59  ;;  %v3204_v19 = vpop.xlane.xlu1 %3203 }
0x1074   : > { %6948 = vpow2.f32 %v3315_v43  ;;  %v3276_v39 = vsub.f32 %v8436_v57, %v3204_v19  ;;  %v3213_v47 = vpop.xlane.xlu0 %3212  ;;  %v3301_v57 = vmul.f32 1.442695, %v3267_v52 }
0x1075   : > { %6950 = vpow2.f32 %v3321_v54 }
0x1076   : > { %v8541_v35 = vpop.eup %6940  ;;  %v3319_v5 = vmul.f32 1.442695, %v3276_v39 }
0x1077   : > { %v3210_v38 = vpop.xlane.xlu1 %3209  ;;  %v3373_v20 = vsel %vm225_vm0, %v8541_v35, 0.0  ;;  %v8545_v31 = vpop.eup %6942 }
0x1078   : > { %6952 = vpow2.f32 %v3319_v5  ;;  %v3278_v46 = vsub.f32 %v8444_v62, %v3210_v38  ;;  %v3222_v11 = vpop.xlane.xlu0 %3221  ;;  %3374 = vadd.xlane.f32.xlu0 %v3373_v20  ;;  %v3379_v51 = vsel %vm225_vm0, %v8545_v31, 0.0 }
0x1079   : > { %6954 = vpow2.f32 %v3299_v37  ;;  %v3282_v9 = vsub.f32 %v8450_v2, %v3222_v11  ;;  %v3279_v2 = vsub.f32 %v8442_v7, %v3213_v47 }
0x107a   : > { %v8549_v34 = vpop.eup %6944  ;;  %6956 = vpow2.f32 %v3317_v42  ;;  %v3323_v32 = vmul.f32 1.442695, %v3278_v46 }
0x107b   : > { %v3216_v48 = vpop.xlane.xlu1 %3215  ;;  %v3382_v29 = vsel %vm225_vm0, %v8549_v34, 0.0  ;;  %v8555_v60 = vpop.eup %6946  ;;  %6958 = vpow2.f32 %v3301_v57  ;;  %v3331_v10 = vmul.f32 1.442695, %v3282_v9  ;;  %v3325_v19 = vmul.f32 1.442695, %v3279_v2 }
0x107c   : > { %v3280_v62 = vsub.f32 %v8452_v18, %v3216_v48  ;;  %v3219_v33 = vpop.xlane.xlu0 %3218  ;;  %3380 = vadd.xlane.f32.xlu0 %v3379_v51  ;;  %3383 = vadd.xlane.f32.xlu1 %v3382_v29  ;;  %6960 = vpow2.f32 %v3323_v32  ;;  %v3385_v44 = vsel %vm225_vm0, %v8555_v60, 0.0 }
0x107d   : > { %v3281_v59 = vsub.f32 %v8458_v26, %v3219_v33  ;;  %6962 = vpow2.f32 %v3331_v10 }
0x107e   : > { %v8559_v23 = vpop.eup %6948  ;;  %v3327_v8 = vmul.f32 1.442695, %v3280_v62 }
0x107f   : > { %v3388_v43 = vsel %vm225_vm0, %v8559_v23, 0.0  ;;  %v8566_v18 = vpop.eup %6950  ;;  %v3329_v39 = vmul.f32 1.442695, %v3281_v59 }
0x1080   : > { %v3228_v54 = vpop.xlane.xlu0 %3227  ;;  %3386 = vadd.xlane.f32.xlu0 %v3385_v44  ;;  %3389 = vadd.xlane.f32.xlu1 %v3388_v43  ;;  %6964 = vpow2.f32 %v3327_v8  ;;  %v3397_v37 = vsel %vm225_vm0, %v8566_v18, 0.0 }
0x1081   : > { %v3284_v47 = vsub.f32 %v8462_v4, %v3228_v54  ;;  %6966 = vpow2.f32 %v3325_v19 }
0x1082   : > { %v8568_v7 = vpop.eup %6952  ;;  %6968 = vpow2.f32 %v3329_v39 }
0x1083   : > { %v8571_v26 = vpop.eup %6954  ;;  %v3394_v52 = vsel %vm225_vm0, %v8568_v7, 0.0  ;;  %v3335_v38 = vmul.f32 1.442695, %v3284_v47 }
0x1084   : > { %v8577_v42 = vpop.eup %6956  ;;  %v3225_v5 = vpop.xlane.xlu0 %3224  ;;  %3398 = vadd.xlane.f32.xlu0 %v3397_v37  ;;  %3395 = vadd.xlane.f32.xlu1 %v3394_v52  ;;  %v3364_v4 = vsel %vm225_vm0, %v8571_v26, 0.0 }
0x1085   : > { %v3283_v20 = vsub.f32 %v8470_v24, %v3225_v5  ;;  %v8580_v46 = vpop.eup %6958  ;;  %v3391_v11 = vsel %vm225_vm0, %v8577_v42, 0.0  ;;  %6970 = vpow2.f32 %v3335_v38 }
0x1086   : > { %v8586_v57 = vpop.eup %6960  ;;  %v3367_v24 = vsel %vm225_vm0, %v8580_v46, 0.0 }
0x1087   : > { %v3333_v32 = vmul.f32 1.442695, %v3283_v20  ;;  %v8589_v51 = vpop.eup %6962  ;;  %v3400_v29 = vsel %vm225_vm0, %v8586_v57, 0.0 }
0x1088   : > { %v3231_v9 = vpop.xlane.xlu0 %3230  ;;  %3365 = vadd.xlane.f32.xlu0 %v3364_v4  ;;  %3392 = vadd.xlane.f32.xlu1 %v3391_v11 }
0x1089   : > { %v3285_v48 = vsub.f32 %v8478_v28, %v3231_v9  ;;  %6972 = vpow2.f32 %v3333_v32  ;;  %v3412_v28 = vsel %vm225_vm0, %v8589_v51, 0.0 }
0x108a   : > { %v8595_v62 = vpop.eup %6964 }
0x108b   : > { %v3337_v2 = vmul.f32 1.442695, %v3285_v48  ;;  %v8598_v8 = vpop.eup %6966  ;;  %v3406_v59 = vsel %vm225_vm0, %v8595_v62, 0.0 }
0x108c   : > { %v3237_v33 = vpop.xlane.xlu0 %3236  ;;  %3368 = vadd.xlane.f32.xlu0 %v3367_v24  ;;  %3401 = vadd.xlane.f32.xlu1 %v3400_v29  ;;  %v8604_v44 = vpop.eup %6968  ;;  %v3403_v39 = vsel %vm225_vm0, %v8598_v8, 0.0 }
0x108d   : > { %v3287_v10 = vsub.f32 %v8486_v15, %v3237_v33  ;;  %6974 = vpow2.f32 %v3337_v2  ;;  %v3409_v15 = vsel %vm225_vm0, %v8604_v44, 0.0 }
0x108f   : > { %v3341_v54 = vmul.f32 1.442695, %v3287_v10  ;;  %v8611_v47 = vpop.eup %6970 }
0x1090   : > { %v3243_v43 = vpop.xlane.xlu0 %3242  ;;  %3413 = vadd.xlane.f32.xlu0 %v3412_v28  ;;  %3407 = vadd.xlane.f32.xlu1 %v3406_v59  ;;  %v3418_v38 = vsel %vm225_vm0, %v8611_v47, 0.0 }
0x1091   : > { %v3289_v19 = vsub.f32 %v8494_v16, %v3243_v43  ;;  %6976 = vpow2.f32 %v3341_v54 }
0x1093   : > { %v3345_v52 = vmul.f32 1.442695, %v3289_v19  ;;  %v8616_v20 = vpop.eup %6972 }
0x1094   : > { %v3249_v37 = vpop.xlane.xlu0 %3248  ;;  %3410 = vadd.xlane.f32.xlu0 %v3409_v15  ;;  %3404 = vadd.xlane.f32.xlu1 %v3403_v39  ;;  %v3415_v9 = vsel %vm225_vm0, %v8616_v20, 0.0 }
0x1095   : > { %v3291_v5 = vsub.f32 %v8502_v0, %v3249_v37  ;;  %6978 = vpow2.f32 %v3345_v52  ;;  %v3234_v37 = vpop.xlane.xlu1 %3233 }
0x1097   : > { %v3349_v4 = vmul.f32 1.442695, %v3291_v5  ;;  %v8621_v32 = vpop.eup %6974 }
0x1098   : > { %v3255_v16 = vpop.xlane.xlu0 %3254  ;;  %3419 = vadd.xlane.f32.xlu0 %v3418_v38  ;;  %v3421_v29 = vsel %vm225_vm0, %v8621_v32, 0.0  ;;  %v3265_v38 = vsub.f32 %v8394_v40, %v8522_v14 }
0x1099   : > { %v3293_v11 = vsub.f32 %v8510_v63, %v3255_v16  ;;  %6980 = vpow2.f32 %v3349_v4  ;;  %v3240_v16 = vpop.xlane.xlu1 %3239 }
0x109a   : > { %v3297_v4 = vmul.f32 1.442695, %v3265_v38 }
0x109b   : > { %v3353_v0 = vmul.f32 1.442695, %v3293_v11  ;;  %v8626_v33 = vpop.eup %6976  ;;  %v3268_v11 = vsub.f32 %v8398_v55, %v8524_v13 }
0x109c   : > { %v3261_v48 = vpop.xlane.xlu0 %3260  ;;  %3416 = vadd.xlane.f32.xlu0 %v3415_v9  ;;  %v3427_v43 = vsel %vm225_vm0, %v8626_v33, 0.0 }
0x109d   : > { %v3295_v24 = vsub.f32 %v8514_v3, %v3261_v48  ;;  %6982 = vpow2.f32 %v3353_v0  ;;  %v3246_v9 = vpop.xlane.xlu1 %3245  ;;  %v3303_v48 = vmul.f32 1.442695, %v3268_v11  ;;  %v3286_v0 = vsub.f32 %v8466_v49, %v3234_v37 }
0x109e   : > { %v3290_v40 = vsub.f32 %v8482_v30, %v3246_v9 }
0x109f   : > { %v3357_v28 = vmul.f32 1.442695, %v3295_v24  ;;  %v8630_v54 = vpop.eup %6978  ;;  %v3339_v24 = vmul.f32 1.442695, %v3286_v0 }
0x10a0   : > { %v6738_v2 = vpop.permute.xlu0 %6737  ;;  %3422 = vadd.xlane.f32.xlu0 %v3421_v29  ;;  %v3433_v3 = vsel %vm225_vm0, %v8630_v54, 0.0  ;;  %v3288_v29 = vsub.f32 %v8474_v61, %v3240_v16 }
0x10a1   : > { %v6740_v10 = vunpack.i.h.bf16 %v6738_v2  ;;  %v6739_v63 = vunpack.i.l.bf16 %v6738_v2  ;;  %6984 = vpow2.f32 %v3357_v28  ;;  %v3252_v2 = vpop.xlane.xlu1 %3251  ;;  %v3347_v28 = vmul.f32 1.442695, %v3290_v40 }
0x10a2   : > { %6986 = vpow2.f32 %v3297_v4  ;;  %v3292_v55 = vsub.f32 %v8490_v17, %v3252_v2 }
0x10a3   : > { %v6489_v59 = vpack.c.bf16 %v6740_v10, %v6739_v63  ;;  %v8636_v19 = vpop.eup %6980  ;;  %6988 = vpow2.f32 %v3303_v48  ;;  %v3343_v10 = vmul.f32 1.442695, %v3288_v29 }
0x10a4   : > { %3428 = vadd.xlane.f32.xlu0 %v3427_v43  ;;  %v3439_v15 = vsel %vm225_vm0, %v8636_v19, 0.0  ;;  %6990 = vpow2.f32 %v3339_v24  ;;  %v3351_v61 = vmul.f32 1.442695, %v3292_v55 }
0x10a5   : > { %6490 = vmatprep.subr.bf16.mxu0 %v6489_v59  ;;  %6631 = vmatprep.subr.bf16.mxu1 %v6489_v59  ;;  %v3258_v63 = vpop.xlane.xlu1 %3257  ;;  %6992 = vpow2.f32 %v3343_v10 }
0x10a6   : > { %6742 = vrot.lane.b32.xlu1 %v8309_v12, %s7310_s5  ;;  %6492 = vmatpush3.bf16.msra.mxu0 %v6489_v59  ;;  %6994 = vpow2.f32 %v3347_v28 }
0x10a7   : > { %6635 = vmatpush3.bf16.msra.mxu1 %v6489_v59  ;;  %v8640_v39 = vpop.eup %6982  ;;  %v3294_v59 = vsub.f32 %v8498_v50, %v3258_v63  ;;  %6996 = vpow2.f32 %v3351_v61 }
0x10a8   : > { %3434 = vadd.xlane.f32.xlu0 %v3433_v3  ;;  %v3445_v52 = vsel %vm225_vm0, %v8640_v39, 0.0 }
0x10a9   : > { %v3264_v43 = vpop.xlane.xlu1 %3263 }
0x10aa   : > { %v3296_v17 = vsub.f32 %v8506_v41, %v3264_v43 }
0x10ab   : > { %v8644_v5 = vpop.eup %6984 }
0x10ac   : > { %3440 = vadd.xlane.f32.xlu0 %v3439_v15  ;;  %v3451_v12 = vsel %vm225_vm0, %v8644_v5, 0.0  ;;  %v8655_v14 = vpop.eup %6986  ;;  %v3355_v15 = vmul.f32 1.442695, %v3294_v59 }
0x10ad   : > { %v3361_v13 = vsel %vm225_vm0, %v8655_v14, 0.0  ;;  %v8660_v49 = vpop.eup %6988 }
0x10ae   : > { %v3370_v30 = vsel %vm225_vm0, %v8660_v49, 0.0  ;;  %v8665_v3 = vpop.eup %6990  ;;  %6998 = vpow2.f32 %v3355_v15 }
0x10af   : > { %v3424_v37 = vsel %vm225_vm0, %v8665_v3, 0.0 }
0x10b0   : > { %3446 = vadd.xlane.f32.xlu0 %v3445_v52  ;;  %v8670_v52 = vpop.eup %6992 }
0x10b1   : > { %v3430_v50 = vsel %vm225_vm0, %v8670_v52, 0.0  ;;  %v8674_v38 = vpop.eup %6994 }
0x10b2   : > { %v3436_v16 = vsel %vm225_vm0, %v8674_v38, 0.0  ;;  %v8678_v4 = vpop.eup %6996 }
0x10b3   : > { %v3442_v41 = vsel %vm225_vm0, %v8678_v4, 0.0 }
0x10b4   : > { %3452 = vadd.xlane.f32.xlu0 %v3451_v12  ;;  %v3359_v12 = vmul.f32 1.442695, %v3296_v17 }
0x10b6   : > { %7000 = vpow2.f32 %v3359_v12 }
0x10b8   : > { %v8682_v11 = vpop.eup %6998 }
0x10b9   : > { %v3448_v9 = vsel %vm225_vm0, %v8682_v11, 0.0 }
0x10c0   : > { %v8686_v48 = vpop.eup %7000 }
0x10c1   : > { %v3454_v0 = vsel %vm225_vm0, %v8686_v48, 0.0 }
0x10ca   : > { %3362 = vadd.xlane.f32.xlu1 %v3361_v13 }
0x10ce   : > { %3371 = vadd.xlane.f32.xlu1 %v3370_v30 }
0x10d2   : > { %3425 = vadd.xlane.f32.xlu1 %v3424_v37 }
0x10d6   : > { %3431 = vadd.xlane.f32.xlu1 %v3430_v50 }
0x10da   : > { %3437 = vadd.xlane.f32.xlu1 %v3436_v16 }
0x10de   : > { %3443 = vadd.xlane.f32.xlu1 %v3442_v41 }
0x10e2   : > { %3449 = vadd.xlane.f32.xlu1 %v3448_v9 }
0x10e6   : > { %3455 = vadd.xlane.f32.xlu1 %v3454_v0 }
0x10fd   : > { %v3378_v24 = vpop.xlane.xlu1 %3377 }
0x1105   : > { %v3375_v29 = vpop.xlane.xlu0 %3374 }
0x1106   : > { %7002 = vrcp.f32 %v3375_v29 }
0x1107   : > { %7004 = vrcp.f32 %v3378_v24 }
0x1109   : > { %v3381_v2 = vpop.xlane.xlu0 %3380  ;;  %v3384_v10 = vpop.xlane.xlu1 %3383 }
0x110a   : > { %7006 = vrcp.f32 %v3381_v2 }
0x110b   : > { %7008 = vrcp.f32 %v3384_v10 }
0x110d   : > { %v3387_v40 = vpop.xlane.xlu0 %3386  ;;  %v3390_v63 = vpop.xlane.xlu1 %3389 }
0x110e   : > { %7010 = vrcp.f32 %v3387_v40 }
0x110f   : > { %7012 = vrcp.f32 %v3390_v63 }
0x1110   : > { %v7003_v28 = vpop.eup %7002 }
0x1111   : > { %v3399_v55 = vpop.xlane.xlu0 %3398  ;;  %v3396_v13 = vpop.xlane.xlu1 %3395  ;;  %v3493_v61 = vmul.f32 %v7003_v28, %v8541_v35 }
0x1112   : > { %v7005_v0 = vpop.eup %7004 }
0x1113   : > { %6160 = vmatprep.mubr.msk.f32.mxu1 %vm225_vm0, %v3493_v61  ;;  %v3494_v24 = vmul.f32 %v7005_v0, %v8531_v58 }
0x1114   : > { %v7007_v29 = vpop.eup %7006 }
0x1115   : > { %v8692_v59 = vpop.xlane.xlu0 %3365  ;;  %v3393_v43 = vpop.xlane.xlu1 %3392  ;;  %v3495_v40 = vmul.f32 %v7007_v29, %v8545_v31 }
0x1116   : > { %7014 = vrcp.f32 %v3393_v43  ;;  %v7009_v2 = vpop.eup %7008 }
0x1117   : > { %7016 = vrcp.f32 %v3396_v13  ;;  %v3496_v63 = vmul.f32 %v7009_v2, %v8549_v34 }
0x1118   : > { %7018 = vrcp.f32 %v3399_v55  ;;  %v7011_v28 = vpop.eup %7010 }
0x1119   : > { %v3402_v30 = vpop.xlane.xlu1 %3401  ;;  %v8694_v15 = vpop.xlane.xlu0 %3368  ;;  %v3497_v13 = vmul.f32 %v7011_v28, %v8555_v60 }
0x111a   : > { %7020 = vrcp.f32 %v3402_v30  ;;  %v7013_v61 = vpop.eup %7012 }
0x111b   : > { %v3498_v31 = vmul.f32 %v7013_v61, %v8559_v23 }
0x111d   : > { %v3408_v17 = vpop.xlane.xlu1 %3407  ;;  %v3414_v37 = vpop.xlane.xlu0 %3413 }
0x1120   : > { %v7015_v43 = vpop.eup %7014 }
0x1121   : > { %v3405_v12 = vpop.xlane.xlu1 %3404  ;;  %v3411_v35 = vpop.xlane.xlu0 %3410  ;;  %v3499_v30 = vmul.f32 %v7015_v43, %v8577_v42 }
0x1122   : > { %7022 = vrcp.f32 %v3405_v12  ;;  %v7017_v55 = vpop.eup %7016 }
0x1123   : > { %7024 = vrcp.f32 %v3408_v17  ;;  %v3500_v34 = vmul.f32 %v7017_v55, %v8568_v7 }
0x1124   : > { %7026 = vrcp.f32 %v3411_v35 }
0x1125   : > { %v6743_v50 = vpop.permute.xlu1 %6742  ;;  %v3420_v10 = vpop.xlane.xlu0 %3419  ;;  %7028 = vrcp.f32 %v3414_v37 }
0x1126   : > { %v6745_v16 = vunpack.i.h.bf16 %v6743_v50  ;;  %v6744_v41 = vunpack.i.l.bf16 %v6743_v50  ;;  %v7019_v50 = vpop.eup %7018 }
0x1127   : > { %v7021_v60 = vpop.eup %7020  ;;  %v3501_v12 = vmul.f32 %v7019_v50, %v8566_v18 }
0x1128   : > { %v6493_v9 = vpack.c.bf16 %v6745_v16, %v6744_v41  ;;  %v3502_v23 = vmul.f32 %v7021_v60, %v8586_v57 }
0x1129   : > { %v3417_v58 = vpop.xlane.xlu0 %3416 }
0x112a   : > { %6494 = vmatprep.subr.bf16.mxu0 %v6493_v9  ;;  %6632 = vmatprep.subr.bf16.mxu1 %v6493_v9  ;;  %7030 = vrcp.f32 %v3417_v58 }
0x112b   : > { %6496 = vmatpush3.bf16.msra.mxu0 %v6493_v9  ;;  %6636 = vmatpush3.bf16.msra.mxu1 %v6493_v9  ;;  %7032 = vrcp.f32 %v3420_v10 }
0x112c   : > { %v7023_v16 = vpop.eup %7022 }
0x112d   : > { %v3423_v17 = vpop.xlane.xlu0 %3422  ;;  %v7025_v42 = vpop.eup %7024  ;;  %v3503_v37 = vmul.f32 %v7023_v16, %v8598_v8 }
0x112e   : > { %6161 = vmatmul.mubr.msk.f32.vlgmr.msra.gmra.mrb[64].mxu1 %vm225_vm0, %v3494_v24  ;;  %7034 = vrcp.f32 %v3423_v17  ;;  %v7027_v41 = vpop.eup %7026  ;;  %v3504_v7 = vmul.f32 %v7025_v42, %v8595_v62 }
0x112f   : > { %6163 = vmatprep.mubr.msk.f32.mxu1 %vm225_vm0, %v3495_v40  ;;  %v7029_v18 = vpop.eup %7028  ;;  %v3505_v35 = vmul.f32 %v7027_v41, %v8604_v44  ;;  %7036 = vrcp.f32 %v8692_v59 }
0x1130   : > { %v3506_v57 = vmul.f32 %v7029_v18, %v8589_v51  ;;  %7038 = vrcp.f32 %v8694_v15 }
0x1131   : > { %v3429_v44 = vpop.xlane.xlu0 %3428 }
0x1132   : > { %6164 = vmatmul.mubr.msk.f32.gmra.mrb[66].mxu1 %vm225_vm0, %v3496_v63 }
0x1133   : > { %6166 = vmatprep.mubr.msk.f32.mxu1 %vm225_vm0, %v3497_v13 }
0x1134   : > { %v7031_v9 = vpop.eup %7030 }
0x1135   : > { %v7033_v0 = vpop.eup %7032  ;;  %v3507_v8 = vmul.f32 %v7031_v9, %v8616_v20  ;;  %v3435_v20 = vpop.xlane.xlu0 %3434 }
0x1136   : > { %6167 = vmatmul.mubr.msk.f32.gmra.mrb[68].mxu1 %vm225_vm0, %v3498_v31  ;;  %v3508_v62 = vmul.f32 %v7033_v0, %v8611_v47 }
0x1137   : > { %6169 = vmatprep.mubr.msk.f32.mxu1 %vm225_vm0, %v3499_v30 }
0x1138   : > { %v7035_v29 = vpop.eup %7034 }
0x1139   : > { %v3509_v24 = vmul.f32 %v7035_v29, %v8621_v32  ;;  %v7037_v40 = vpop.eup %7036  ;;  %v3441_v47 = vpop.xlane.xlu0 %3440 }
0x113a   : > { %6170 = vmatmul.mubr.msk.f32.gmra.mrb[70].mxu1 %vm225_vm0, %v3500_v34  ;;  %v7039_v32 = vpop.eup %7038  ;;  %v3490_v59 = vmul.f32 %v7037_v40, %v8571_v26 }
0x113b   : > { %6172 = vmatprep.mubr.msk.f32.mxu1 %vm225_vm0, %v3501_v12  ;;  %v3491_v15 = vmul.f32 %v7039_v32, %v8580_v46 }
0x113d   : > { %v3447_v43 = vpop.xlane.xlu0 %3446 }
0x113e   : > { %6173 = vmatmul.mubr.msk.f32.gmra.mrb[72].mxu1 %vm225_vm0, %v3502_v23 }
0x113f   : > { %6175 = vmatprep.mubr.msk.f32.mxu1 %vm225_vm0, %v3503_v37 }
0x1141   : > { %v3453_v46 = vpop.xlane.xlu0 %3452 }
0x1142   : > { %6176 = vmatmul.mubr.msk.f32.gmra.mrb[74].mxu1 %vm225_vm0, %v3504_v7 }
0x1143   : > { %6178 = vmatprep.mubr.msk.f32.mxu1 %vm225_vm0, %v3505_v35 }
0x1146   : > { %6179 = vmatmul.mubr.msk.f32.gmra.mrb[76].mxu1 %vm225_vm0, %v3506_v57  ;;  %v4004_v57 = vld [vmem:[#allocation2 + $0x3c0] sm:$0xff] }
0x1147   : > { %6181 = vmatprep.mubr.msk.f32.mxu1 %vm225_vm0, %v3507_v8 }
0x114a   : > { %6182 = vmatmul.mubr.msk.f32.gmra.mrb[78].mxu1 %vm225_vm0, %v3508_v62  ;;  %v7218_v62 = vld [vmem:[#allocation2 + $0xa60] sm:$0xff] }
0x114b   : > { %6184 = vmatprep.mubr.msk.f32.mxu1 %vm225_vm0, %v3509_v24 }
0x1157   : > { %v3363_v51 = vpop.xlane.xlu1 %3362 }
0x1158   : > { %7040 = vrcp.f32 %v3363_v51  ;;  %v7219_v51 = vld [vmem:[#allocation2 + $0xa90] sm:$0xff] }
0x115b   : > { %v3372_v2 = vpop.xlane.xlu1 %3371 }
0x115c   : > { %7042 = vrcp.f32 %v3372_v2 }
0x115d   : > { %7044 = vrcp.f32 %v3429_v44 }
0x115f   : > { %v3426_v10 = vpop.xlane.xlu1 %3425 }
0x1160   : > { %7046 = vrcp.f32 %v3426_v10  ;;  %v7220_v10 = vld [vmem:[#allocation2 + $0xa80] sm:$0xff] }
0x1161   : > { %7048 = vrcp.f32 %v3435_v20 }
0x1162   : > { %v7041_v28 = vpop.eup %7040 }
0x1163   : > { %v3432_v63 = vpop.xlane.xlu1 %3431  ;;  %v3489_v61 = vmul.f32 %v7041_v28, %v8655_v14  ;;  %v7221_v28 = vld [vmem:[#allocation2 + $0xab0] sm:$0xff] }
0x1164   : > { %7050 = vrcp.f32 %v3432_v63 }
0x1165   : > { %6154 = vmatprep.mubr.msk.f32.mxu0 %vm225_vm0, %v3489_v61  ;;  %7052 = vrcp.f32 %v3441_v47 }
0x1166   : > { %v7043_v13 = vpop.eup %7042  ;;  %6155 = vmatmul.mubr.msk.f32.vlgmr.msra.gmra.mrb[96].mxu0 %vm225_vm0, %v3490_v59  ;;  %v7222_v59 = vld [vmem:[#allocation2 + $0xaa0] sm:$0xff] }
0x1167   : > { %v3438_v58 = vpop.xlane.xlu1 %3437  ;;  %6157 = vmatprep.mubr.msk.f32.mxu0 %vm225_vm0, %v3491_v15  ;;  %v3492_v31 = vmul.f32 %v7043_v13, %v8660_v49  ;;  %v7045_v55 = vpop.eup %7044 }
0x1168   : > { %7054 = vrcp.f32 %v3438_v58  ;;  %v3511_v50 = vmul.f32 %v7045_v55, %v8626_v33  ;;  %v7223_v58 = vld [vmem:[#allocation2 + $0xad0] sm:$0xff] }
0x1169   : > { %7056 = vrcp.f32 %v3447_v43 }
0x116a   : > { %v7047_v14 = vpop.eup %7046  ;;  %6158 = vmatmul.mubr.msk.f32.gmra.mrb[98].mxu0 %vm225_vm0, %v3492_v31 }
0x116b   : > { %v3444_v26 = vpop.xlane.xlu1 %3443  ;;  %v3510_v30 = vmul.f32 %v7047_v14, %v8665_v3  ;;  %v7049_v34 = vpop.eup %7048  ;;  %v7224_v14 = vld [vmem:[#allocation2 + $0xac0] sm:$0xff] }
0x116c   : > { %7058 = vrcp.f32 %v3444_v26  ;;  %v3513_v12 = vmul.f32 %v7049_v34, %v8630_v54 }
0x116d   : > { %6185 = vmatmul.mubr.msk.f32.gmra.mrb[80].mxu1 %vm225_vm0, %v3510_v30  ;;  %7060 = vrcp.f32 %v3453_v46 }
0x116e   : > { %v7051_v60 = vpop.eup %7050  ;;  %6187 = vmatprep.mubr.msk.f32.mxu1 %vm225_vm0, %v3511_v50  ;;  %v7225_v50 = vld [vmem:[#allocation2 + $0xaf0] sm:$0xff] }
0x116f   : > { %v3450_v49 = vpop.xlane.xlu1 %3449  ;;  %v3512_v17 = vmul.f32 %v7051_v60, %v8670_v52  ;;  %v7053_v16 = vpop.eup %7052 }
0x1170   : > { %7062 = vrcp.f32 %v3450_v49  ;;  %v3515_v42 = vmul.f32 %v7053_v16, %v8636_v19  ;;  %v7226_v49 = vld [vmem:[#allocation2 + $0xae0] sm:$0xff] }
0x1171   : > { %6188 = vmatmul.mubr.msk.f32.gmra.mrb[82].mxu1 %vm225_vm0, %v3512_v17 }
0x1172   : > { %v7055_v3 = vpop.eup %7054  ;;  %6190 = vmatprep.mubr.msk.f32.mxu1 %vm225_vm0, %v3513_v12 }
0x1173   : > { %v3456_v33 = vpop.xlane.xlu1 %3455  ;;  %v3514_v23 = vmul.f32 %v7055_v3, %v8674_v38  ;;  %v7057_v37 = vpop.eup %7056  ;;  %v7227_v3 = vld [vmem:[#allocation2 + $0xb10] sm:$0xff] }
0x1174   : > { %7064 = vrcp.f32 %v3456_v33  ;;  %v3517_v52 = vmul.f32 %v7057_v37, %v8640_v39  ;;  %v7216_v39 = vld [vmem:[#allocation2 + $0xc28] sm:$0xff] }
0x1175   : > { %6191 = vmatmul.mubr.msk.f32.gmra.mrb[84].mxu1 %vm225_vm0, %v3514_v23 }
0x1176   : > { %v7059_v41 = vpop.eup %7058  ;;  %6193 = vmatprep.mubr.msk.f32.mxu1 %vm225_vm0, %v3515_v42  ;;  %v7228_v42 = vld [vmem:[#allocation2 + $0xb00] sm:$0xff] }
0x1177   : > { %v3516_v54 = vmul.f32 %v7059_v41, %v8678_v4  ;;  %v7061_v7 = vpop.eup %7060  ;;  %v4003_v4 = vld [vmem:[#allocation2 + $0x3b0] sm:$0xff] }
0x1178   : > { %v3519_v19 = vmul.f32 %v7061_v7, %v8644_v5  ;;  %v6529_v0 = vpack.c.bf16 %v4004_v57, %v4003_v4 }
0x1179   : > { %6194 = vmatmul.mubr.msk.f32.gmra.mrb[86].mxu1 %vm225_vm0, %v3516_v54 }
0x117a   : > { %v7063_v18 = vpop.eup %7062  ;;  %6196 = vmatprep.mubr.msk.f32.mxu1 %vm225_vm0, %v3517_v52  ;;  %6530 = vmatprep.subr.bf16.mxu0 %v6529_v0  ;;  %v7229_v52 = vld [vmem:[#allocation2 + $0xb30] sm:$0xff] }
0x117b   : > { %v3518_v38 = vmul.f32 %v7063_v18, %v8682_v11  ;;  %6532 = vmatpush3.bf16.msra.mxu0 %v6529_v0  ;;  %v7217_v11 = vld [vmem:[#allocation2 + $0xa70] sm:$0xff]  ;;  %v7232_v0 = vld [vmem:[#allocation2 + $0xb40] sm:$0xff] }
0x117d   : > { %6197 = vmatmul.mubr.msk.f32.gmra.mrb[88].mxu1 %vm225_vm0, %v3518_v38  ;;  %v7230_v38 = vld [vmem:[#allocation2 + $0xb20] sm:$0xff] }
0x117e   : > { %v7065_v35 = vpop.eup %7064  ;;  %6199 = vmatprep.mubr.msk.f32.mxu1 %vm225_vm0, %v3519_v19 }
0x117f   : > { %v3520_v9 = vmul.f32 %v7065_v35, %v8686_v48 }
0x1181   : > { %6200 = vmatmul.mubr.msk.f32.gmra.mrb[90].mxu1 %vm225_vm0, %v3520_v9 }
0x1182   : > { %3962 = vmatprep.mubr.f32.mxu1 %v7216_v39  ;;  %v7231_v39 = vld [vmem:[#allocation2 + $0xb50] sm:$0xff] }
0x1201   : > { %v6162_v8 = vpop.f32.mrb[64].mxu1 }
0x1202   : > { %v8760_v29 = vmul.f32 %v7217_v11, %v6162_v8  ;;  %v3727_v5 = vpop.f32.mrb[65].mxu1 }
0x1203   : > { %v8762_v24 = vmul.f32 %v7218_v62, %v3727_v5  ;;  %v7233_v62 = vld [vmem:[#allocation2 + $0xa30] sm:$0xff] }
0x1205   : > { %v6507_v48 = vpack.c.bf16 %v8760_v29, %v8762_v24  ;;  %v6165_v44 = vpop.f32.mrb[66].mxu1 }
0x1206   : > { %v8766_v20 = vmul.f32 %v7219_v51, %v6165_v44  ;;  %v3737_v2 = vpop.f32.mrb[67].mxu1 }
0x1207   : > { %v8768_v40 = vmul.f32 %v7220_v10, %v3737_v2  ;;  %v7234_v2 = vld [vmem:[#allocation2 + $0xa20] sm:$0xff] }
0x1209   : > { %v6511_v47 = vpack.c.bf16 %v8766_v20, %v8768_v40  ;;  %v6168_v32 = vpop.f32.mrb[68].mxu1 }
0x120a   : > { %v8772_v63 = vmul.f32 %v7221_v28, %v6168_v32  ;;  %v3747_v61 = vpop.f32.mrb[69].mxu1 }
0x120b   : > { %v8774_v15 = vmul.f32 %v7222_v59, %v3747_v61  ;;  %v7235_v61 = vld [vmem:[#allocation2 + $0xa50] sm:$0xff] }
0x120d   : > { %v6515_v13 = vpack.c.bf16 %v8772_v63, %v8774_v15  ;;  %v6171_v43 = vpop.f32.mrb[70].mxu1 }
0x120e   : > { %v8778_v31 = vmul.f32 %v7223_v58, %v6171_v43  ;;  %v3757_v55 = vpop.f32.mrb[71].mxu1  ;;  %v7236_v58 = vld [vmem:[#allocation2 + $0xa40] sm:$0xff] }
0x120f   : > { %v8780_v26 = vmul.f32 %v7224_v14, %v3757_v55 }
0x1211   : > { %v6519_v30 = vpack.c.bf16 %v8778_v31, %v8780_v26  ;;  %v6174_v46 = vpop.f32.mrb[72].mxu1  ;;  %v7250_v31 = vld [vmem:[#allocation2 + $0xc38] sm:$0xff]  ;;  %v7251_v26 = vld [vmem:[#allocation2 + $0xc30] sm:$0xff] }
0x1212   : > { %v8784_v34 = vmul.f32 %v7225_v50, %v6174_v46  ;;  %v3767_v60 = vpop.f32.mrb[73].mxu1  ;;  %v7237_v50 = vld [vmem:[#allocation2 + $0xb70] sm:$0xff] }
0x1213   : > { %v8786_v17 = vmul.f32 %v7226_v49, %v3767_v60 }
0x1215   : > { %v6523_v12 = vpack.c.bf16 %v8784_v34, %v8786_v17  ;;  %v6177_v16 = vpop.f32.mrb[74].mxu1  ;;  %v7255_v34 = vld [vmem:[#allocation2 + $0xc50] sm:$0xff]  ;;  %v7256_v17 = vld [vmem:[#allocation2 + $0xc68] sm:$0xff] }
0x1216   : > { %v8790_v33 = vmul.f32 %v7227_v3, %v6177_v16  ;;  %v3777_v23 = vpop.f32.mrb[75].mxu1  ;;  %v7238_v16 = vld [vmem:[#allocation2 + $0xb60] sm:$0xff] }
0x1217   : > { %v8792_v37 = vmul.f32 %v7228_v42, %v3777_v23 }
0x1219   : > { %v6527_v41 = vpack.c.bf16 %v8790_v33, %v8792_v37  ;;  %v6180_v54 = vpop.f32.mrb[76].mxu1  ;;  %v7258_v33 = vld [vmem:[#allocation2 + $0xc78] sm:$0xff]  ;;  %v7259_v37 = vld [vmem:[#allocation2 + $0xc70] sm:$0xff] }
0x121a   : > { %v3883_v7 = vmul.f32 %v7229_v52, %v6180_v54  ;;  %v3787_v18 = vpop.f32.mrb[77].mxu1  ;;  %v7239_v54 = vld [vmem:[#allocation2 + $0xb90] sm:$0xff] }
0x121b   : > { %v3882_v19 = vmul.f32 %v7230_v38, %v3787_v18  ;;  %v7240_v18 = vld [vmem:[#allocation2 + $0xb80] sm:$0xff] }
0x121d   : > { %v6497_v35 = vpack.c.bf16 %v3883_v7, %v3882_v19  ;;  %v6183_v9 = vpop.f32.mrb[78].mxu1 }
0x121e   : > { %v3885_v4 = vmul.f32 %v7231_v39, %v6183_v9  ;;  %v3797_v57 = vpop.f32.mrb[79].mxu1  ;;  %v7241_v9 = vld [vmem:[#allocation2 + $0xbb0] sm:$0xff] }
0x121f   : > { %v3884_v8 = vmul.f32 %v7232_v0, %v3797_v57  ;;  %6498 = vmatprep.subr.bf16.mxu1 %v6497_v35  ;;  %v7242_v57 = vld [vmem:[#allocation2 + $0xba0] sm:$0xff] }
0x1221   : > { %v6501_v11 = vpack.c.bf16 %v3885_v4, %v3884_v8 }
0x1239   : > { %v6156_v5 = vpop.f32.mrb[96].mxu0 }
0x123a   : > { %v3867_v44 = vmul.f32 %v7233_v62, %v6156_v5  ;;  %v3707_v51 = vpop.f32.mrb[97].mxu0  ;;  %v7243_v5 = vld [vmem:[#allocation2 + $0xbd0] sm:$0xff] }
0x123b   : > { %v3866_v10 = vmul.f32 %v7234_v2, %v3707_v51  ;;  %v7244_v51 = vld [vmem:[#allocation2 + $0xbc0] sm:$0xff]  ;;  %v7245_v2 = vld [vmem:[#allocation2 + $0xbf0] sm:$0xff] }
0x123d   : > { %v6499_v32 = vpack.c.bf16 %v3867_v44, %v3866_v10  ;;  %v6159_v28 = vpop.f32.mrb[98].mxu0 }
0x123e   : > { %v3869_v59 = vmul.f32 %v7235_v61, %v6159_v28  ;;  %v3717_v43 = vpop.f32.mrb[99].mxu0  ;;  %v7246_v28 = vld [vmem:[#allocation2 + $0xbe0] sm:$0xff]  ;;  %v7247_v61 = vld [vmem:[#allocation2 + $0xc10] sm:$0xff] }
0x123f   : > { %v3868_v55 = vmul.f32 %v7236_v58, %v3717_v43  ;;  %6500 = vmatpush3.bf16.msra.mxu1 %v6499_v32  ;;  %v7248_v58 = vld [vmem:[#allocation2 + $0xc00] sm:$0xff] }
0x1240   : > { %v6186_v14 = vpop.f32.mrb[80].mxu1  ;;  %6502 = vmatprep.subr.bf16.mxu1 %v6501_v11 }
0x1241   : > { %v6503_v46 = vpack.c.bf16 %v3869_v59, %v3868_v55  ;;  %v3887_v60 = vmul.f32 %v7237_v50, %v6186_v14  ;;  %v3807_v49 = vpop.f32.mrb[81].mxu1  ;;  %v7253_v55 = vld [vmem:[#allocation2 + $0xc40] sm:$0xff]  ;;  %v7254_v14 = vld [vmem:[#allocation2 + $0xc58] sm:$0xff] }
0x1242   : > { %v3886_v3 = vmul.f32 %v7238_v16, %v3807_v49  ;;  %v7262_v50 = vld [vmem:[#allocation2 + $0xc98] sm:$0xff]  ;;  %v4005_v49 = vld [vmem:[#allocation2 + $0x3d0] sm:$0xff]  ;;  %v4006_v16 = vld [vmem:[#allocation2 + $0x3e0] sm:$0xff] }
0x1243   : > { %6504 = vmatpush3.bf16.msra.mxu1 %v6503_v46  ;;  %v7261_v46 = vld [vmem:[#allocation2 + $0xc80] sm:$0xff] }
0x1244   : > { %v6505_v23 = vpack.c.bf16 %v3887_v60, %v3886_v3  ;;  %v6189_v42 = vpop.f32.mrb[82].mxu1  ;;  %v7263_v60 = vld [vmem:[#allocation2 + $0xc90] sm:$0xff]  ;;  %v6533_v3 = vpack.c.bf16 %v4006_v16, %v4005_v49 }
0x1245   : > { %v3889_v52 = vmul.f32 %v7239_v54, %v6189_v42  ;;  %v3817_v7 = vpop.f32.mrb[83].mxu1 }
0x1246   : > { %v3888_v38 = vmul.f32 %v7240_v18, %v3817_v7  ;;  %6506 = vmatprep.subr.bf16.mxu1 %v6505_v23  ;;  %6534 = vmatprep.subr.bf16.mxu0 %v6533_v3 }
0x1247   : > { %6508 = vmatpush3.bf16.msra.mxu1 %v6507_v48  ;;  %6536 = vmatpush3.bf16.msra.mxu0 %v6533_v3 }
0x1248   : > { %v6509_v19 = vpack.c.bf16 %v3889_v52, %v3888_v38  ;;  %v6192_v35 = vpop.f32.mrb[84].mxu1 }
0x1249   : > { %v3891_v39 = vmul.f32 %v7241_v9, %v6192_v35  ;;  %v3827_v4 = vpop.f32.mrb[85].mxu1 }
0x124a   : > { %v3890_v0 = vmul.f32 %v7242_v57, %v3827_v4  ;;  %6510 = vmatprep.subr.bf16.mxu1 %v6509_v19 }
0x124b   : > { %6512 = vmatpush3.bf16.msra.mxu1 %v6511_v47 }
0x124c   : > { %v6513_v8 = vpack.c.bf16 %v3891_v39, %v3890_v0  ;;  %v6195_v11 = vpop.f32.mrb[86].mxu1 }
0x124d   : > { %v3893_v62 = vmul.f32 %v7243_v5, %v6195_v11  ;;  %v3837_v44 = vpop.f32.mrb[87].mxu1 }
0x124e   : > { %v3892_v29 = vmul.f32 %v7244_v51, %v3837_v44  ;;  %6514 = vmatprep.subr.bf16.mxu1 %v6513_v8 }
0x124f   : > { %6516 = vmatpush3.bf16.msra.mxu1 %v6515_v13  ;;  %v7249_v13 = vld [vmem:[#allocation2 + $0xc20] sm:$0xff] }
0x1250   : > { %v6517_v24 = vpack.c.bf16 %v3893_v62, %v3892_v29  ;;  %v6198_v48 = vpop.f32.mrb[88].mxu1 }
0x1251   : > { %v3895_v10 = vmul.f32 %v7245_v2, %v6198_v48  ;;  %v3847_v32 = vpop.f32.mrb[89].mxu1 }
0x1252   : > { %v3894_v20 = vmul.f32 %v7246_v28, %v3847_v32  ;;  %6518 = vmatprep.subr.bf16.mxu1 %v6517_v24 }
0x1253   : > { %6520 = vmatpush3.bf16.msra.mxu1 %v6519_v30  ;;  %v7252_v30 = vld [vmem:[#allocation2 + $0xc48] sm:$0xff] }
0x1254   : > { %v6521_v40 = vpack.c.bf16 %v3895_v10, %v3894_v20  ;;  %v6201_v47 = vpop.f32.mrb[90].mxu1  ;;  %v4007_v10 = vld [vmem:[#allocation2 + $0x3f0] ss:$0 sm:$0xff] }
0x1255   : > { %v3897_v59 = vmul.f32 %v7247_v61, %v6201_v47  ;;  %v3857_v43 = vpop.f32.mrb[91].mxu1 }
0x1256   : > { %v3896_v63 = vmul.f32 %v7248_v58, %v3857_v43  ;;  %6522 = vmatprep.subr.bf16.mxu1 %v6521_v40 }
0x1257   : > { %6524 = vmatpush3.bf16.msra.mxu1 %v6523_v12  ;;  %v7257_v12 = vld [vmem:[#allocation2 + $0xc60] sm:$0xff] }
0x1258   : > { %v6525_v15 = vpack.c.bf16 %v3897_v59, %v3896_v63 }
0x125a   : > { %6526 = vmatprep.subr.bf16.mxu1 %v6525_v15 }
0x125b   : > { %6528 = vmatpush3.bf16.msra.mxu1 %v6527_v41  ;;  %v7260_v41 = vld [vmem:[#allocation2 + $0xc88] sm:$0xff] }
0x125e   : > { %3963 = vmatmul.mubr.f32.vlgmr.msra.gmra.mrb[92].mxu1 %v7249_v13 }
0x125f   : > { %3967 = vmatprep.mubr.f32.mxu1 %v7250_v31 }
0x1262   : > { %3968 = vmatmul.mubr.f32.gmra.mrb[94].mxu1 %v7251_v26 }
0x1263   : > { %3972 = vmatprep.mubr.f32.mxu1 %v7252_v30 }
0x1266   : > { %3973 = vmatmul.mubr.f32.gmra.mrb[96].mxu1 %v7253_v55 }
0x1267   : > { %3977 = vmatprep.mubr.f32.mxu1 %v7254_v14 }
0x126a   : > { %3978 = vmatmul.mubr.f32.gmra.mrb[98].mxu1 %v7255_v34 }
0x126b   : > { %3982 = vmatprep.mubr.f32.mxu1 %v7256_v17 }
0x126e   : > { %3983 = vmatmul.mubr.f32.gmra.mrb[100].mxu1 %v7257_v12 }
0x126f   : > { %3987 = vmatprep.mubr.f32.mxu1 %v7258_v33 }
0x1272   : > { %3988 = vmatmul.mubr.f32.gmra.mrb[102].mxu1 %v7259_v37 }
0x1273   : > { %3992 = vmatprep.mubr.f32.mxu1 %v7260_v41 }
0x1276   : > { %3993 = vmatmul.mubr.f32.gmra.mrb[104].mxu1 %v7261_v46 }
0x1277   : > { %3997 = vmatprep.mubr.f32.mxu1 %v7262_v50 }
0x127a   : > { %3998 = vmatmul.mubr.f32.gmra.mrb[106].mxu1 %v7263_v60 }
0x1331   : > { %v5678_v23 = vpop.f32.mrb[92].mxu1 }
0x1332   : > { %v5679_v42 = vpop.f32.mrb[93].mxu1 }
0x1333   : > { %v5680_v54 = vadd.f32 %v5679_v42, %v5678_v23 }
0x1335   : > { %v5681_v52 = vpop.f32.mrb[94].mxu1  ;;  %6210 = vmatprep.mubr.msk.f32.mxu0 %vm437_vm9, %v5680_v54 }
0x1336   : > { %v5682_v7 = vpop.f32.mrb[95].mxu1 }
0x1337   : > { %v5683_v18 = vadd.f32 %v5682_v7, %v5681_v52 }
0x1339   : > { %6211 = vmatmul.mubr.msk.f32.vlgmr.msra.gmra.mrb[100].mxu0 %vm437_vm9, %v5683_v18  ;;  %v5684_v38 = vpop.f32.mrb[96].mxu1 }
0x133a   : > { %v5685_v19 = vpop.f32.mrb[97].mxu1 }
0x133b   : > { %v5686_v35 = vadd.f32 %v5685_v19, %v5684_v38 }
0x133d   : > { %v5687_v9 = vpop.f32.mrb[98].mxu1  ;;  %6213 = vmatprep.mubr.msk.f32.mxu0 %vm437_vm9, %v5686_v35 }
0x133e   : > { %v5688_v39 = vpop.f32.mrb[99].mxu1 }
0x133f   : > { %v5689_v4 = vadd.f32 %v5688_v39, %v5687_v9 }
0x1341   : > { %6214 = vmatmul.mubr.msk.f32.gmra.mrb[102].mxu0 %vm437_vm9, %v5689_v4  ;;  %v5690_v57 = vpop.f32.mrb[100].mxu1 }
0x1342   : > { %v5691_v0 = vpop.f32.mrb[101].mxu1 }
0x1343   : > { %v5692_v8 = vadd.f32 %v5691_v0, %v5690_v57 }
0x1345   : > { %v5693_v11 = vpop.f32.mrb[102].mxu1  ;;  %6216 = vmatprep.mubr.msk.f32.mxu0 %vm437_vm9, %v5692_v8 }
0x1346   : > { %v5694_v5 = vpop.f32.mrb[103].mxu1 }
0x1347   : > { %v5695_v62 = vadd.f32 %v5694_v5, %v5693_v11 }
0x1349   : > { %6217 = vmatmul.mubr.msk.f32.gmra.mrb[104].mxu0 %vm437_vm9, %v5695_v62  ;;  %v5696_v44 = vpop.f32.mrb[104].mxu1 }
0x134a   : > { %v5697_v51 = vpop.f32.mrb[105].mxu1 }
0x134b   : > { %v5698_v29 = vadd.f32 %v5697_v51, %v5696_v44 }
0x134d   : > { %v5699_v24 = vpop.f32.mrb[106].mxu1  ;;  %6219 = vmatprep.mubr.msk.f32.mxu0 %vm437_vm9, %v5698_v29 }
0x134e   : > { %v5700_v48 = vpop.f32.mrb[107].mxu1 }
0x134f   : > { %v5701_v2 = vadd.f32 %v5700_v48, %v5699_v24 }
0x1351   : > { %6220 = vmatmul.mubr.msk.f32.gmra.mrb[106].mxu0 %vm437_vm9, %v5701_v2 }
0x140c   : > { %v6212_v32 = vpop.f32.mrb[100].mxu0 }
0x140d   : > { %v4104_v28 = vadd.f32 %v6212_v32, %v4007_v10  ;;  %v4098_v20 = vpop.f32.mrb[101].mxu0 }
0x140e   : > { %v4099_v40 = vadd.f32 %v4098_v20, %v4007_v10 }
0x140f   : > { %v8823_v47 = vadd.f32 %v4104_v28, %v8173_v27 }
0x1410   : > { %v8826_v61 = vadd.f32 %v4099_v40, %v8176_v36 }
0x1411   : > { %v4150_v59 = vsel %vm437_vm9, %v8823_v47, 0.0 }
0x1412   : > { %4151 = vadd.xlane.f32.xlu1 %v4150_v59  ;;  %v4147_v43 = vsel %vm437_vm9, %v8826_v61, 0.0 }
0x1413   : > { %4148 = vadd.xlane.f32.xlu0 %v4147_v43 }
0x1414   : > { %v6215_v58 = vpop.f32.mrb[102].mxu0 }
0x1415   : > { %v4114_v63 = vadd.f32 %v6215_v58, %v4007_v10  ;;  %v4108_v15 = vpop.f32.mrb[103].mxu0 }
0x1416   : > { %v4109_v13 = vadd.f32 %v4108_v15, %v4007_v10 }
0x1417   : > { %v8833_v31 = vadd.f32 %v4114_v63, %v8183_v22 }
0x1418   : > { %v8836_v27 = vadd.f32 %v4109_v13, %v8186_v53 }
0x1419   : > { %v4156_v36 = vsel %vm437_vm9, %v8833_v31, 0.0 }
0x141a   : > { %4157 = vadd.xlane.f32.xlu1 %v4156_v36  ;;  %v4153_v26 = vsel %vm437_vm9, %v8836_v27, 0.0  ;;  %v4267_v36 = vld [vmem:[#allocation2 + $0x420] sm:$0xff] }
0x141b   : > { %4154 = vadd.xlane.f32.xlu0 %v4153_v26  ;;  %v4268_v26 = vld [vmem:[#allocation2 + $0x430] sm:$0xff] }
0x141c   : > { %v6218_v30 = vpop.f32.mrb[104].mxu0 }
0x141d   : > { %v4124_v55 = vadd.f32 %v6218_v30, %v4007_v10  ;;  %v4118_v14 = vpop.f32.mrb[105].mxu0  ;;  %v6537_v30 = vpack.c.bf16 %v4268_v26, %v4267_v36 }
0x141e   : > { %v4119_v34 = vadd.f32 %v4118_v14, %v4007_v10  ;;  %v4270_v14 = vld [vmem:[#allocation2 + $0x450] sm:$0xff] }
0x141f   : > { %v8843_v17 = vadd.f32 %v4124_v55, %v8193_v56  ;;  %6538 = vmatprep.subr.bf16.mxu0 %v6537_v30  ;;  %v4269_v55 = vld [vmem:[#allocation2 + $0x440] sm:$0xff] }
0x1420   : > { %v8846_v22 = vadd.f32 %v4119_v34, %v8196_v1  ;;  %6540 = vmatpush3.bf16.msra.mxu0 %v6537_v30  ;;  %v6541_v34 = vpack.c.bf16 %v4270_v14, %v4269_v55 }
0x1421   : > { %v4162_v53 = vsel %vm437_vm9, %v8843_v17, 0.0 }
0x1422   : > { %4163 = vadd.xlane.f32.xlu1 %v4162_v53  ;;  %v4159_v12 = vsel %vm437_vm9, %v8846_v22, 0.0  ;;  %6542 = vmatprep.subr.bf16.mxu0 %v6541_v34 }
0x1423   : > { %4160 = vadd.xlane.f32.xlu0 %v4159_v12 }
0x1424   : > { %v6221_v33 = vpop.f32.mrb[106].mxu0  ;;  %6544 = vmatpush3.bf16.msra.mxu0 %v6541_v34 }
0x1425   : > { %v4134_v37 = vadd.f32 %v6221_v33, %v4007_v10  ;;  %v4128_v41 = vpop.f32.mrb[107].mxu0 }
0x1426   : > { %v4129_v46 = vadd.f32 %v4128_v41, %v4007_v10 }
0x1427   : > { %v8853_v50 = vadd.f32 %v4134_v37, %v8203_v45 }
0x1428   : > { %v8856_v56 = vadd.f32 %v4129_v46, %v8206_v6 }
0x1429   : > { %v4168_v1 = vsel %vm437_vm9, %v8853_v50, 0.0 }
0x142a   : > { %4169 = vadd.xlane.f32.xlu1 %v4168_v1  ;;  %v4165_v60 = vsel %vm437_vm9, %v8856_v56, 0.0 }
0x142b   : > { %4166 = vadd.xlane.f32.xlu0 %v4165_v60 }
0x149f   : > { %v4152_v49 = vpop.xlane.xlu1 %4151 }
0x14a0   : > { %v4172_v16 = vmul.f32 0.03125, %v4152_v49  ;;  %v4149_v3 = vpop.xlane.xlu0 %4148 }
0x14a1   : > { %v4171_v23 = vmul.f32 0.03125, %v4149_v3 }
0x14a2   : > { %v8863_v42 = vsub.f32 %v8823_v47, %v4172_v16 }
0x14a3   : > { %v8866_v45 = vsub.f32 %v8826_v61, %v4171_v23 }
0x14a4   : > { %v4188_v6 = vmul.f32 %v8863_v42, %v8863_v42 }
0x14a5   : > { %v4187_v54 = vmul.f32 %v8866_v45, %v8866_v45 }
0x14a6   : > { %v4198_v52 = vsel %vm437_vm9, %v4188_v6, 0.0 }
0x14a7   : > { %v4158_v7 = vpop.xlane.xlu1 %4157  ;;  %4199 = vadd.xlane.f32.xlu1 %v4198_v52  ;;  %v4195_v18 = vsel %vm437_vm9, %v4187_v54, 0.0  ;;  %v4145_v54 = vld [vmem:[#allocation2 + $0x400] ss:$0 sm:$0xff] }
0x14a8   : > { %v4174_v38 = vmul.f32 0.03125, %v4158_v7  ;;  %4196 = vadd.xlane.f32.xlu0 %v4195_v18  ;;  %v4155_v19 = vpop.xlane.xlu0 %4154 }
0x14a9   : > { %v4173_v35 = vmul.f32 0.03125, %v4155_v19 }
0x14aa   : > { %v8875_v9 = vsub.f32 %v8833_v31, %v4174_v38 }
0x14ab   : > { %v8878_v39 = vsub.f32 %v8836_v27, %v4173_v35 }
0x14ac   : > { %v4190_v4 = vmul.f32 %v8875_v9, %v8875_v9 }
0x14ad   : > { %v4189_v57 = vmul.f32 %v8878_v39, %v8878_v39 }
0x14ae   : > { %v4204_v0 = vsel %vm437_vm9, %v4190_v4, 0.0  ;;  %v4146_v4 = vld [vmem:[#allocation2 + $0x410] ss:$0 sm:$0xff] }
0x14af   : > { %v4164_v8 = vpop.xlane.xlu1 %4163  ;;  %4205 = vadd.xlane.f32.xlu1 %v4204_v0  ;;  %v4201_v11 = vsel %vm437_vm9, %v4189_v57, 0.0 }
0x14b0   : > { %v4176_v5 = vmul.f32 0.03125, %v4164_v8  ;;  %4202 = vadd.xlane.f32.xlu0 %v4201_v11  ;;  %v4161_v62 = vpop.xlane.xlu0 %4160 }
0x14b1   : > { %v4175_v44 = vmul.f32 0.03125, %v4161_v62 }
0x14b2   : > { %v8887_v51 = vsub.f32 %v8843_v17, %v4176_v5 }
0x14b3   : > { %v8890_v29 = vsub.f32 %v8846_v22, %v4175_v44 }
0x14b4   : > { %v4192_v24 = vmul.f32 %v8887_v51, %v8887_v51 }
0x14b5   : > { %v4191_v48 = vmul.f32 %v8890_v29, %v8890_v29 }
0x14b6   : > { %v4210_v2 = vsel %vm437_vm9, %v4192_v24, 0.0 }
0x14b7   : > { %4211 = vadd.xlane.f32.xlu1 %v4210_v2  ;;  %v4170_v10 = vpop.xlane.xlu1 %4169  ;;  %v4207_v32 = vsel %vm437_vm9, %v4191_v48, 0.0 }
0x14b8   : > { %v4178_v28 = vmul.f32 0.03125, %v4170_v10  ;;  %4208 = vadd.xlane.f32.xlu0 %v4207_v32  ;;  %v4167_v20 = vpop.xlane.xlu0 %4166 }
0x14b9   : > { %v4177_v40 = vmul.f32 0.03125, %v4167_v20 }
0x14ba   : > { %v8899_v59 = vsub.f32 %v8853_v50, %v4178_v28 }
0x14bb   : > { %v8902_v43 = vsub.f32 %v8856_v56, %v4177_v40 }
0x14bc   : > { %v4194_v58 = vmul.f32 %v8899_v59, %v8899_v59 }
0x14bd   : > { %v4193_v63 = vmul.f32 %v8902_v43, %v8902_v43 }
0x14be   : > { %v4216_v15 = vsel %vm437_vm9, %v4194_v58, 0.0 }
0x14bf   : > { %4217 = vadd.xlane.f32.xlu1 %v4216_v15  ;;  %v4213_v13 = vsel %vm437_vm9, %v4193_v63, 0.0 }
0x14c0   : > { %4214 = vadd.xlane.f32.xlu0 %v4213_v13 }
0x1534   : > { %v4200_v53 = vpop.xlane.xlu1 %4199 }
0x1535   : > { %v4220_v12 = vmul.f32 0.03125, %v4200_v53  ;;  %v4197_v33 = vpop.xlane.xlu0 %4196 }
0x1536   : > { %v4219_v37 = vmul.f32 0.03125, %v4197_v33 }
0x1537   : > { %v4228_v41 = vadd.f32 1e-05, %v4220_v12 }
0x1538   : > { %v4227_v46 = vadd.f32 1e-05, %v4219_v37 }
0x1539   : > { %7066 = vrsqrt.f32 %v4228_v41 }
0x153a   : > { %7068 = vrsqrt.f32 %v4227_v46 }
0x153c   : > { %v4206_v1 = vpop.xlane.xlu1 %4205 }
0x153d   : > { %v4222_v60 = vmul.f32 0.03125, %v4206_v1  ;;  %v4203_v49 = vpop.xlane.xlu0 %4202 }
0x153e   : > { %v4221_v16 = vmul.f32 0.03125, %v4203_v49 }
0x153f   : > { %v4230_v3 = vadd.f32 1e-05, %v4222_v60  ;;  %v4474_v60 = vld [vmem:[#allocation2 + $0x480] sm:$0xff] }
0x1540   : > { %v4229_v23 = vadd.f32 1e-05, %v4221_v16  ;;  %v4475_v16 = vld [vmem:[#allocation2 + $0x490] sm:$0xff] }
0x1541   : > { %7070 = vrsqrt.f32 %v4230_v3  ;;  %v4476_v3 = vld [vmem:[#allocation2 + $0x4a0] sm:$0xff] }
0x1542   : > { %7072 = vrsqrt.f32 %v4229_v23  ;;  %v6549_v23 = vpack.c.bf16 %v4476_v3, %v4475_v16 }
0x1543   : > { %v7067_v6 = vpop.eup %7066 }
0x1544   : > { %v7069_v52 = vpop.eup %7068  ;;  %v4244_v7 = vmul.f32 %v7067_v6, %v8863_v42  ;;  %v4212_v18 = vpop.xlane.xlu1 %4211 }
0x1545   : > { %v4224_v38 = vmul.f32 0.03125, %v4212_v18  ;;  %v4209_v19 = vpop.xlane.xlu0 %4208  ;;  %v4243_v35 = vmul.f32 %v7069_v52, %v8866_v45  ;;  %v4480_v52 = vld [vmem:[#allocation2 + $0x4e0] sm:$0xff]  ;;  %v4481_v18 = vld [vmem:[#allocation2 + $0x4f0] sm:$0xff] }
0x1546   : > { %v4252_v57 = vmul.f32 %v4244_v7, %v4145_v54  ;;  %v4223_v0 = vmul.f32 0.03125, %v4209_v19 }
0x1547   : > { %v4232_v8 = vadd.f32 1e-05, %v4224_v38  ;;  %v4251_v11 = vmul.f32 %v4243_v35, %v4145_v54  ;;  %v4482_v38 = vld [vmem:[#allocation2 + $0x500] sm:$0xff]  ;;  %v4483_v35 = vld [vmem:[#allocation2 + $0x510] sm:$0xff] }
0x1548   : > { %v4231_v5 = vadd.f32 1e-05, %v4223_v0  ;;  %v4260_v44 = vadd.f32 %v4252_v57, %v4146_v4  ;;  %v6561_v19 = vpack.c.bf16 %v4482_v38, %v4481_v18  ;;  %v4485_v0 = vld [vmem:[#allocation2 + $0x530] sm:$0xff] }
0x1549   : > { %7074 = vrsqrt.f32 %v4232_v8  ;;  %v4259_v62 = vadd.f32 %v4251_v11, %v4146_v4  ;;  %v4486_v8 = vld [vmem:[#allocation2 + $0x540] sm:$0xff] }
0x154a   : > { %7076 = vrsqrt.f32 %v4231_v5  ;;  %v6569_v11 = vpack.c.bf16 %v4486_v8, %v4485_v0  ;;  %v4487_v5 = vld [vmem:[#allocation2 + $0x550] sm:$0xff] }
0x154b   : > { %v7071_v24 = vpop.eup %7070  ;;  %6230 = vmatprep.mubr.msk.f32.mxu0 %vm437_vm9, %v4259_v62  ;;  %v4488_v62 = vld [vmem:[#allocation2 + $0x560] sm:$0xff] }
0x154c   : > { %v7073_v48 = vpop.eup %7072  ;;  %v4218_v42 = vpop.xlane.xlu1 %4217  ;;  %6231 = vmatmul.mubr.msk.f32.vlgmr.msra.gmra.mrb[108].mxu0 %vm437_vm9, %v4260_v44  ;;  %v4246_v2 = vmul.f32 %v7071_v24, %v8875_v9  ;;  %v6573_v44 = vpack.c.bf16 %v4488_v62, %v4487_v5  ;;  %v4271_v24 = vld [vmem:[#allocation2 + $0x460] ss:$0 sm:$0xff] }
0x154d   : > { %v4226_v45 = vmul.f32 0.03125, %v4218_v42  ;;  %v4215_v10 = vpop.xlane.xlu0 %4214  ;;  %v4245_v32 = vmul.f32 %v7073_v48, %v8878_v39 }
0x154e   : > { %v4225_v28 = vmul.f32 0.03125, %v4215_v10  ;;  %v4254_v20 = vmul.f32 %v4246_v2, %v4145_v54 }
0x154f   : > { %v4234_v40 = vadd.f32 1e-05, %v4226_v45  ;;  %v4253_v58 = vmul.f32 %v4245_v32, %v4145_v54 }
0x1550   : > { %v4233_v63 = vadd.f32 1e-05, %v4225_v28  ;;  %v4262_v13 = vadd.f32 %v4254_v20, %v4146_v4 }
0x1551   : > { %7078 = vrsqrt.f32 %v4234_v40  ;;  %v4261_v15 = vadd.f32 %v4253_v58, %v4146_v4 }
0x1552   : > { %7080 = vrsqrt.f32 %v4233_v63 }
0x1553   : > { %v7075_v36 = vpop.eup %7074  ;;  %6233 = vmatprep.mubr.msk.f32.mxu0 %vm437_vm9, %v4261_v15 }
0x1554   : > { %v7077_v26 = vpop.eup %7076  ;;  %6234 = vmatmul.mubr.msk.f32.gmra.mrb[110].mxu0 %vm437_vm9, %v4262_v13  ;;  %v4248_v9 = vmul.f32 %v7075_v36, %v8887_v51 }
0x1555   : > { %v4247_v30 = vmul.f32 %v7077_v26, %v8890_v29  ;;  %v4473_v29 = vld [vmem:[#allocation2 + $0x470] sm:$0xff] }
0x1556   : > { %v4256_v39 = vmul.f32 %v4248_v9, %v4145_v54  ;;  %v6545_v49 = vpack.c.bf16 %v4474_v60, %v4473_v29 }
0x1557   : > { %v4255_v55 = vmul.f32 %v4247_v30, %v4145_v54 }
0x1558   : > { %v4264_v34 = vadd.f32 %v4256_v39, %v4146_v4  ;;  %6546 = vmatprep.subr.bf16.mxu1 %v6545_v49 }
0x1559   : > { %v4263_v14 = vadd.f32 %v4255_v55, %v4146_v4  ;;  %6548 = vmatpush3.bf16.msra.mxu1 %v6545_v49 }
0x155a   : > { %6550 = vmatprep.subr.bf16.mxu1 %v6549_v23 }
0x155b   : > { %v7079_v53 = vpop.eup %7078  ;;  %6236 = vmatprep.mubr.msk.f32.mxu0 %vm437_vm9, %v4263_v14 }
0x155c   : > { %v7081_v12 = vpop.eup %7080  ;;  %6237 = vmatmul.mubr.msk.f32.gmra.mrb[112].mxu0 %vm437_vm9, %v4264_v34  ;;  %v4250_v33 = vmul.f32 %v7079_v53, %v8899_v59  ;;  %v4477_v59 = vld [vmem:[#allocation2 + $0x4b0] sm:$0xff] }
0x155d   : > { %v4249_v37 = vmul.f32 %v7081_v12, %v8902_v43  ;;  %6552 = vmatpush3.bf16.msra.mxu1 %v6549_v23  ;;  %v4478_v43 = vld [vmem:[#allocation2 + $0x4c0] sm:$0xff] }
0x155e   : > { %v4258_v41 = vmul.f32 %v4250_v33, %v4145_v54  ;;  %v6553_v6 = vpack.c.bf16 %v4478_v43, %v4477_v59 }
0x155f   : > { %v4257_v46 = vmul.f32 %v4249_v37, %v4145_v54  ;;  %v4479_v54 = vld [vmem:[#allocation2 + $0x4d0] sm:$0xff] }
0x1560   : > { %v4266_v51 = vadd.f32 %v4258_v41, %v4146_v4  ;;  %6554 = vmatprep.subr.bf16.mxu1 %v6553_v6  ;;  %v6557_v7 = vpack.c.bf16 %v4480_v52, %v4479_v54 }
0x1561   : > { %v4265_v1 = vadd.f32 %v4257_v46, %v4146_v4  ;;  %6556 = vmatpush3.bf16.msra.mxu1 %v6553_v6  ;;  %v4484_v4 = vld [vmem:[#allocation2 + $0x520] sm:$0xff] }
0x1562   : > { %6558 = vmatprep.subr.bf16.mxu1 %v6557_v7  ;;  %v6565_v57 = vpack.c.bf16 %v4484_v4, %v4483_v35 }
0x1563   : > { %6239 = vmatprep.mubr.msk.f32.mxu0 %vm437_vm9, %v4265_v1 }
0x1564   : > { %6240 = vmatmul.mubr.msk.f32.gmra.mrb[114].mxu0 %vm437_vm9, %v4266_v51 }
0x1565   : > { %6560 = vmatpush3.bf16.msra.mxu1 %v6557_v7  ;;  %6302 = vmatprep.mubr.msk.f32.mxu0 %vm7312_vm11, %v7308_v25 }
0x1566   : > { %6562 = vmatprep.subr.bf16.mxu1 %v6561_v19 }
0x1569   : > { %6564 = vmatpush3.bf16.msra.mxu1 %v6561_v19 }
0x156a   : > { %6566 = vmatprep.subr.bf16.mxu1 %v6565_v57 }
0x156d   : > { %6568 = vmatpush3.bf16.msra.mxu1 %v6565_v57 }
0x156e   : > { %6570 = vmatprep.subr.bf16.mxu1 %v6569_v11 }
0x1571   : > { %6572 = vmatpush3.bf16.msra.mxu1 %v6569_v11 }
0x1572   : > { %6574 = vmatprep.subr.bf16.mxu1 %v6573_v44 }
0x1575   : > { %6576 = vmatpush3.bf16.msra.mxu1 %v6573_v44 }
0x161f   : > { %v6232_v48 = vpop.f32.mrb[108].mxu0 }
0x1620   : > { %v4368_v42 = vadd.f32 %v6232_v48, %v4271_v24  ;;  %v4362_v2 = vpop.f32.mrb[109].mxu0 }
0x1621   : > { %v4363_v45 = vadd.f32 %v4362_v2, %v4271_v24 }
0x1622   : > { %v4402_v10 = vmul.f32 %v4368_v42, %v4368_v42 }
0x1623   : > { %v4401_v32 = vmul.f32 %v4363_v45, %v4363_v45 }
0x1624   : > { %v4410_v28 = vmul.f32 %v4402_v10, %v4368_v42 }
0x1625   : > { %v4409_v20 = vmul.f32 %v4401_v32, %v4363_v45 }
0x1626   : > { %v4418_v40 = vmul.f32 0.044715, %v4410_v28 }
0x1627   : > { %v4417_v58 = vmul.f32 0.044715, %v4409_v20  ;;  %v6235_v63 = vpop.f32.mrb[110].mxu0 }
0x1628   : > { %v4426_v15 = vadd.f32 %v4418_v40, %v4368_v42  ;;  %v8926_v13 = vadd.f32 %v6235_v63, %v4271_v24  ;;  %v4372_v36 = vpop.f32.mrb[111].mxu0 }
0x1629   : > { %v4425_v26 = vadd.f32 %v4417_v58, %v4363_v45  ;;  %v8928_v9 = vadd.f32 %v4372_v36, %v4271_v24 }
0x162a   : > { %v4434_v30 = vmul.f32 0.7978846, %v4426_v15  ;;  %v4404_v39 = vmul.f32 %v8926_v13, %v8926_v13 }
0x162b   : > { %v4433_v55 = vmul.f32 0.7978846, %v4425_v26  ;;  %v4403_v14 = vmul.f32 %v8928_v9, %v8928_v9 }
0x162c   : > { %7082 = vtanh.f32 %v4434_v30  ;;  %v4412_v34 = vmul.f32 %v4404_v39, %v8926_v13 }
0x162d   : > { %v4411_v53 = vmul.f32 %v4403_v14, %v8928_v9  ;;  %7084 = vtanh.f32 %v4433_v55 }
0x162e   : > { %v4420_v12 = vmul.f32 0.044715, %v4412_v34 }
0x162f   : > { %v4419_v33 = vmul.f32 0.044715, %v4411_v53  ;;  %v6238_v37 = vpop.f32.mrb[112].mxu0 }
0x1630   : > { %v4428_v41 = vadd.f32 %v4420_v12, %v8926_v13  ;;  %v8937_v46 = vadd.f32 %v6238_v37, %v4271_v24  ;;  %v4382_v1 = vpop.f32.mrb[113].mxu0 }
0x1631   : > { %v4427_v51 = vadd.f32 %v4419_v33, %v8928_v9  ;;  %v4383_v29 = vadd.f32 %v4382_v1, %v4271_v24 }
0x1632   : > { %v4436_v60 = vmul.f32 0.7978846, %v4428_v41  ;;  %v4406_v49 = vmul.f32 %v8937_v46, %v8937_v46 }
0x1633   : > { %v4435_v16 = vmul.f32 0.7978846, %v4427_v51  ;;  %v4405_v3 = vmul.f32 %v4383_v29, %v4383_v29 }
0x1634   : > { %v4414_v23 = vmul.f32 %v4406_v49, %v8937_v46  ;;  %7086 = vtanh.f32 %v4436_v60 }
0x1635   : > { %v4413_v59 = vmul.f32 %v4405_v3, %v4383_v29  ;;  %7088 = vtanh.f32 %v4435_v16 }
0x1636   : > { %v7083_v43 = vpop.eup %7082  ;;  %v4422_v6 = vmul.f32 0.044715, %v4414_v23 }
0x1637   : > { %v7085_v54 = vpop.eup %7084  ;;  %v4450_v52 = vadd.f32 1.0, %v7083_v43  ;;  %v4421_v7 = vmul.f32 0.044715, %v4413_v59  ;;  %v6241_v18 = vpop.f32.mrb[114].mxu0  ;;  %v4489_v43 = vld [vmem:[#allocation2 + $0x570] ss:$0 sm:$0xff] }
0x1638   : > { %v4430_v38 = vadd.f32 %v4422_v6, %v8937_v46  ;;  %v4398_v19 = vadd.f32 %v6241_v18, %v4271_v24  ;;  %v4392_v35 = vpop.f32.mrb[115].mxu0  ;;  %v4449_v4 = vadd.f32 1.0, %v7085_v54 }
0x1639   : > { %v4458_v57 = vmul.f32 0.5, %v4450_v52  ;;  %v4429_v0 = vadd.f32 %v4421_v7, %v4383_v29  ;;  %v4393_v8 = vadd.f32 %v4392_v35, %v4271_v24 }
0x163a   : > { %v4438_v11 = vmul.f32 0.7978846, %v4430_v38  ;;  %v4408_v5 = vmul.f32 %v4398_v19, %v4398_v19  ;;  %v4457_v62 = vmul.f32 0.5, %v4449_v4 }
0x163b   : > { %v4437_v44 = vmul.f32 0.7978846, %v4429_v0  ;;  %v4407_v48 = vmul.f32 %v4393_v8, %v4393_v8  ;;  %v4466_v32 = vmul.f32 %v4458_v57, %v4368_v42 }
0x163c   : > { %v4416_v2 = vmul.f32 %v4408_v5, %v4398_v19  ;;  %v4465_v10 = vmul.f32 %v4457_v62, %v4363_v45  ;;  %7090 = vtanh.f32 %v4438_v11 }
0x163d   : > { %v4415_v28 = vmul.f32 %v4407_v48, %v4393_v8  ;;  %7092 = vtanh.f32 %v4437_v44 }
0x163e   : > { %v7087_v20 = vpop.eup %7086  ;;  %v4424_v40 = vmul.f32 0.044715, %v4416_v2  ;;  %6274 = vmatprep.mubr.f32.mxu1 %v4465_v10 }
0x163f   : > { %v7089_v58 = vpop.eup %7088  ;;  %v4423_v63 = vmul.f32 0.044715, %v4415_v28  ;;  %6275 = vmatmul.mubr.f32.vlgmr.msra.gmra.mrb[108].mxu1 %v4466_v32  ;;  %v4452_v15 = vadd.f32 1.0, %v7087_v20 }
0x1640   : > { %v4432_v36 = vadd.f32 %v4424_v40, %v4398_v19  ;;  %v4451_v24 = vadd.f32 1.0, %v7089_v58 }
0x1641   : > { %v4431_v26 = vadd.f32 %v4423_v63, %v4393_v8  ;;  %v4460_v30 = vmul.f32 0.5, %v4452_v15 }
0x1642   : > { %v4440_v39 = vmul.f32 0.7978846, %v4432_v36  ;;  %v4459_v55 = vmul.f32 0.5, %v4451_v24 }
0x1643   : > { %v4439_v14 = vmul.f32 0.7978846, %v4431_v26  ;;  %v4468_v42 = vmul.f32 %v4460_v30, %v8926_v13 }
0x1644   : > { %v4467_v45 = vmul.f32 %v4459_v55, %v8928_v9  ;;  %7094 = vtanh.f32 %v4440_v39 }
0x1645   : > { %7096 = vtanh.f32 %v4439_v14 }
0x1646   : > { %v7091_v34 = vpop.eup %7090  ;;  %6277 = vmatprep.mubr.f32.mxu1 %v4467_v45 }
0x1647   : > { %v7093_v53 = vpop.eup %7092  ;;  %6278 = vmatmul.mubr.f32.gmra.mrb[110].mxu1 %v4468_v42  ;;  %v4454_v12 = vadd.f32 1.0, %v7091_v34 }
0x1648   : > { %v4453_v33 = vadd.f32 1.0, %v7093_v53 }
0x1649   : > { %v4462_v37 = vmul.f32 0.5, %v4454_v12 }
0x164a   : > { %v4461_v41 = vmul.f32 0.5, %v4453_v33 }
0x164b   : > { %v4470_v51 = vmul.f32 %v4462_v37, %v8937_v46 }
0x164c   : > { %v4469_v1 = vmul.f32 %v4461_v41, %v4383_v29 }
0x164e   : > { %v7095_v60 = vpop.eup %7094  ;;  %6280 = vmatprep.mubr.f32.mxu1 %v4469_v1 }
0x164f   : > { %v7097_v49 = vpop.eup %7096  ;;  %6281 = vmatmul.mubr.f32.gmra.mrb[112].mxu1 %v4470_v51  ;;  %v4456_v9 = vadd.f32 1.0, %v7095_v60 }
0x1650   : > { %v4455_v16 = vadd.f32 1.0, %v7097_v49 }
0x1651   : > { %v4464_v3 = vmul.f32 0.5, %v4456_v9 }
0x1652   : > { %v4463_v13 = vmul.f32 0.5, %v4455_v16 }
0x1653   : > { %v4472_v59 = vmul.f32 %v4464_v3, %v4398_v19 }
0x1654   : > { %v4471_v23 = vmul.f32 %v4463_v13, %v4393_v8 }
0x1656   : > { %6283 = vmatprep.mubr.f32.mxu1 %v4471_v23 }
0x1657   : > { %6284 = vmatmul.mubr.f32.gmra.mrb[114].mxu1 %v4472_v59 }
0x1712   : > { %v6276_v6 = vpop.f32.mrb[108].mxu1 }
0x1713   : > { %v4562_v54 = vadd.f32 %v6276_v6, %v4489_v43  ;;  %v4556_v52 = vpop.f32.mrb[109].mxu1 }
0x1714   : > { %v4557_v7 = vadd.f32 %v4556_v52, %v4489_v43 }
0x1715   : > { %v4596_v29 = vadd.f32 %v4562_v54, %v8823_v47 }
0x1716   : > { %v4595_v46 = vadd.f32 %v4557_v7, %v8826_v61 }
0x1717   : > { %v4608_v18 = vsel %vm437_vm9, %v4596_v29, 0.0 }
0x1718   : > { %4609 = vadd.xlane.f32.xlu1 %v4608_v18  ;;  %v4605_v38 = vsel %vm437_vm9, %v4595_v46, 0.0 }
0x1719   : > { %4606 = vadd.xlane.f32.xlu0 %v4605_v38 }
0x171a   : > { %v6279_v35 = vpop.f32.mrb[110].mxu1 }
0x171b   : > { %v4572_v4 = vadd.f32 %v6279_v35, %v4489_v43  ;;  %v4566_v19 = vpop.f32.mrb[111].mxu1 }
0x171c   : > { %v4567_v57 = vadd.f32 %v4566_v19, %v4489_v43  ;;  %v7311_v19 = vmov 0.0|0.0  }
0x171d   : > { %v4598_v0 = vadd.f32 %v4572_v4, %v8833_v31  ;;  %6577 = vmatprep.subr.bf16.mxu0 %v7311_v19 }
0x171e   : > { %v4597_v8 = vadd.f32 %v4567_v57, %v8836_v27 }
0x171f   : > { %v4614_v11 = vsel %vm437_vm9, %v4598_v0, 0.0 }
0x1720   : > { %4615 = vadd.xlane.f32.xlu1 %v4614_v11  ;;  %v4611_v47 = vsel %vm437_vm9, %v4597_v8, 0.0 }
0x1721   : > { %4612 = vadd.xlane.f32.xlu0 %v4611_v47 }
0x1722   : > { %v6282_v61 = vpop.f32.mrb[112].mxu1 }
0x1723   : > { %v4582_v5 = vadd.f32 %v6282_v61, %v4489_v43  ;;  %v4576_v62 = vpop.f32.mrb[113].mxu1 }
0x1724   : > { %v4577_v44 = vadd.f32 %v4576_v62, %v4489_v43 }
0x1725   : > { %v4600_v48 = vadd.f32 %v4582_v5, %v8843_v17 }
0x1726   : > { %v4599_v2 = vadd.f32 %v4577_v44, %v8846_v22 }
0x1727   : > { %v4620_v10 = vsel %vm437_vm9, %v4600_v48, 0.0 }
0x1728   : > { %4621 = vadd.xlane.f32.xlu1 %v4620_v10  ;;  %v4617_v31 = vsel %vm437_vm9, %v4599_v2, 0.0 }
0x1729   : > { %4618 = vadd.xlane.f32.xlu0 %v4617_v31 }
0x172a   : > { %v6285_v27 = vpop.f32.mrb[114].mxu1 }
0x172b   : > { %v4592_v32 = vadd.f32 %v6285_v27, %v4489_v43  ;;  %v4586_v28 = vpop.f32.mrb[115].mxu1  ;;  %v4603_v27 = vld [vmem:[#allocation2 + $0x580] ss:$0 sm:$0xff] }
0x172c   : > { %v4587_v20 = vadd.f32 %v4586_v28, %v4489_v43 }
0x172d   : > { %v4602_v40 = vadd.f32 %v4592_v32, %v8853_v50 }
0x172e   : > { %v4601_v58 = vadd.f32 %v4587_v20, %v8856_v56 }
0x172f   : > { %v4626_v63 = vsel %vm437_vm9, %v4602_v40, 0.0 }
0x1730   : > { %4627 = vadd.xlane.f32.xlu1 %v4626_v63  ;;  %v4623_v17 = vsel %vm437_vm9, %v4601_v58, 0.0 }
0x1731   : > { %4624 = vadd.xlane.f32.xlu0 %v4623_v17  ;;  %v4604_v17 = vld [vmem:[#allocation2 + $0x590] ss:$0 sm:$0xff] }
0x17a5   : > { %v4610_v22 = vpop.xlane.xlu1 %4609 }
0x17a6   : > { %v4630_v15 = vmul.f32 0.03125, %v4610_v22  ;;  %v4607_v36 = vpop.xlane.xlu0 %4606 }
0x17a7   : > { %v4629_v24 = vmul.f32 0.03125, %v4607_v36 }
0x17a8   : > { %v8963_v26 = vsub.f32 %v4596_v29, %v4630_v15 }
0x17a9   : > { %v8965_v30 = vsub.f32 %v4595_v46, %v4629_v24 }
0x17aa   : > { %v4646_v39 = vmul.f32 %v8963_v26, %v8963_v26 }
0x17ab   : > { %v4645_v50 = vmul.f32 %v8965_v30, %v8965_v30 }
0x17ac   : > { %v4656_v56 = vsel %vm437_vm9, %v4646_v39, 0.0 }
0x17ad   : > { %v4616_v55 = vpop.xlane.xlu1 %4615  ;;  %4657 = vadd.xlane.f32.xlu1 %v4656_v56  ;;  %v4653_v14 = vsel %vm437_vm9, %v4645_v50, 0.0 }
0x17ae   : > { %v4632_v45 = vmul.f32 0.03125, %v4616_v55  ;;  %4654 = vadd.xlane.f32.xlu0 %v4653_v14  ;;  %v4613_v42 = vpop.xlane.xlu0 %4612 }
0x17af   : > { %v4631_v34 = vmul.f32 0.03125, %v4613_v42 }
0x17b0   : > { %v8973_v53 = vsub.f32 %v4598_v0, %v4632_v45 }
0x17b1   : > { %v8975_v12 = vsub.f32 %v4597_v8, %v4631_v34 }
0x17b2   : > { %v4648_v33 = vmul.f32 %v8973_v53, %v8973_v53 }
0x17b3   : > { %v4647_v37 = vmul.f32 %v8975_v12, %v8975_v12 }
0x17b4   : > { %v4662_v41 = vsel %vm437_vm9, %v4648_v33, 0.0 }
0x17b5   : > { %v4622_v1 = vpop.xlane.xlu1 %4621  ;;  %4663 = vadd.xlane.f32.xlu1 %v4662_v41  ;;  %v4659_v51 = vsel %vm437_vm9, %v4647_v37, 0.0 }
0x17b6   : > { %v4634_v60 = vmul.f32 0.03125, %v4622_v1  ;;  %4660 = vadd.xlane.f32.xlu0 %v4659_v51  ;;  %v4619_v49 = vpop.xlane.xlu0 %4618 }
0x17b7   : > { %v4633_v9 = vmul.f32 0.03125, %v4619_v49 }
0x17b8   : > { %v8983_v16 = vsub.f32 %v4600_v48, %v4634_v60 }
0x17b9   : > { %v8985_v3 = vsub.f32 %v4599_v2, %v4633_v9 }
0x17ba   : > { %v4650_v13 = vmul.f32 %v8983_v16, %v8983_v16 }
0x17bb   : > { %v4649_v23 = vmul.f32 %v8985_v3, %v8985_v3 }
0x17bc   : > { %v4668_v59 = vsel %vm437_vm9, %v4650_v13, 0.0 }
0x17bd   : > { %4669 = vadd.xlane.f32.xlu1 %v4668_v59  ;;  %v4628_v43 = vpop.xlane.xlu1 %4627  ;;  %v4665_v6 = vsel %vm437_vm9, %v4649_v23, 0.0 }
0x17be   : > { %v4636_v54 = vmul.f32 0.03125, %v4628_v43  ;;  %4666 = vadd.xlane.f32.xlu0 %v4665_v6  ;;  %v4625_v52 = vpop.xlane.xlu0 %4624 }
0x17bf   : > { %v4635_v7 = vmul.f32 0.03125, %v4625_v52 }
0x17c0   : > { %v8993_v29 = vsub.f32 %v4602_v40, %v4636_v54 }
0x17c1   : > { %v8995_v46 = vsub.f32 %v4601_v58, %v4635_v7 }
0x17c2   : > { %v4652_v18 = vmul.f32 %v8993_v29, %v8993_v29 }
0x17c3   : > { %v4651_v38 = vmul.f32 %v8995_v46, %v8995_v46 }
0x17c4   : > { %v4674_v35 = vsel %vm437_vm9, %v4652_v18, 0.0 }
0x17c5   : > { %4675 = vadd.xlane.f32.xlu1 %v4674_v35  ;;  %v4671_v4 = vsel %vm437_vm9, %v4651_v38, 0.0 }
0x17c6   : > { %4672 = vadd.xlane.f32.xlu0 %v4671_v4 }
0x183a   : > { %v4658_v57 = vpop.xlane.xlu1 %4657 }
0x183b   : > { %v4678_v0 = vmul.f32 0.03125, %v4658_v57  ;;  %v4655_v8 = vpop.xlane.xlu0 %4654 }
0x183c   : > { %v4677_v11 = vmul.f32 0.03125, %v4655_v8 }
0x183d   : > { %v4686_v47 = vadd.f32 1e-05, %v4678_v0  ;;  %v4802_v0 = vld [vmem:[#allocation2 + $0x5b8] sm:$0xff] }
0x183e   : > { %v4685_v61 = vadd.f32 1e-05, %v4677_v11 }
0x183f   : > { %7098 = vrsqrt.f32 %v4686_v47 }
0x1840   : > { %7100 = vrsqrt.f32 %v4685_v61  ;;  %v4799_v61 = vld [vmem:[#allocation2 + $0x5a0] sm:$0xff] }
0x1842   : > { %v4664_v5 = vpop.xlane.xlu1 %4663 }
0x1843   : > { %v4680_v62 = vmul.f32 0.03125, %v4664_v5  ;;  %v4661_v44 = vpop.xlane.xlu0 %4660  ;;  %v4801_v5 = vld [vmem:[#allocation2 + $0x5b0] sm:$0xff] }
0x1844   : > { %v4679_v48 = vmul.f32 0.03125, %v4661_v44  ;;  %v4804_v44 = vld [vmem:[#allocation2 + $0x5c8] sm:$0xff] }
0x1845   : > { %v4688_v2 = vadd.f32 1e-05, %v4680_v62 }
0x1846   : > { %v4687_v10 = vadd.f32 1e-05, %v4679_v48  ;;  %v4806_v48 = vld [vmem:[#allocation2 + $0x5d8] sm:$0xff] }
0x1847   : > { %7102 = vrsqrt.f32 %v4688_v2  ;;  %v4725_v2 = vld [vmem:[#allocation2 + $0xca0] sm:$0xff] }
0x1848   : > { %7104 = vrsqrt.f32 %v4687_v10  ;;  %v4803_v10 = vld [vmem:[#allocation2 + $0x5c0] sm:$0xff] }
0x1849   : > { %v7099_v31 = vpop.eup %7098 }
0x184a   : > { %v7101_v32 = vpop.eup %7100  ;;  %v4702_v28 = vmul.f32 %v7099_v31, %v8963_v26  ;;  %v4670_v20 = vpop.xlane.xlu1 %4669  ;;  %v4805_v31 = vld [vmem:[#allocation2 + $0x5d0] sm:$0xff] }
0x184b   : > { %v4701_v40 = vmul.f32 %v7101_v32, %v8965_v30  ;;  %v4682_v58 = vmul.f32 0.03125, %v4670_v20  ;;  %v4667_v63 = vpop.xlane.xlu0 %4666 }
0x184c   : > { %v4681_v22 = vmul.f32 0.03125, %v4667_v63  ;;  %v4710_v15 = vmul.f32 %v4702_v28, %v4603_v27  ;;  %v4811_v28 = vshrl.u32 %v167_v21, 7 }
0x184d   : > { %v4690_v36 = vadd.f32 1e-05, %v4682_v58  ;;  %v4709_v24 = vmul.f32 %v4701_v40, %v4603_v27  ;;  %v4808_v40 = vld [vmem:[#allocation2 + $0x5e0] ss:$8 sm:$0x3] }
0x184e   : > { %v4689_v39 = vadd.f32 1e-05, %v4681_v22  ;;  %v4718_v50 = vadd.f32 %v4710_v15, %v4604_v17  ;;  %v9020_v20 = vsub.s32 0, %v4811_v28  ;;  %v9022_v58 = vsub.s32 1, %v4811_v28  ;;  %v4974_v28 = vld [vmem:[#allocation2 + $0x700] sm:$0xff] }
0x184f   : > { %7106 = vrsqrt.f32 %v4690_v36  ;;  %v4717_v56 = vadd.f32 %v4709_v24, %v4604_v17 }
0x1850   : > { %7108 = vrsqrt.f32 %v4689_v39  ;;  %v4813_v63 = vrot.slane %v4808_v40, %v9020_v20 }
0x1851   : > { %v7103_v55 = vpop.eup %7102  ;;  %v6578_v14 = vpack.c.bf16 %v4718_v50, %v4717_v56 }
0x1852   : > { %v7105_v45 = vpop.eup %7104  ;;  %v4704_v26 = vmul.f32 %v7103_v55, %v8973_v53  ;;  %v4676_v42 = vpop.xlane.xlu1 %4675 }
0x1853   : > { %v4703_v30 = vmul.f32 %v7105_v45, %v8975_v12  ;;  %v4684_v34 = vmul.f32 0.03125, %v4676_v42  ;;  %6579 = vmatpush3.bf16.msra.mxu0 %v6578_v14  ;;  %v4673_v33 = vpop.xlane.xlu0 %4672  ;;  %v4976_v42 = vld [vmem:[#allocation2 + $0x720] sm:$0xff] }
0x1854   : > { %v4683_v37 = vmul.f32 0.03125, %v4673_v33  ;;  %6580 = vmatprep.subr.bf16.mxu0 %v7311_v19  ;;  %v4712_v41 = vmul.f32 %v4704_v26, %v4603_v27  ;;  %v4975_v26 = vld [vmem:[#allocation2 + $0x710] sm:$0xff]  ;;  %v4960_v33 = vld [vmem:[#allocation2 + $0x620] sm:$0xff] }
0x1855   : > { %v4692_v1 = vadd.f32 1e-05, %v4684_v34  ;;  %v4711_v51 = vmul.f32 %v4703_v30, %v4603_v27  ;;  %v6597_v30 = vpack.c.bf16 %v4976_v42, %v4975_v26  ;;  %v4959_v34 = vld [vmem:[#allocation2 + $0x610] sm:$0xff] }
0x1856   : > { %v4691_v60 = vadd.f32 1e-05, %v4683_v37  ;;  %v4720_v49 = vadd.f32 %v4712_v41, %v4604_v17  ;;  %v6599_v37 = vpack.c.bf16 %v4960_v33, %v4959_v34  ;;  %v4977_v41 = vld [vmem:[#allocation2 + $0x730] sm:$0xff] }
0x1857   : > { %7110 = vrsqrt.f32 %v4692_v1  ;;  %v4719_v9 = vadd.f32 %v4711_v51, %v4604_v17  ;;  %6598 = vmatprep.subr.bf16.mxu1 %v6597_v30  ;;  %v4978_v1 = vld [vmem:[#allocation2 + $0x740] sm:$0xff] }
0x1858   : > { %7112 = vrsqrt.f32 %v4691_v60  ;;  %6600 = vmatpush3.bf16.msra.mxu1 %v6599_v37  ;;  %v6601_v51 = vpack.c.bf16 %v4978_v1, %v4977_v41  ;;  %v4961_v60 = vld [vmem:[#allocation2 + $0x630] sm:$0xff] }
0x1859   : > { %v7107_v13 = vpop.eup %7106  ;;  %v6581_v23 = vpack.c.bf16 %v4720_v49, %v4719_v9  ;;  %v4962_v49 = vld [vmem:[#allocation2 + $0x640] sm:$0xff]  ;;  %v4979_v9 = vld [vmem:[#allocation2 + $0x750] sm:$0xff] }
0x185a   : > { %v7109_v53 = vpop.eup %7108  ;;  %v4706_v59 = vmul.f32 %v7107_v13, %v8983_v16  ;;  %v6603_v13 = vpack.c.bf16 %v4962_v49, %v4961_v60  ;;  %6602 = vmatprep.subr.bf16.mxu1 %v6601_v51 }
0x185b   : > { %v4705_v12 = vmul.f32 %v7109_v53, %v8985_v3  ;;  %6582 = vmatpush3.bf16.msra.mxu0 %v6581_v23  ;;  %v4800_v3 = vld [vmem:[#allocation2 + $0x5a8] sm:$0xff]  ;;  %v4980_v23 = vld [vmem:[#allocation2 + $0x760] sm:$0xff]  ;;  %v4963_v53 = vld [vmem:[#allocation2 + $0x650] sm:$0xff] }
0x185c   : > { %6583 = vmatprep.subr.bf16.mxu0 %v7311_v19  ;;  %v4714_v43 = vmul.f32 %v4706_v59, %v4603_v27  ;;  %v6589_v47 = vpack.c.bf16 %v4802_v0, %v4800_v3  ;;  %v4964_v59 = vld [vmem:[#allocation2 + $0x660] sm:$0xff]  ;;  %6604 = vmatpush3.bf16.msra.mxu1 %v6603_v13  ;;  %v4985_v0 = vld [vmem:[#allocation2 + $0x7b0] sm:$0xff] }
0x185d   : > { %v4713_v6 = vmul.f32 %v4705_v12, %v4603_v27  ;;  %v6605_v12 = vpack.c.bf16 %v4980_v23, %v4979_v9  ;;  %v4968_v3 = vld [vmem:[#allocation2 + $0x6a0] sm:$0xff] }
0x185e   : > { %v4722_v54 = vadd.f32 %v4714_v43, %v4604_v17  ;;  %v4981_v43 = vld [vmem:[#allocation2 + $0x770] sm:$0xff] }
0x185f   : > { %v4721_v52 = vadd.f32 %v4713_v6, %v4604_v17  ;;  %v4982_v6 = vld [vmem:[#allocation2 + $0x780] sm:$0xff]  ;;  %6606 = vmatprep.subr.bf16.mxu1 %v6605_v12 }
0x1861   : > { %v7111_v7 = vpop.eup %7110  ;;  %v6584_v18 = vpack.c.bf16 %v4722_v54, %v4721_v52  ;;  %v6607_v54 = vpack.c.bf16 %v4964_v59, %v4963_v53  ;;  %v6609_v52 = vpack.c.bf16 %v4982_v6, %v4981_v43 }
0x1862   : > { %v7113_v38 = vpop.eup %7112  ;;  %v4708_v35 = vmul.f32 %v7111_v7, %v8993_v29  ;;  %v6591_v29 = vpack.c.bf16 %v4801_v5, %v4799_v61  ;;  %v4965_v7 = vld [vmem:[#allocation2 + $0x670] sm:$0xff]  ;;  %v4970_v5 = vld [vmem:[#allocation2 + $0x6c0] sm:$0xff] }
0x1863   : > { %v4707_v4 = vmul.f32 %v7113_v38, %v8995_v46  ;;  %6585 = vmatpush3.bf16.msra.mxu0 %v6584_v18  ;;  %v6593_v46 = vpack.c.bf16 %v4806_v48, %v4804_v44  ;;  %v4966_v18 = vld [vmem:[#allocation2 + $0x680] sm:$0xff]  ;;  %v4983_v38 = vld [vmem:[#allocation2 + $0x790] sm:$0xff]  ;;  %6608 = vmatpush3.bf16.msra.mxu1 %v6607_v54 }
0x1864   : > { %6586 = vmatprep.subr.bf16.mxu0 %v7311_v19  ;;  %v4716_v16 = vmul.f32 %v4708_v35, %v4603_v27  ;;  %v6595_v19 = vpack.c.bf16 %v4805_v31, %v4803_v10  ;;  %v4984_v35 = vld [vmem:[#allocation2 + $0x7a0] sm:$0xff]  ;;  %6610 = vmatprep.subr.bf16.mxu1 %v6609_v52  ;;  %v4969_v61 = vld [vmem:[#allocation2 + $0x6b0] sm:$0xff] }
0x1865   : > { %v4715_v57 = vmul.f32 %v4707_v4, %v4603_v27  ;;  %v6611_v4 = vpack.c.bf16 %v4966_v18, %v4965_v7  ;;  %v4988_v44 = vld [vmem:[#allocation2 + $0x7e0] sm:$0xff]  ;;  %v6619_v48 = vpack.c.bf16 %v4970_v5, %v4969_v61  ;;  %v4989_v10 = vld [vmem:[#allocation2 + $0x7f0] sm:$0xff] }
0x1866   : > { %v4724_v8 = vadd.f32 %v4716_v16, %v4604_v17  ;;  %v6613_v16 = vpack.c.bf16 %v4984_v35, %v4983_v38  ;;  %v4990_v31 = vld [vmem:[#allocation2 + $0x800] sm:$0xff]  ;;  %v4991_v54 = vld [vmem:[#allocation2 + $0x810] ss:$0 sm:$0xff] }
0x1867   : > { %v4723_v11 = vadd.f32 %v4715_v57, %v4604_v17  ;;  %v4817_v17 = vrot.slane %v4808_v40, %v9022_v58  ;;  %v4967_v57 = vld [vmem:[#allocation2 + $0x690] sm:$0xff]  ;;  %6612 = vmatpush3.bf16.msra.mxu1 %v6611_v4 }
0x1868   : > { %6614 = vmatprep.subr.bf16.mxu1 %v6613_v16 }
0x1869   : > { %v6587_v62 = vpack.c.bf16 %v4724_v8, %v4723_v11  ;;  %v4986_v8 = vld [vmem:[#allocation2 + $0x7c0] sm:$0xff]  ;;  %v6615_v11 = vpack.c.bf16 %v4968_v3, %v4967_v57 }
0x186b   : > { %6588 = vmatpush3.bf16.msra.mxu0 %v6587_v62  ;;  %v4987_v62 = vld [vmem:[#allocation2 + $0x7d0] sm:$0xff]  ;;  %6616 = vmatpush3.bf16.msra.mxu1 %v6615_v11 }
0x186c   : > { %6590 = vmatprep.subr.bf16.mxu0 %v6589_v47  ;;  %v6617_v47 = vpack.c.bf16 %v4986_v8, %v4985_v0 }
0x186e   : > { %6303 = vmatmul.mubr.msk.f32.vlgmr.msra.gmra.mrb[116].mxu0 %vm225_vm0, %v4725_v2  ;;  %6618 = vmatprep.subr.bf16.mxu1 %v6617_v47  ;;  %v6621_v2 = vpack.c.bf16 %v4988_v44, %v4987_v62 }
0x186f   : > { %6592 = vmatpush1.bf16.msra.mxu0 %v6591_v29  ;;  %4887 = vmatprep.mubr.f32.mxu0 %v7308_v25  ;;  %v4971_v29 = vld [vmem:[#allocation2 + $0x6d0] sm:$0xff] }
0x1870   : > { %6594 = vmatprep.subr.bf16.mxu0 %v6593_v46  ;;  %v4972_v46 = vld [vmem:[#allocation2 + $0x6e0] sm:$0xff]  ;;  %6620 = vmatpush3.bf16.msra.mxu1 %v6619_v48 }
0x1871   : > { %6622 = vmatprep.subr.bf16.mxu1 %v6621_v2 }
0x1873   : > { %6596 = vmatpush1.bf16.msra.mxu0 %v6595_v19  ;;  %v6623_v19 = vpack.c.bf16 %v4972_v46, %v4971_v29 }
0x1875   : > { %6624 = vmatpush3.bf16.msra.mxu1 %v6623_v19 }
0x1941   : > { %v4795_v27 = vpop.f32.mrb[116].mxu0 }
0x1942   : > { %5339 = vmatmul.mubr.msk.f32.vlgmr.msra.gmra.mrb[118].mxu0 %vm437_vm9, %v4795_v27  ;;  %v6304_v32 = vpop.f32.mrb[117].mxu0  ;;  %v6625_v27 = vpack.c.bf16 %v4990_v31, %v4989_v10 }
0x1943   : > { %v4973_v32 = vld [vmem:[#allocation2 + $0x6f0] sm:$0xff] }
0x1944   : > { %v6627_v40 = vpack.c.bf16 %v4974_v28, %v4973_v32  ;;  %6626 = vmatprep.subr.bf16.mxu1 %v6625_v27 }
0x1946   : > { %6628 = vmatpush3.bf16.msra.mxu1 %v6627_v40 }
0x1a15   : > { %v4889_v22 = vpop.f32.mrb[118].mxu0 }
0x1a16   : > { %v4890_v15 = vadd.f32 %v4889_v22, %v4813_v63  ;;  %v4891_v25 = vpop.f32.mrb[119].mxu0 }
0x1a17   : > { %v4892_v36 = vadd.f32 %v4891_v25, %v4817_v17  ;;  %v4897_v25 = vld [vmem:[#allocation2 + $0x600] ss:$8 sm:$0x3] }
0x1a19   : > { %v4898_v24 = vadd.f32 %v4892_v36, %v4890_v15 }
0x1a1b   : > { %4899 = vadd.xlane.f32.xlu0 %v4898_v24 }
0x1aa8   : > { %v4900_v39 = vpop.xlane.xlu0 %4899 }
0x1aa9   : > { %v4902_v50 = vmul.f32 0.00390625, %v4900_v39 }
0x1aab   : > { %v9026_v56 = vsub.f32 %v4890_v15, %v4902_v50  ;;  %v9028_v21 = vsub.f32 %v4892_v36, %v4902_v50  ;;  %v4895_v15 = vld [vmem:[#allocation2 + $0x5f0] ss:$8 sm:$0x3]  ;;  %v4932_v50 = vrot.slane %v4897_v25, %v9020_v20 }
0x1aac   : > { %v4919_v36 = vrot.slane %v4895_v15, %v9020_v20  ;;  %v4923_v24 = vrot.slane %v4895_v15, %v9022_v58 }
0x1aad   : > { %v4905_v55 = vmul.f32 %v9026_v56, %v9026_v56  ;;  %v4906_v14 = vmul.f32 %v9028_v21, %v9028_v21 }
0x1aaf   : > { %v4907_v45 = vadd.f32 %v4906_v14, %v4905_v55  ;;  %v4936_v55 = vrot.slane %v4897_v25, %v9022_v58 }
0x1ab1   : > { %4908 = vadd.xlane.f32.xlu1 %v4907_v45 }
0x1b3e   : > { %v4909_v63 = vpop.xlane.xlu1 %4908 }
0x1b3f   : > { %v4910_v17 = vmul.f32 0.00390625, %v4909_v63 }
0x1b41   : > { %v4911_v22 = vadd.f32 1e-05, %v4910_v17 }
0x1b43   : > { %7114 = vrsqrt.f32 %v4911_v22 }
0x1b4d   : > { %v7115_v39 = vpop.eup %7114 }
0x1b4e   : > { %v4913_v14 = vmul.f32 %v7115_v39, %v9026_v56  ;;  %v4914_v45 = vmul.f32 %v7115_v39, %v9028_v21 }
0x1b50   : > { %v4926_v26 = vmul.f32 %v4919_v36, %v4913_v14  ;;  %v4927_v42 = vmul.f32 %v4923_v24, %v4914_v45 }
0x1b52   : > { %v4939_v30 = vadd.f32 %v4932_v50, %v4926_v26  ;;  %v4940_v34 = vadd.f32 %v4936_v55, %v4927_v42 }
0x1b54   : > { %v4942_v33 = vmul.f32 %v4940_v34, %v4940_v34  ;;  %v4941_v37 = vmul.f32 %v4939_v30, %v4939_v30 }
0x1b56   : > { %v4944_v41 = vmul.f32 %v4942_v33, %v4940_v34  ;;  %v4943_v1 = vmul.f32 %v4941_v37, %v4939_v30 }
0x1b58   : > { %v4946_v51 = vmul.f32 0.044715, %v4944_v41  ;;  %v4945_v60 = vmul.f32 0.044715, %v4943_v1 }
0x1b5a   : > { %v4948_v49 = vadd.f32 %v4946_v51, %v4940_v34  ;;  %v4947_v9 = vadd.f32 %v4945_v60, %v4939_v30 }
0x1b5c   : > { %v4950_v20 = vmul.f32 0.7978846, %v4948_v49  ;;  %v4949_v58 = vmul.f32 0.7978846, %v4947_v9 }
0x1b5e   : > { %7116 = vtanh.f32 %v4950_v20 }
0x1b5f   : > { %7118 = vtanh.f32 %v4949_v58 }
0x1b68   : > { %v7117_v56 = vpop.eup %7116 }
0x1b69   : > { %v7119_v21 = vpop.eup %7118  ;;  %v4954_v13 = vadd.f32 1.0, %v7117_v56 }
0x1b6a   : > { %v4953_v23 = vadd.f32 1.0, %v7119_v21 }
0x1b6b   : > { %v4956_v53 = vmul.f32 0.5, %v4954_v13 }
0x1b6c   : > { %v4955_v59 = vmul.f32 0.5, %v4953_v23 }
0x1b6d   : > { %v4958_v12 = vmul.f32 %v4956_v53, %v4940_v34 }
0x1b6e   : > { %v4957_v43 = vmul.f32 %v4955_v59, %v4939_v30 }
0x1b6f   : > { %5056 = vmatprep.mubr.f32.mxu1 %v4958_v12 }
0x1b70   : > { %5057 = vmatmul.mubr.f32.vlgmr.msra.gmra.mrb[116].mxu1 %v4957_v43 }
0x1c43   : > { %v5791_v6 = vpop.f32.mrb[116].mxu1 }
0x1c44   : > { %v5792_v52 = vpop.f32.mrb[117].mxu1 }
0x1c45   : > { %v5793_v7 = vadd.f32 %v5792_v52, %v5791_v6 }
0x1c47   : > { %v5059_v18 = vadd.f32 %v5793_v7, %v4991_v54 }
0x1c49   : > { %5062 = vst [vmem:[%s158_s11] sm:$0xff] %v5059_v18 }
0x1c4a PF: > { %s13_s9 = sadd.s32 1, %s7302_s9  }
0x1c4b   : > { %p10_p5 = scmp.ge.s32.totalorder %s13_s9, 4  }
0x1c4d   :  { %12 = sbr.rel (!%p10_p5) target bundleno = 1 (0x1), region = 66 }
0x1c54   :  { %5082 = vsyncpa [#allocation3], 1 }
0x1c55   :  { %5084 = vsyncpa [#allocation3 + $0x1], 1 }

</bundles_post_ra>
